<compile_context>
chip_gen: v7x
topology: tpu7x:2x2x1
jax: 0.10.0
libtpu: 0.0.40
codegen_flags: <defaults>
</compile_context>

<pallas_src>
import functools

import numpy as np
import jax
import jax.numpy as jnp
from jax.experimental import pallas as pl
from jax.experimental.pallas import tpu as pltpu


# ----------------------------------------------------------------------------
# Fused kernel: grid_sample -> conv3x3+BN+ReLU -> conv3x3+BN+ReLU -> 1x1 -> loss
# ----------------------------------------------------------------------------
def _bev_head_kernel(loss_type, B, OH, OW, C,
                     x_ref, kw_ref, whb_ref,
                     band1_ref, g1_ref, beta1_ref,
                     band2_ref, g2_ref, beta2_ref,
                     cs_ref, w3_ref, b3_ref, tgt_ref,
                     o_ref, pad_ref):
    rows = B * OH                      # sublane rows of the classifier tensors
    WC = OW * C                        # lane width of the activations (256)
    PWC = (OW + 2) * C                 # lane width of the padded scratch (288)

    # ---- BEVGridTransform: separable bilinear grid_sample as 2 dense matmuls.
    # x_ref: (B*IH, IW*C) NHWC-flattened input feature map.
    t = jnp.dot(x_ref[...], kw_ref[...],
                preferred_element_type=jnp.float32)            # (B*IH, OW*C)
    z = jnp.dot(whb_ref[...], t,
                preferred_element_type=jnp.float32)            # (B*OH, OW*C)

    # ---- zero only the 1-pixel halo of the padded scratch (once) ----
    pad_ref[:, 0:1, :] = jnp.zeros((B, 1, PWC), jnp.float32)
    pad_ref[:, OH + 1:OH + 2, :] = jnp.zeros((B, 1, PWC), jnp.float32)
    pad_ref[:, 1:OH + 1, 0:C] = jnp.zeros((B, OH, C), jnp.float32)
    pad_ref[:, 1:OH + 1, (OW + 1) * C:PWC] = jnp.zeros((B, OH, C), jnp.float32)
    # interior <- grid-transformed features (NHWC with (w, c) flattened in lanes)
    pad_ref[:, 1:OH + 1, C:(OW + 1) * C] = z.reshape(B, OH, WC)

    def conv_bn_relu(band_ref, gamma_ref, beta_ref):
        # 3x3 conv (padding=1, bias=False) as 3 banded, lane-dense matmuls.
        h = jnp.dot(pad_ref[:, 0:OH, :].reshape(rows, PWC), band_ref[0],
                    preferred_element_type=jnp.float32)        # (rows, OW*C)
        for dy in (1, 2):
            h = h + jnp.dot(pad_ref[:, dy:dy + OH, :].reshape(rows, PWC),
                            band_ref[dy], preferred_element_type=jnp.float32)
        # training-mode BatchNorm2d: fused one-pass sum / sum-of-squares,
        # per-channel grouping + broadcast via the precomputed cs matrix.
        colsum = jnp.sum(h, axis=0, keepdims=True)             # (1, OW*C)
        colsq = jnp.sum(h * h, axis=0, keepdims=True)          # (1, OW*C)
        mean = jnp.dot(colsum, cs_ref[...],
                       preferred_element_type=jnp.float32)     # per-channel mean
        ex2 = jnp.dot(colsq, cs_ref[...],
                      preferred_element_type=jnp.float32)      # per-channel E[x^2]
        var = jnp.maximum(ex2 - mean * mean, 0.0)              # biased variance
        hn = (h - mean) * jax.lax.rsqrt(var + 1e-5)
        return jnp.maximum(hn * gamma_ref[...] + beta_ref[...], 0.0)

    h1 = conv_bn_relu(band1_ref, g1_ref, beta1_ref)
    pad_ref[:, 1:OH + 1, C:(OW + 1) * C] = h1.reshape(B, OH, WC)   # halo stays 0
    h2 = conv_bn_relu(band2_ref, g2_ref, beta2_ref)

    # ---- 1x1 conv restricted to the LAST class (only it reaches the loss) ----
    logits = jnp.dot(h2, w3_ref[...],
                     preferred_element_type=jnp.float32) + b3_ref[0, 0]  # (rows, OW)
    t01 = tgt_ref[...]                                                   # (rows, OW)

    # numerically stable binary_cross_entropy_with_logits
    ce = (jnp.maximum(logits, 0.0) - logits * t01
          + jnp.log(1.0 + jnp.exp(-jnp.abs(logits))))
    if loss_type == "focal":                      # alpha = -1, gamma = 2
        p = 1.0 / (1.0 + jnp.exp(-logits))
        p_t = p * t01 + (1.0 - p) * (1.0 - t01)
        per = ce * (1.0 - p_t) * (1.0 - p_t)
    else:                                         # "xent"
        per = ce
    o_ref[0, 0] = (0.5 / float(rows * OW)) * jnp.sum(per)


# ----------------------------------------------------------------------------
# Host-side parameter packing (pure numpy; done once at init).
# ----------------------------------------------------------------------------
def make_interp_matrix(in_scope, out_scope, in_size):
    """Separable bilinear grid_sample matrix (align_corners=False, zeros pad)."""
    imin, imax, _ = in_scope
    omin, omax, ostep = out_scope
    v = np.arange(omin + ostep / 2.0, omax, ostep)
    vn = (v - imin) / (imax - imin) * 2.0 - 1.0
    src = (vn + 1.0) * in_size / 2.0 - 0.5
    i0 = np.floor(src).astype(np.int64)
    i1 = i0 + 1
    w1 = src - i0
    w0 = 1.0 - w1
    M = np.zeros((len(v), in_size), np.float32)
    r = np.arange(len(v))
    ok0 = (i0 >= 0) & (i0 < in_size)
    ok1 = (i1 >= 0) & (i1 < in_size)
    M[r[ok0], i0[ok0]] += w0[ok0]
    M[r[ok1], i1[ok1]] += w1[ok1]
    return M.astype(np.float32)


def _band_matrices(w_np, C, W):
    """3x3-conv weight -> 3 banded matrices ((W+2)*C, W*Cout), one per kernel row.

    w_np layout: (kh, kw, Cin, Cout) == torch weight.permute(2, 3, 1, 0)."""
    Cout = w_np.shape[3]
    bands = np.zeros((3, (W + 2) * C, W * Cout), np.float32)
    for dy in range(3):
        b4 = np.zeros((W + 2, C, W, Cout), np.float32)
        for ow in range(W):
            for dx in range(3):
                b4[ow + dx, :, ow, :] = w_np[dy, dx]
        bands[dy] = b4.reshape((W + 2) * C, W * Cout)
    return bands


def prepare_params(raw, B):
    """Pack module parameters into lane-dense kernel operands."""
    Wh, Ww = raw["Wh"], raw["Ww"]                       # (OH, IH), (OW, IW)
    OH, IH = Wh.shape
    OW, IW = Ww.shape
    C = raw["w1"].shape[2]
    K = raw["w3"].shape[1]
    eye_c = np.eye(C, dtype=np.float32)
    packed = dict(
        B=B, OH=OH, OW=OW, C=C, K=K,
        # grid_sample: W-resample with channels riding in lanes, batched H-resample
        kw=np.kron(Ww.T.astype(np.float32), eye_c),                  # (IW*C, OW*C)
        whb=np.kron(np.eye(B, dtype=np.float32), Wh),                # (B*OH, B*IH)
        # banded conv weights
        band1=_band_matrices(raw["w1"], C, OW),
        band2=_band_matrices(raw["w2"], C, OW),
        # BN affine params, tiled into the (ow, c) lane layout
        g1=np.tile(raw["g1"].reshape(1, C), (1, OW)),
        beta1=np.tile(raw["b1"].reshape(1, C), (1, OW)),
        g2=np.tile(raw["g2"].reshape(1, C), (1, OW)),
        beta2=np.tile(raw["b2"].reshape(1, C), (1, OW)),
        # per-channel average-and-broadcast matrix for BN statistics
        cs=np.kron(np.ones((OW, OW), np.float32), eye_c) / float(B * OH * OW),
        # 1x1 conv, last class only (the torch loop overwrites `loss`)
        w3e=np.kron(np.eye(OW, dtype=np.float32), raw["w3"][:, K - 1:K]),  # (OW*C, OW)
        b3=np.asarray(raw["b3"][0, K - 1], np.float32).reshape(1, 1),
    )
    return {k: (jnp.asarray(v, jnp.float32) if isinstance(v, np.ndarray) else v)
            for k, v in packed.items()}


# ----------------------------------------------------------------------------
# Wrapper: BEVSegmentationHead.forward(x, target) -> scalar loss
# ----------------------------------------------------------------------------
def bev_segmentation_head_forward(x, target, prep, loss_type="focal"):
    B, C, IH, IW = x.shape
    OH, OW, K = prep["OH"], prep["OW"], prep["K"]
    rows = B * OH

    # Input-side layout prep (32 KiB): NCHW -> NHWC, flattened to (B*IH, IW*C)
    # so every in-kernel matmul/elementwise op is lane-dense.
    x2 = jnp.transpose(x.astype(jnp.float32), (0, 2, 3, 1)).reshape(B * IH, IW * C)
    tgt = target[:, K - 1].astype(jnp.float32).reshape(rows, OW)

    kern = functools.partial(_bev_head_kernel, loss_type, B, OH, OW, C)
    vmem = pl.BlockSpec(memory_space=pltpu.MemorySpace.VMEM)
    smem = pl.BlockSpec(memory_space=pltpu.MemorySpace.SMEM)

    loss = pl.pallas_call(
        kern,
        out_shape=jax.ShapeDtypeStruct((1, 1), jnp.float32),
        in_specs=[vmem] * 11 + [smem, vmem],
        out_specs=smem,
        scratch_shapes=[pltpu.VMEM((B, OH + 2, (OW + 2) * C), jnp.float32)],
    )(x2, prep["kw"], prep["whb"],
      prep["band1"], prep["g1"], prep["beta1"],
      prep["band2"], prep["g2"], prep["beta2"],
      prep["cs"], prep["w3e"], prep["b3"], tgt)
    return loss[0, 0]


# ----------------------------------------------------------------------------
# Pure-JAX reference (independent formulation) for a sanity check.
# ----------------------------------------------------------------------------
def _reference_loss(x, target, raw, loss_type):
    Wh, Ww = jnp.asarray(raw["Wh"]), jnp.asarray(raw["Ww"])
    xt = jnp.einsum('hi,wj,bcij->bchw', Wh, Ww, x.astype(jnp.float32))

    def stage(h, w, g, b):
        y = jax.lax.conv_general_dilated(
            h, jnp.asarray(w), (1, 1), 'SAME',
            dimension_numbers=('NCHW', 'HWIO', 'NCHW'))
        mean = y.mean(axis=(0, 2, 3), keepdims=True)
        var = ((y - mean) ** 2).mean(axis=(0, 2, 3), keepdims=True)
        yn = (y - mean) * jax.lax.rsqrt(var + 1e-5)
        return jnp.maximum(yn * jnp.asarray(g).reshape(1, -1, 1, 1)
                           + jnp.asarray(b).reshape(1, -1, 1, 1), 0.0)

    h = stage(xt, raw["w1"], raw["g1"], raw["b1"])
    h = stage(h, raw["w2"], raw["g2"], raw["b2"])
    K = raw["w3"].shape[1]
    logits = (jnp.einsum('bchw,ck->bkhw', h, jnp.asarray(raw["w3"]))
              + jnp.asarray(raw["b3"]).reshape(1, K, 1, 1))
    z = logits[:, K - 1]
    t = target[:, K - 1].astype(jnp.float32)
    ce = jnp.maximum(z, 0.0) - z * t + jnp.log1p(jnp.exp(-jnp.abs(z)))
    if loss_type == "focal":
        p = jax.nn.sigmoid(z)
        p_t = p * t + (1.0 - p) * (1.0 - t)
        per = ce * (1.0 - p_t) ** 2
    else:
        per = ce
    return 0.5 * per.mean()


# ----------------------------------------------------------------------------
if __name__ == "__main__":
    B, C = 2, 16                    # batch, in_channels
    IH = IW = 16                    # input BEV grid
    K = 6                           # len(classes)
    input_scope = [(-8.0, 8.0, 1.0), (-8.0, 8.0, 1.0)]
    output_scope = [(-6.0, 6.0, 0.75), (-6.0, 6.0, 0.75)]   # -> OH = OW = 16

    key = jax.random.PRNGKey(0)
    ks = jax.random.split(key, 10)

    # deterministic synthetic parameters (shapes per nn.Module __init__);
    # conv weights stored as (kh, kw, Cin, Cout) == torch weight.permute(2,3,1,0)
    raw = dict(
        Wh=make_interp_matrix(input_scope[0], output_scope[0], IH),
        Ww=make_interp_matrix(input_scope[1], output_scope[1], IW),
        w1=np.asarray(0.1 * jax.random.normal(ks[0], (3, 3, C, C), jnp.float32)),
        g1=np.asarray(1.0 + 0.1 * jax.random.normal(ks[1], (1, C), jnp.float32)),
        b1=np.asarray(0.05 * jax.random.normal(ks[2], (1, C), jnp.float32)),
        w2=np.asarray(0.1 * jax.random.normal(ks[3], (3, 3, C, C), jnp.float32)),
        g2=np.asarray(1.0 + 0.1 * jax.random.normal(ks[4], (1, C), jnp.float32)),
        b2=np.asarray(0.05 * jax.random.normal(ks[5], (1, C), jnp.float32)),
        w3=np.asarray(0.2 * jax.random.normal(ks[6], (C, K), jnp.float32)),
        b3=np.asarray(0.01 * jax.random.normal(ks[7], (1, K), jnp.float32)),
    )
    OH, OW = raw["Wh"].shape[0], raw["Ww"].shape[0]

    x = jax.random.normal(ks[8], (B, C, IH, IW), jnp.float32)
    target = (jax.random.uniform(ks[9], (B, K, OH, OW)) > 0.5).astype(jnp.float32)

    prep = prepare_params(raw, B)
    loss = bev_segmentation_head_forward(x, target, prep, loss_type="focal")
    loss = jax.block_until_ready(loss)
    assert loss.shape == () and bool(jnp.isfinite(loss))

    # independent pure-JAX reference (loose tol: MXU f32 matmul precision differs)
    ref = jax.block_until_ready(_reference_loss(x, target, raw, "focal"))
    np.testing.assert_allclose(np.asarray(loss), np.asarray(ref),
                               rtol=5e-2, atol=1e-3)

    # TODO(synk): predict()/InstanceData packaging and the prescale_factor != 1
    # F.interpolate branch are framework glue and are not reproduced here.
    print("KERNEL_OK")
</pallas_src>

<mosaic_0001>
module attributes {stable_mosaic.version = 11 : i64} {
  func.func @_bev_head_kernel(%arg0: memref<32x256xf32, #tpu.memory_space<vmem>>, %arg1: memref<256x256xf32, #tpu.memory_space<vmem>>, %arg2: memref<32x32xf32, #tpu.memory_space<vmem>>, %arg3: memref<3x288x256xf32, #tpu.memory_space<vmem>>, %arg4: memref<1x256xf32, #tpu.memory_space<vmem>>, %arg5: memref<1x256xf32, #tpu.memory_space<vmem>>, %arg6: memref<3x288x256xf32, #tpu.memory_space<vmem>>, %arg7: memref<1x256xf32, #tpu.memory_space<vmem>>, %arg8: memref<1x256xf32, #tpu.memory_space<vmem>>, %arg9: memref<256x256xf32, #tpu.memory_space<vmem>>, %arg10: memref<256x16xf32, #tpu.memory_space<vmem>>, %arg11: memref<1x1xf32, #tpu.memory_space<smem>>, %arg12: memref<32x16xf32, #tpu.memory_space<vmem>>, %arg13: memref<1x1xf32, #tpu.memory_space<smem>>, %arg14: memref<2x18x288xf32, #tpu.memory_space<vmem>>) attributes {dimension_semantics = [], scalar_prefetch = 0 : i64, scratch_operands = 1 : i64, tpu.core_type = #tpu.core_type<tc>} {
    %c0 = arith.constant 0 : index
    %c0_0 = arith.constant 0 : index
    %0 = vector.load %arg0[%c0, %c0_0] : memref<32x256xf32, #tpu.memory_space<vmem>>, vector<32x256xf32>
    %c0_1 = arith.constant 0 : index
    %c0_2 = arith.constant 0 : index
    %1 = vector.load %arg1[%c0_1, %c0_2] : memref<256x256xf32, #tpu.memory_space<vmem>>, vector<256x256xf32>
    %cst = arith.constant dense<0.000000e+00> : vector<32x256xf32>
    %2 = tpu.matmul %0, %1, %cst {dimension_numbers = #tpu.dot_dimension_numbers<[1], [0], [0], [1], [0, 0, 1, 1], [], []>} : vector<32x256xf32>, vector<256x256xf32>, vector<32x256xf32> -> vector<32x256xf32>
    %c0_3 = arith.constant 0 : index
    %c0_4 = arith.constant 0 : index
    %3 = vector.load %arg2[%c0_3, %c0_4] : memref<32x32xf32, #tpu.memory_space<vmem>>, vector<32x32xf32>
    %cst_5 = arith.constant dense<0.000000e+00> : vector<32x256xf32>
    %4 = tpu.matmul %3, %2, %cst_5 {dimension_numbers = #tpu.dot_dimension_numbers<[1], [0], [0], [1], [0, 0, 1, 1], [], []>} : vector<32x32xf32>, vector<32x256xf32>, vector<32x256xf32> -> vector<32x256xf32>
    %cst_6 = arith.constant 0.000000e+00 : f32
    %5 = vector.broadcast %cst_6 : f32 to vector<2x1x288xf32>
    %c0_7 = arith.constant 0 : index
    %c0_8 = arith.constant 0 : index
    %c0_9 = arith.constant 0 : index
    %6 = vector.load %arg14[%c0_7, %c0_8, %c0_9] : memref<2x18x288xf32, #tpu.memory_space<vmem>>, vector<2x1x288xf32>
    tpu.vector_store %arg14[%c0_7, %c0_8, %c0_9], %5 {strides = array<i32>} : memref<2x18x288xf32, #tpu.memory_space<vmem>>, vector<2x1x288xf32>,
    %cst_10 = arith.constant 0.000000e+00 : f32
    %7 = vector.broadcast %cst_10 : f32 to vector<2x1x288xf32>
    %c0_11 = arith.constant 0 : index
    %c17 = arith.constant 17 : index
    %c0_12 = arith.constant 0 : index
    %8 = vector.load %arg14[%c0_11, %c17, %c0_12] : memref<2x18x288xf32, #tpu.memory_space<vmem>>, vector<2x1x288xf32>
    tpu.vector_store %arg14[%c0_11, %c17, %c0_12], %7 {strides = array<i32>} : memref<2x18x288xf32, #tpu.memory_space<vmem>>, vector<2x1x288xf32>,
    %cst_13 = arith.constant 0.000000e+00 : f32
    %9 = vector.broadcast %cst_13 : f32 to vector<2x16x16xf32>
    %c0_14 = arith.constant 0 : index
    %c1 = arith.constant 1 : index
    %c0_15 = arith.constant 0 : index
    %10 = vector.load %arg14[%c0_14, %c1, %c0_15] : memref<2x18x288xf32, #tpu.memory_space<vmem>>, vector<2x16x16xf32>
    tpu.vector_store %arg14[%c0_14, %c1, %c0_15], %9 {strides = array<i32>} : memref<2x18x288xf32, #tpu.memory_space<vmem>>, vector<2x16x16xf32>,
    %cst_16 = arith.constant 0.000000e+00 : f32
    %11 = vector.broadcast %cst_16 : f32 to vector<2x16x16xf32>
    %c0_17 = arith.constant 0 : index
    %c1_18 = arith.constant 1 : index
    %c272 = arith.constant 272 : index
    %12 = vector.load %arg14[%c0_17, %c1_18, %c272] : memref<2x18x288xf32, #tpu.memory_space<vmem>>, vector<2x16x16xf32>
    tpu.vector_store %arg14[%c0_17, %c1_18, %c272], %11 {strides = array<i32>} : memref<2x18x288xf32, #tpu.memory_space<vmem>>, vector<2x16x16xf32>,
    %13 = vector.shape_cast %4 : vector<32x256xf32> to vector<2x16x256xf32>
    %c0_19 = arith.constant 0 : index
    %c1_20 = arith.constant 1 : index
    %c16 = arith.constant 16 : index
    %14 = vector.load %arg14[%c0_19, %c1_20, %c16] : memref<2x18x288xf32, #tpu.memory_space<vmem>>, vector<2x16x256xf32>
    tpu.vector_store %arg14[%c0_19, %c1_20, %c16], %13 {strides = array<i32>} : memref<2x18x288xf32, #tpu.memory_space<vmem>>, vector<2x16x256xf32>,
    %c0_21 = arith.constant 0 : index
    %c0_22 = arith.constant 0 : index
    %c0_23 = arith.constant 0 : index
    %15 = vector.load %arg14[%c0_21, %c0_22, %c0_23] : memref<2x18x288xf32, #tpu.memory_space<vmem>>, vector<2x16x288xf32>
    %16 = vector.shape_cast %15 : vector<2x16x288xf32> to vector<32x288xf32>
    %c0_24 = arith.constant 0 : index
    %c0_25 = arith.constant 0 : index
    %c0_26 = arith.constant 0 : index
    %17 = vector.load %arg3[%c0_24, %c0_25, %c0_26] : memref<3x288x256xf32, #tpu.memory_space<vmem>>, vector<1x288x256xf32>
    %18 = vector.shape_cast %17 : vector<1x288x256xf32> to vector<288x256xf32>
    %cst_27 = arith.constant dense<0.000000e+00> : vector<32x256xf32>
    %19 = tpu.matmul %16, %18, %cst_27 {dimension_numbers = #tpu.dot_dimension_numbers<[1], [0], [0], [1], [0, 0, 1, 1], [], []>} : vector<32x288xf32>, vector<288x256xf32>, vector<32x256xf32> -> vector<32x256xf32>
    %c0_28 = arith.constant 0 : index
    %c1_29 = arith.constant 1 : index
    %c0_30 = arith.constant 0 : index
    %20 = vector.load %arg14[%c0_28, %c1_29, %c0_30] : memref<2x18x288xf32, #tpu.memory_space<vmem>>, vector<2x16x288xf32>
    %21 = vector.shape_cast %20 : vector<2x16x288xf32> to vector<32x288xf32>
    %c1_31 = arith.constant 1 : index
    %c0_32 = arith.constant 0 : index
    %c0_33 = arith.constant 0 : index
    %22 = vector.load %arg3[%c1_31, %c0_32, %c0_33] : memref<3x288x256xf32, #tpu.memory_space<vmem>>, vector<1x288x256xf32>
    %23 = vector.shape_cast %22 : vector<1x288x256xf32> to vector<288x256xf32>
    %cst_34 = arith.constant dense<0.000000e+00> : vector<32x256xf32>
    %24 = tpu.matmul %21, %23, %cst_34 {dimension_numbers = #tpu.dot_dimension_numbers<[1], [0], [0], [1], [0, 0, 1, 1], [], []>} : vector<32x288xf32>, vector<288x256xf32>, vector<32x256xf32> -> vector<32x256xf32>
    %25 = arith.addf %19, %24 : vector<32x256xf32>
    %c0_35 = arith.constant 0 : index
    %c2 = arith.constant 2 : index
    %c0_36 = arith.constant 0 : index
    %26 = vector.load %arg14[%c0_35, %c2, %c0_36] : memref<2x18x288xf32, #tpu.memory_space<vmem>>, vector<2x16x288xf32>
    %27 = vector.shape_cast %26 : vector<2x16x288xf32> to vector<32x288xf32>
    %c2_37 = arith.constant 2 : index
    %c0_38 = arith.constant 0 : index
    %c0_39 = arith.constant 0 : index
    %28 = vector.load %arg3[%c2_37, %c0_38, %c0_39] : memref<3x288x256xf32, #tpu.memory_space<vmem>>, vector<1x288x256xf32>
    %29 = vector.shape_cast %28 : vector<1x288x256xf32> to vector<288x256xf32>
    %cst_40 = arith.constant dense<0.000000e+00> : vector<32x256xf32>
    %30 = tpu.matmul %27, %29, %cst_40 {dimension_numbers = #tpu.dot_dimension_numbers<[1], [0], [0], [1], [0, 0, 1, 1], [], []>} : vector<32x288xf32>, vector<288x256xf32>, vector<32x256xf32> -> vector<32x256xf32>
    %31 = arith.addf %25, %30 : vector<32x256xf32>
    %cst_41 = arith.constant dense<0.000000e+00> : vector<256xf32>
    %32 = vector.multi_reduction <add>, %31, %cst_41 [0] : vector<32x256xf32> to vector<256xf32>
    %33 = vector.shape_cast %32 : vector<256xf32> to vector<1x256xf32>
    %34 = arith.mulf %31, %31 : vector<32x256xf32>
    %cst_42 = arith.constant dense<0.000000e+00> : vector<256xf32>
    %35 = vector.multi_reduction <add>, %34, %cst_42 [0] : vector<32x256xf32> to vector<256xf32>
    %36 = vector.shape_cast %35 : vector<256xf32> to vector<1x256xf32>
    %c0_43 = arith.constant 0 : index
    %c0_44 = arith.constant 0 : index
    %37 = vector.load %arg9[%c0_43, %c0_44] : memref<256x256xf32, #tpu.memory_space<vmem>>, vector<256x256xf32>
    %cst_45 = arith.constant dense<0.000000e+00> : vector<1x256xf32>
    %38 = tpu.matmul %33, %37, %cst_45 {dimension_numbers = #tpu.dot_dimension_numbers<[1], [0], [0], [1], [0, 0, 1, 1], [], []>} : vector<1x256xf32>, vector<256x256xf32>, vector<1x256xf32> -> vector<1x256xf32>
    %c0_46 = arith.constant 0 : index
    %c0_47 = arith.constant 0 : index
    %39 = vector.load %arg9[%c0_46, %c0_47] : memref<256x256xf32, #tpu.memory_space<vmem>>, vector<256x256xf32>
    %cst_48 = arith.constant dense<0.000000e+00> : vector<1x256xf32>
    %40 = tpu.matmul %36, %39, %cst_48 {dimension_numbers = #tpu.dot_dimension_numbers<[1], [0], [0], [1], [0, 0, 1, 1], [], []>} : vector<1x256xf32>, vector<256x256xf32>, vector<1x256xf32> -> vector<1x256xf32>
    %41 = arith.mulf %38, %38 : vector<1x256xf32>
    %42 = arith.subf %40, %41 : vector<1x256xf32>
    %cst_49 = arith.constant 0.000000e+00 : f32
    %43 = vector.broadcast %cst_49 : f32 to vector<1x256xf32>
    %44 = arith.maximumf %42, %43 : vector<1x256xf32>
    %45 = vector.broadcast %38 : vector<1x256xf32> to vector<32x256xf32>
    %46 = arith.subf %31, %45 : vector<32x256xf32>
    %cst_50 = arith.constant 9.99999974E-6 : f32
    %47 = vector.broadcast %cst_50 : f32 to vector<1x256xf32>
    %48 = arith.addf %44, %47 : vector<1x256xf32>
    %49 = math.rsqrt %48 : vector<1x256xf32>
    %50 = vector.broadcast %49 : vector<1x256xf32> to vector<32x256xf32>
    %51 = arith.mulf %46, %50 : vector<32x256xf32>
    %c0_51 = arith.constant 0 : index
    %c0_52 = arith.constant 0 : index
    %52 = vector.load %arg4[%c0_51, %c0_52] : memref<1x256xf32, #tpu.memory_space<vmem>>, vector<1x256xf32>
    %53 = vector.broadcast %52 : vector<1x256xf32> to vector<32x256xf32>
    %54 = arith.mulf %51, %53 : vector<32x256xf32>
    %c0_53 = arith.constant 0 : index
    %c0_54 = arith.constant 0 : index
    %55 = vector.load %arg5[%c0_53, %c0_54] : memref<1x256xf32, #tpu.memory_space<vmem>>, vector<1x256xf32>
    %56 = vector.broadcast %55 : vector<1x256xf32> to vector<32x256xf32>
    %57 = arith.addf %54, %56 : vector<32x256xf32>
    %cst_55 = arith.constant 0.000000e+00 : f32
    %58 = vector.broadcast %cst_55 : f32 to vector<32x256xf32>
    %59 = arith.maximumf %57, %58 : vector<32x256xf32>
    %60 = vector.shape_cast %59 : vector<32x256xf32> to vector<2x16x256xf32>
    %c0_56 = arith.constant 0 : index
    %c1_57 = arith.constant 1 : index
    %c16_58 = arith.constant 16 : index
    %61 = vector.load %arg14[%c0_56, %c1_57, %c16_58] : memref<2x18x288xf32, #tpu.memory_space<vmem>>, vector<2x16x256xf32>
    tpu.vector_store %arg14[%c0_56, %c1_57, %c16_58], %60 {strides = array<i32>} : memref<2x18x288xf32, #tpu.memory_space<vmem>>, vector<2x16x256xf32>,
    %c0_59 = arith.constant 0 : index
    %c0_60 = arith.constant 0 : index
    %c0_61 = arith.constant 0 : index
    %62 = vector.load %arg14[%c0_59, %c0_60, %c0_61] : memref<2x18x288xf32, #tpu.memory_space<vmem>>, vector<2x16x288xf32>
    %63 = vector.shape_cast %62 : vector<2x16x288xf32> to vector<32x288xf32>
    %c0_62 = arith.constant 0 : index
    %c0_63 = arith.constant 0 : index
    %c0_64 = arith.constant 0 : index
    %64 = vector.load %arg6[%c0_62, %c0_63, %c0_64] : memref<3x288x256xf32, #tpu.memory_space<vmem>>, vector<1x288x256xf32>
    %65 = vector.shape_cast %64 : vector<1x288x256xf32> to vector<288x256xf32>
    %cst_65 = arith.constant dense<0.000000e+00> : vector<32x256xf32>
    %66 = tpu.matmul %63, %65, %cst_65 {dimension_numbers = #tpu.dot_dimension_numbers<[1], [0], [0], [1], [0, 0, 1, 1], [], []>} : vector<32x288xf32>, vector<288x256xf32>, vector<32x256xf32> -> vector<32x256xf32>
    %c0_66 = arith.constant 0 : index
    %c1_67 = arith.constant 1 : index
    %c0_68 = arith.constant 0 : index
    %67 = vector.load %arg14[%c0_66, %c1_67, %c0_68] : memref<2x18x288xf32, #tpu.memory_space<vmem>>, vector<2x16x288xf32>
    %68 = vector.shape_cast %67 : vector<2x16x288xf32> to vector<32x288xf32>
    %c1_69 = arith.constant 1 : index
    %c0_70 = arith.constant 0 : index
    %c0_71 = arith.constant 0 : index
    %69 = vector.load %arg6[%c1_69, %c0_70, %c0_71] : memref<3x288x256xf32, #tpu.memory_space<vmem>>, vector<1x288x256xf32>
    %70 = vector.shape_cast %69 : vector<1x288x256xf32> to vector<288x256xf32>
    %cst_72 = arith.constant dense<0.000000e+00> : vector<32x256xf32>
    %71 = tpu.matmul %68, %70, %cst_72 {dimension_numbers = #tpu.dot_dimension_numbers<[1], [0], [0], [1], [0, 0, 1, 1], [], []>} : vector<32x288xf32>, vector<288x256xf32>, vector<32x256xf32> -> vector<32x256xf32>
    %72 = arith.addf %66, %71 : vector<32x256xf32>
    %c0_73 = arith.constant 0 : index
    %c2_74 = arith.constant 2 : index
    %c0_75 = arith.constant 0 : index
    %73 = vector.load %arg14[%c0_73, %c2_74, %c0_75] : memref<2x18x288xf32, #tpu.memory_space<vmem>>, vector<2x16x288xf32>
    %74 = vector.shape_cast %73 : vector<2x16x288xf32> to vector<32x288xf32>
    %c2_76 = arith.constant 2 : index
    %c0_77 = arith.constant 0 : index
    %c0_78 = arith.constant 0 : index
    %75 = vector.load %arg6[%c2_76, %c0_77, %c0_78] : memref<3x288x256xf32, #tpu.memory_space<vmem>>, vector<1x288x256xf32>
    %76 = vector.shape_cast %75 : vector<1x288x256xf32> to vector<288x256xf32>
    %cst_79 = arith.constant dense<0.000000e+00> : vector<32x256xf32>
    %77 = tpu.matmul %74, %76, %cst_79 {dimension_numbers = #tpu.dot_dimension_numbers<[1], [0], [0], [1], [0, 0, 1, 1], [], []>} : vector<32x288xf32>, vector<288x256xf32>, vector<32x256xf32> -> vector<32x256xf32>
    %78 = arith.addf %72, %77 : vector<32x256xf32>
    %cst_80 = arith.constant dense<0.000000e+00> : vector<256xf32>
    %79 = vector.multi_reduction <add>, %78, %cst_80 [0] : vector<32x256xf32> to vector<256xf32>
    %80 = vector.shape_cast %79 : vector<256xf32> to vector<1x256xf32>
    %81 = arith.mulf %78, %78 : vector<32x256xf32>
    %cst_81 = arith.constant dense<0.000000e+00> : vector<256xf32>
    %82 = vector.multi_reduction <add>, %81, %cst_81 [0] : vector<32x256xf32> to vector<256xf32>
    %83 = vector.shape_cast %82 : vector<256xf32> to vector<1x256xf32>
    %c0_82 = arith.constant 0 : index
    %c0_83 = arith.constant 0 : index
    %84 = vector.load %arg9[%c0_82, %c0_83] : memref<256x256xf32, #tpu.memory_space<vmem>>, vector<256x256xf32>
    %cst_84 = arith.constant dense<0.000000e+00> : vector<1x256xf32>
    %85 = tpu.matmul %80, %84, %cst_84 {dimension_numbers = #tpu.dot_dimension_numbers<[1], [0], [0], [1], [0, 0, 1, 1], [], []>} : vector<1x256xf32>, vector<256x256xf32>, vector<1x256xf32> -> vector<1x256xf32>
    %c0_85 = arith.constant 0 : index
    %c0_86 = arith.constant 0 : index
    %86 = vector.load %arg9[%c0_85, %c0_86] : memref<256x256xf32, #tpu.memory_space<vmem>>, vector<256x256xf32>
    %cst_87 = arith.constant dense<0.000000e+00> : vector<1x256xf32>
    %87 = tpu.matmul %83, %86, %cst_87 {dimension_numbers = #tpu.dot_dimension_numbers<[1], [0], [0], [1], [0, 0, 1, 1], [], []>} : vector<1x256xf32>, vector<256x256xf32>, vector<1x256xf32> -> vector<1x256xf32>
    %88 = arith.mulf %85, %85 : vector<1x256xf32>
    %89 = arith.subf %87, %88 : vector<1x256xf32>
    %cst_88 = arith.constant 0.000000e+00 : f32
    %90 = vector.broadcast %cst_88 : f32 to vector<1x256xf32>
    %91 = arith.maximumf %89, %90 : vector<1x256xf32>
    %92 = vector.broadcast %85 : vector<1x256xf32> to vector<32x256xf32>
    %93 = arith.subf %78, %92 : vector<32x256xf32>
    %cst_89 = arith.constant 9.99999974E-6 : f32
    %94 = vector.broadcast %cst_89 : f32 to vector<1x256xf32>
    %95 = arith.addf %91, %94 : vector<1x256xf32>
    %96 = math.rsqrt %95 : vector<1x256xf32>
    %97 = vector.broadcast %96 : vector<1x256xf32> to vector<32x256xf32>
    %98 = arith.mulf %93, %97 : vector<32x256xf32>
    %c0_90 = arith.constant 0 : index
    %c0_91 = arith.constant 0 : index
    %99 = vector.load %arg7[%c0_90, %c0_91] : memref<1x256xf32, #tpu.memory_space<vmem>>, vector<1x256xf32>
    %100 = vector.broadcast %99 : vector<1x256xf32> to vector<32x256xf32>
    %101 = arith.mulf %98, %100 : vector<32x256xf32>
    %c0_92 = arith.constant 0 : index
    %c0_93 = arith.constant 0 : index
    %102 = vector.load %arg8[%c0_92, %c0_93] : memref<1x256xf32, #tpu.memory_space<vmem>>, vector<1x256xf32>
    %103 = vector.broadcast %102 : vector<1x256xf32> to vector<32x256xf32>
    %104 = arith.addf %101, %103 : vector<32x256xf32>
    %cst_94 = arith.constant 0.000000e+00 : f32
    %105 = vector.broadcast %cst_94 : f32 to vector<32x256xf32>
    %106 = arith.maximumf %104, %105 : vector<32x256xf32>
    %c0_95 = arith.constant 0 : index
    %c0_96 = arith.constant 0 : index
    %107 = vector.load %arg10[%c0_95, %c0_96] : memref<256x16xf32, #tpu.memory_space<vmem>>, vector<256x16xf32>
    %cst_97 = arith.constant dense<0.000000e+00> : vector<32x16xf32>
    %108 = tpu.matmul %106, %107, %cst_97 {dimension_numbers = #tpu.dot_dimension_numbers<[1], [0], [0], [1], [0, 0, 1, 1], [], []>} : vector<32x256xf32>, vector<256x16xf32>, vector<32x16xf32> -> vector<32x16xf32>
    %c0_98 = arith.constant 0 : index
    %c0_99 = arith.constant 0 : index
    %109 = memref.load %arg11[%c0_98, %c0_99] : memref<1x1xf32, #tpu.memory_space<smem>>
    %110 = vector.broadcast %109 : f32 to vector<32x16xf32>
    %111 = arith.addf %108, %110 : vector<32x16xf32>
    %c0_100 = arith.constant 0 : index
    %c0_101 = arith.constant 0 : index
    %112 = vector.load %arg12[%c0_100, %c0_101] : memref<32x16xf32, #tpu.memory_space<vmem>>, vector<32x16xf32>
    %cst_102 = arith.constant 0.000000e+00 : f32
    %113 = vector.broadcast %cst_102 : f32 to vector<32x16xf32>
    %114 = arith.maximumf %111, %113 : vector<32x16xf32>
    %115 = arith.mulf %111, %112 : vector<32x16xf32>
    %116 = arith.subf %114, %115 : vector<32x16xf32>
    %117 = math.absf %111 : vector<32x16xf32>
    %cst_103 = arith.constant 0.000000e+00 : f32
    %118 = vector.broadcast %cst_103 : f32 to vector<32x16xf32>
    %119 = arith.subf %118, %117 : vector<32x16xf32>
    %120 = math.exp %119 : vector<32x16xf32>
    %cst_104 = arith.constant 1.000000e+00 : f32
    %121 = vector.broadcast %cst_104 : f32 to vector<32x16xf32>
    %122 = arith.addf %121, %120 : vector<32x16xf32>
    %123 = math.log %122 : vector<32x16xf32>
    %124 = arith.addf %116, %123 : vector<32x16xf32>
    %cst_105 = arith.constant 0.000000e+00 : f32
    %125 = vector.broadcast %cst_105 : f32 to vector<32x16xf32>
    %126 = arith.subf %125, %111 : vector<32x16xf32>
    %127 = math.exp %126 : vector<32x16xf32>
    %cst_106 = arith.constant 1.000000e+00 : f32
    %128 = vector.broadcast %cst_106 : f32 to vector<32x16xf32>
    %129 = arith.addf %128, %127 : vector<32x16xf32>
    %cst_107 = arith.constant 1.000000e+00 : f32
    %130 = vector.broadcast %cst_107 : f32 to vector<32x16xf32>
    %131 = arith.divf %130, %129 : vector<32x16xf32>
    %132 = arith.mulf %131, %112 : vector<32x16xf32>
    %cst_108 = arith.constant 1.000000e+00 : f32
    %133 = vector.broadcast %cst_108 : f32 to vector<32x16xf32>
    %134 = arith.subf %133, %131 : vector<32x16xf32>
    %cst_109 = arith.constant 1.000000e+00 : f32
    %135 = vector.broadcast %cst_109 : f32 to vector<32x16xf32>
    %136 = arith.subf %135, %112 : vector<32x16xf32>
    %137 = arith.mulf %134, %136 : vector<32x16xf32>
    %138 = arith.addf %132, %137 : vector<32x16xf32>
    %cst_110 = arith.constant 1.000000e+00 : f32
    %139 = vector.broadcast %cst_110 : f32 to vector<32x16xf32>
    %140 = arith.subf %139, %138 : vector<32x16xf32>
    %141 = arith.mulf %124, %140 : vector<32x16xf32>
    %cst_111 = arith.constant 1.000000e+00 : f32
    %142 = vector.broadcast %cst_111 : f32 to vector<32x16xf32>
    %143 = arith.subf %142, %138 : vector<32x16xf32>
    %144 = arith.mulf %141, %143 : vector<32x16xf32>
    %145 = vector.shape_cast %144 : vector<32x16xf32> to vector<1x32x16xf32>
    %cst_112 = arith.constant dense<0.000000e+00> : vector<1xf32>
    %146 = vector.multi_reduction <add>, %145, %cst_112 [1, 2] : vector<1x32x16xf32> to vector<1xf32>
    %147 = vector.shape_cast %146 : vector<1xf32> to vector<1x1x1xf32>
    %148 = vector.extract %147[0, 0, 0] : f32 from vector<1x1x1xf32>
    %cst_113 = arith.constant 9.765625E-4 : f32
    %149 = arith.mulf %cst_113, %148 : f32
    %c0_114 = arith.constant 0 : index
    %c0_115 = arith.constant 0 : index
    %150 = memref.load %arg13[%c0_114, %c0_115] : memref<1x1xf32, #tpu.memory_space<smem>>
    memref.store %149, %arg13[%c0_114, %c0_115] : memref<1x1xf32, #tpu.memory_space<smem>>
    return
  }
}

</mosaic_0001>

<bundles_post_ra>
// kernel: tpu_custom_call.1
= control target key start
LH: loop header
LB: loop body
LE: loop exit
PB: predicated region body
PF: predicated region fallthrough
CT: control target
= control target key end

     0   :  { %19 = vsyncpa [#allocation5], 0  ;;  %s5534_s0 = inlined_call_operand.vmem [shape: f32[32,256], index: 0, kind: input, shape index: {}]   ;;  %s5535_s1 = inlined_call_operand.hbm [shape: f32[256,256], index: 1, kind: input, shape index: {}]   ;;  %s5536_s2 = inlined_call_operand.vmem [shape: f32[32,32], index: 2, kind: input, shape index: {}]   ;;  %s5537_s3 = inlined_call_operand.hbm [shape: f32[3,288,256], index: 3, kind: input, shape index: {}]   ;;  %s5538_s4 = inlined_call_operand.vmem [shape: f32[1,256], index: 4, kind: input, shape index: {}]   ;;  %s5539_s5 = inlined_call_operand.vmem [shape: f32[1,256], index: 5, kind: input, shape index: {}]   ;;  %s5540_s6 = inlined_call_operand.hbm [shape: f32[3,288,256], index: 6, kind: input, shape index: {}]   ;;  %s5541_s7 = inlined_call_operand.vmem [shape: f32[1,256], index: 7, kind: input, shape index: {}]   ;;  %s5542_s8 = inlined_call_operand.vmem [shape: f32[1,256], index: 8, kind: input, shape index: {}]   ;;  %s5543_s9 = inlined_call_operand.hbm [shape: f32[256,256], index: 9, kind: input, shape index: {}]   ;;  %s5544_s10 = inlined_call_operand.vmem [shape: f32[256,16], index: 10, kind: input, shape index: {}]   ;;  %s5545_s11 = inlined_call_operand.<no memory space> [shape: f32[1,1], index: 11, kind: input, shape index: {}]   ;;  %s5546_s12 = inlined_call_operand.vmem [shape: f32[32,16], index: 12, kind: input, shape index: {}]   ;;  %s5547_s13 = inlined_call_operand.hbm [shape: f32[1,1], index: 13, kind: output, shape index: {}]  }
   0x1   :  { %20 = vsyncpa [#allocation8], 0 }
   0x2   :  { %21 = vsyncpa [#allocation11], 0 }
   0x3   :  { %22 = vsyncpa [#allocation6], 0  ;;  %s4473_s25 = smov [#allocation7]   ;;  %s4474_s27 = smov [#allocation4]  }
   0x4   :  { %s44_s26 = sshll.u32 %s4473_s25, 4  ;;  %s30_s28 = sshll.u32 %s4474_s27, 4  ;;  %s45_s26 = int_to_ptr.vmem [resolvable:$true] %s44_s26  ;;  %s4551_s28 = int_to_ptr.vmem [resolvable:$true] %s30_s28 }
   0x5   :  { %s4367_s14 = scalar_lea.hbm %s5537_s3, 27648 }
   0x6   :  { %p4368_p0 = scmp.ne.s32.totalorder %s5537_s3, %s4367_s14  ;;  %p4371_p1 = scmp.lt.u32.totalorder %s4367_s14, %s5537_s3 }
   0x8   :  { %p4373_p2 = pnand %p4371_p1, %p4368_p0 }
   0xa   :  { %4376 = shalt.err (!%p4373_p2)
}
   0xb   :  { %s4377_s19 = scalar_lea.vmem %s45_s26, 27648  ;;  %p4382_p4 = scmp.lt.s32.totalorder %s45_s26, %s45_s26 }
   0xc   :  { %p4378_p3 = scmp.ne.s32.totalorder %s45_s26, %s4377_s19  ;;  %p4383_p5 = scmp.lt.s32.totalorder %s4377_s19, %s4377_s19 }
   0xe   :  { %p4384_p6 = por %p4383_p5, %p4382_p4 }
  0x10   :  { %p4385_p7 = pnand %p4384_p6, %p4378_p3 }
  0x12   :  { %4388 = shalt.err (!%p4385_p7)
}
  0x13   :  { %s4475_s20 = smov 256   ;;  %s4476_s21 = smov 16  }
  0x14   :  { %50 = dma.hbm_to_vmem [thread:$0]  %s5537_s3, 27648, %s45_s26, [#allocation8], %s4475_s20, %s4475_s20, %s4476_s21  }
  0x15   :  { %s4389_s27 = scalar_lea.hbm %s5535_s1, 8192 }
  0x16   :  { %p4390_p8 = scmp.ne.s32.totalorder %s5535_s1, %s4389_s27  ;;  %p4393_p9 = scmp.lt.u32.totalorder %s4389_s27, %s5535_s1 }
  0x18   :  { %p4395_p10 = pnand %p4393_p9, %p4390_p8 }
  0x1a   :  { %4398 = shalt.err (!%p4395_p10)
}
  0x1b   :  { %s4399_s16 = scalar_lea.vmem %s4551_s28, 8192  ;;  %p4404_p12 = scmp.lt.s32.totalorder %s4551_s28, %s4551_s28 }
  0x1c   :  { %p4400_p11 = scmp.ne.s32.totalorder %s4551_s28, %s4399_s16  ;;  %p4405_p13 = scmp.lt.s32.totalorder %s4399_s16, %s4399_s16 }
  0x1e   :  { %p4406_p0 = por %p4405_p13, %p4404_p12 }
  0x20   :  { %p4407_p1 = pnand %p4406_p0, %p4400_p11 }
  0x22   :  { %4410 = shalt.err (!%p4407_p1)
}
  0x23   :  { %36 = dma.hbm_to_vmem [thread:$0]  %s5535_s1, 8192, %s4551_s28, [#allocation5], %s4475_s20, %s4475_s20, %s4476_s21  }
  0x24   :  { %s4477_s17 = smov [#allocation9]   ;;  %s4478_s19 = smov [#allocation10]  }
  0x25   :  { %s60_s18 = sshll.u32 %s4477_s17, 4  ;;  %s76_s22 = sshll.u32 %s4478_s19, 4  ;;  %s61_s18 = int_to_ptr.vmem [resolvable:$true] %s60_s18  ;;  %s4588_s22 = int_to_ptr.vmem [resolvable:$true] %s76_s22 }
  0x26   :  { %s4411_s25 = scalar_lea.hbm %s5540_s6, 27648 }
  0x27   :  { %p4412_p2 = scmp.ne.s32.totalorder %s5540_s6, %s4411_s25  ;;  %p4415_p3 = scmp.lt.u32.totalorder %s4411_s25, %s5540_s6 }
  0x29   :  { %p4417_p4 = pnand %p4415_p3, %p4412_p2 }
  0x2b   :  { %4420 = shalt.err (!%p4417_p4)
}
  0x2c   :  { %s4421_s1 = scalar_lea.vmem %s61_s18, 27648  ;;  %p4426_p6 = scmp.lt.s32.totalorder %s61_s18, %s61_s18 }
  0x2d   :  { %p4422_p5 = scmp.ne.s32.totalorder %s61_s18, %s4421_s1  ;;  %p4427_p7 = scmp.lt.s32.totalorder %s4421_s1, %s4421_s1 }
  0x2f   :  { %p4428_p8 = por %p4427_p7, %p4426_p6 }
  0x31   :  { %p4429_p9 = pnand %p4428_p8, %p4422_p5 }
  0x33   :  { %4432 = shalt.err (!%p4429_p9)
}
  0x34   :  { %66 = dma.hbm_to_vmem [thread:$0]  %s5540_s6, 27648, %s61_s18, [#allocation8], %s4475_s20, %s4475_s20, %s4476_s21  }
  0x35   :  { %s4433_s26 = scalar_lea.hbm %s5543_s9, 8192 }
  0x36   :  { %p4434_p10 = scmp.ne.s32.totalorder %s5543_s9, %s4433_s26  ;;  %p4437_p11 = scmp.lt.u32.totalorder %s4433_s26, %s5543_s9 }
  0x38   :  { %p4439_p12 = pnand %p4437_p11, %p4434_p10 }
  0x3a   :  { %4442 = shalt.err (!%p4439_p12)
}
  0x3b   :  { %s4443_s25 = scalar_lea.vmem %s4588_s22, 8192  ;;  %p4448_p0 = scmp.lt.s32.totalorder %s4588_s22, %s4588_s22 }
  0x3c   :  { %p4444_p13 = scmp.ne.s32.totalorder %s4588_s22, %s4443_s25  ;;  %p4449_p1 = scmp.lt.s32.totalorder %s4443_s25, %s4443_s25 }
  0x3e   :  { %p4450_p2 = por %p4449_p1, %p4448_p0 }
  0x40   :  { %p4451_p3 = pnand %p4450_p2, %p4444_p13 }
  0x42   :  { %4454 = shalt.err (!%p4451_p3)
}
  0x43   :  { %82 = dma.hbm_to_vmem [thread:$0]  %s5543_s9, 8192, %s4588_s22, [#allocation11], %s4475_s20, %s4475_s20, %s4476_s21  }
  0x44   :  { %4465 = dma.done.wait [#allocation5], 8192  }
  0x45   :  { %4466 = vsyncadd [#allocation5], 4294959104 }
  0x46   :  { %4467 = dma.done.wait [#allocation8], 55296  }
  0x47   :  { %4468 = vsyncadd [#allocation8], 4294912000 }
  0x48   :  { %4469 = dma.done.wait [#allocation11], 8192  }
  0x49   :  { %4470 = vsyncadd [#allocation11], 4294959104  ;;  %v110_v0 = vld [vmem:[#allocation4 + $0x8] sm:$0xff]  ;;  %v112_v1 = vld [vmem:[#allocation4 + $0x18] sm:$0xff]  ;;  %vm266_vm0 = vcmask 261120   ;;  %vm383_vm1 = vcmask 130049  }
  0x4a   :  { %v109_v2 = vld [vmem:[#allocation4] sm:$0xff]  ;;  %v3445_v3 = vpack.c.bf16 %v112_v1, %v110_v0  ;;  %v111_v4 = vld [vmem:[#allocation4 + $0x10] sm:$0xff]  ;;  %v114_v5 = vld [vmem:[#allocation4 + $0x28] sm:$0xff]  ;;  %vm385_vm2 = vcmask 130048   ;;  %vm392_vm3 = vcmask 261249   ;;  %vm387_vm5 = vcmask 122880  }
  0x4b   :  { %v116_v6 = vld [vmem:[#allocation4 + $0x38] sm:$0xff]  ;;  %v3447_v7 = vpack.c.bf16 %v111_v4, %v109_v2  ;;  %v113_v9 = vld [vmem:[#allocation4 + $0x20] sm:$0xff]  ;;  %v115_v10 = vld [vmem:[#allocation4 + $0x30] sm:$0xff]  ;;  %vm396_vm6 = vcmask 254080   ;;  %vm394_vm7 = vcmask 261248   ;;  %vm409_vm8 = vcmask 1040384  }
  0x4c   :  { %v3449_v8 = vpack.c.bf16 %v116_v6, %v114_v5  ;;  %v118_v11 = vld [vmem:[#allocation4 + $0x48] sm:$0xff]  ;;  %3446 = vmatprep.subr.bf16.mxu0 %v3445_v3  ;;  %v120_v12 = vld [vmem:[#allocation4 + $0x58] sm:$0xff]  ;;  %v3451_v13 = vpack.c.bf16 %v115_v10, %v113_v9  ;;  %v117_v15 = vld [vmem:[#allocation4 + $0x40] sm:$0xff]  ;;  %vm470_vm9 = vcmask 1047681   ;;  %vm474_vm10 = vcmask 1047680  }
  0x4d   :  { %3448 = vmatpush1.bf16.msra.mxu0 %v3447_v7  ;;  %v3453_v14 = vpack.c.bf16 %v120_v12, %v118_v11  ;;  %v119_v16 = vld [vmem:[#allocation4 + $0x50] sm:$0xff]  ;;  %v122_v17 = vld [vmem:[#allocation4 + $0x68] sm:$0xff]  ;;  %v124_v18 = vld [vmem:[#allocation4 + $0x78] sm:$0xff]  ;;  %vm478_vm11 = vcmask 1040512   ;;  %vm605_vm12 = vcmask 1046528   ;;  %vm1115_vm13 = vcmask 1045504  }
  0x4e   :  { %3450 = vmatprep.subr.bf16.mxu0 %v3449_v8  ;;  %v3455_v19 = vpack.c.bf16 %v119_v16, %v117_v15  ;;  %v3457_v20 = vpack.c.bf16 %v124_v18, %v122_v17  ;;  %v121_v21 = vld [vmem:[#allocation4 + $0x60] sm:$0xff]  ;;  %v123_v22 = vld [vmem:[#allocation4 + $0x70] sm:$0xff]  ;;  %v126_v23 = vld [vmem:[#allocation4 + $0x88] sm:$0xff] }
  0x4f   :  { %v128_v24 = vld [vmem:[#allocation4 + $0x98] sm:$0xff]  ;;  %v3459_v25 = vpack.c.bf16 %v123_v22, %v121_v21  ;;  %v125_v27 = vld [vmem:[#allocation4 + $0x80] sm:$0xff]  ;;  %v127_v28 = vld [vmem:[#allocation4 + $0x90] sm:$0xff] }
  0x50   :  { %v3461_v26 = vpack.c.bf16 %v128_v24, %v126_v23  ;;  %v130_v29 = vld [vmem:[#allocation4 + $0xa8] sm:$0xff]  ;;  %v132_v30 = vld [vmem:[#allocation4 + $0xb8] sm:$0xff]  ;;  %v3463_v31 = vpack.c.bf16 %v127_v28, %v125_v27  ;;  %v129_v33 = vld [vmem:[#allocation4 + $0xa0] sm:$0xff] }
  0x51   :  { %3452 = vmatpush1.bf16.msra.mxu0 %v3451_v13  ;;  %v3465_v32 = vpack.c.bf16 %v132_v30, %v130_v29  ;;  %v131_v34 = vld [vmem:[#allocation4 + $0xb0] sm:$0xff]  ;;  %v134_v35 = vld [vmem:[#allocation4 + $0xc8] sm:$0xff]  ;;  %v136_v36 = vld [vmem:[#allocation4 + $0xd8] sm:$0xff] }
  0x52   :  { %3454 = vmatprep.subr.bf16.mxu0 %v3453_v14  ;;  %v3467_v37 = vpack.c.bf16 %v131_v34, %v129_v33  ;;  %v3469_v38 = vpack.c.bf16 %v136_v36, %v134_v35  ;;  %v133_v39 = vld [vmem:[#allocation4 + $0xc0] sm:$0xff]  ;;  %v135_v40 = vld [vmem:[#allocation4 + $0xd0] sm:$0xff]  ;;  %v102_v41 = vld [vmem:[%s5534_s0 + $0x8] sm:$0xff] }
  0x53   :  { %v138_v42 = vld [vmem:[#allocation4 + $0xe8] sm:$0xff]  ;;  %v140_v43 = vld [vmem:[#allocation4 + $0xf8] sm:$0xff]  ;;  %237 = vmatprep.mubr.f32.mxu0 %v102_v41  ;;  %v3471_v44 = vpack.c.bf16 %v135_v40, %v133_v39  ;;  %v137_v46 = vld [vmem:[#allocation4 + $0xe0] sm:$0xff]  ;;  %v5548_v40 = vmov 0.0  }
  0x54   :  { %v3473_v45 = vpack.c.bf16 %v140_v43, %v138_v42  ;;  %v139_v47 = vld [vmem:[#allocation4 + $0xf0] sm:$0xff]  ;;  %v142_v48 = vld [vmem:[#allocation4 + $0x108] sm:$0xff]  ;;  %v144_v49 = vld [vmem:[#allocation4 + $0x118] sm:$0xff]  ;;  %343 = vmatprep.mubr.f32.mxu1 %v5548_v40  ;;  %384 = vst.msk [vmem:[#allocation2] sm:$0xfe] %vm383_vm1, %v5548_v40 }
  0x55   :  { %3456 = vmatpush1.bf16.msra.mxu0 %v3455_v19  ;;  %v3475_v50 = vpack.c.bf16 %v139_v47, %v137_v46  ;;  %v3477_v51 = vpack.c.bf16 %v144_v49, %v142_v48  ;;  %v141_v52 = vld [vmem:[#allocation4 + $0x100] sm:$0xff]  ;;  %v143_v53 = vld [vmem:[#allocation4 + $0x110] sm:$0xff]  ;;  %v146_v54 = vld [vmem:[#allocation4 + $0x128] sm:$0xff]  ;;  %389 = vst.msk [vmem:[#allocation2 + $0x48] sm:$0xfe] %vm383_vm1, %v5548_v40 }
  0x56   :  { %3458 = vmatprep.subr.bf16.mxu0 %v3457_v20  ;;  %v148_v55 = vld [vmem:[#allocation4 + $0x138] sm:$0xff]  ;;  %v3479_v56 = vpack.c.bf16 %v143_v53, %v141_v52  ;;  %v145_v58 = vld [vmem:[#allocation4 + $0x120] sm:$0xff]  ;;  %v147_v59 = vld [vmem:[#allocation4 + $0x130] sm:$0xff]  ;;  %393 = vst.msk [vmem:[#allocation2 + $0x10] sm:$0xfe] %vm392_vm3, %v5548_v40 }
  0x57   :  { %v3481_v57 = vpack.c.bf16 %v148_v55, %v146_v54  ;;  %v150_v60 = vld [vmem:[#allocation4 + $0x148] sm:$0xff]  ;;  %v152_v61 = vld [vmem:[#allocation4 + $0x158] sm:$0xff]  ;;  %v3483_v62 = vpack.c.bf16 %v147_v59, %v145_v58  ;;  %v149_v0 = vld [vmem:[#allocation4 + $0x140] sm:$0xff]  ;;  %386 = vst.msk [vmem:[#allocation2 + $0x18] sm:$0xff] %vm385_vm2, %v5548_v40 }
  0x58   :  { %v3485_v63 = vpack.c.bf16 %v152_v61, %v150_v60  ;;  %v151_v1 = vld [vmem:[#allocation4 + $0x150] sm:$0xff]  ;;  %v154_v2 = vld [vmem:[#allocation4 + $0x168] sm:$0xff]  ;;  %v156_v3 = vld [vmem:[#allocation4 + $0x178] sm:$0xff]  ;;  %390 = vst.msk [vmem:[#allocation2 + $0x60] sm:$0xff] %vm385_vm2, %v5548_v40 }
  0x59   :  { %3460 = vmatpush1.bf16.msra.mxu0 %v3459_v25  ;;  %v3487_v4 = vpack.c.bf16 %v151_v1, %v149_v0  ;;  %v3489_v5 = vpack.c.bf16 %v156_v3, %v154_v2  ;;  %v153_v6 = vld [vmem:[#allocation4 + $0x160] sm:$0xff]  ;;  %v155_v7 = vld [vmem:[#allocation4 + $0x170] sm:$0xff]  ;;  %v158_v8 = vld [vmem:[#allocation4 + $0x188] sm:$0xff]  ;;  %398 = vst.msk [vmem:[#allocation2 + $0x58] sm:$0xfe] %vm392_vm3, %v5548_v40 }
  0x5a   :  { %3462 = vmatprep.subr.bf16.mxu0 %v3461_v26  ;;  %v160_v9 = vld [vmem:[#allocation4 + $0x198] sm:$0xff]  ;;  %v3491_v10 = vpack.c.bf16 %v155_v7, %v153_v6  ;;  %v157_v12 = vld [vmem:[#allocation4 + $0x180] sm:$0xff]  ;;  %v159_v13 = vld [vmem:[#allocation4 + $0x190] sm:$0xff]  ;;  %388 = vst.msk [vmem:[#allocation2 + $0x30] sm:$0x1] %vm387_vm5, %v5548_v40 }
  0x5b   :  { %v3493_v11 = vpack.c.bf16 %v160_v9, %v158_v8  ;;  %v162_v14 = vld [vmem:[#allocation4 + $0x1a8] sm:$0xff]  ;;  %v164_v15 = vld [vmem:[#allocation4 + $0x1b8] sm:$0xff]  ;;  %v3495_v16 = vpack.c.bf16 %v159_v13, %v157_v12  ;;  %v161_v18 = vld [vmem:[#allocation4 + $0x1a0] sm:$0xff]  ;;  %391 = vst.msk [vmem:[#allocation2 + $0x78] sm:$0x1] %vm387_vm5, %v5548_v40 }
  0x5c   :  { %v3497_v17 = vpack.c.bf16 %v164_v15, %v162_v14  ;;  %v163_v19 = vld [vmem:[#allocation4 + $0x1b0] sm:$0xff]  ;;  %v166_v20 = vld [vmem:[#allocation4 + $0x1c8] sm:$0xff]  ;;  %v168_v21 = vld [vmem:[#allocation4 + $0x1d8] sm:$0xff]  ;;  %397 = vst.msk [vmem:[#allocation2 + $0x40] sm:$0x1] %vm396_vm6, %v5548_v40 }
  0x5d   :  { %3464 = vmatpush1.bf16.msra.mxu0 %v3463_v31  ;;  %v3499_v22 = vpack.c.bf16 %v163_v19, %v161_v18  ;;  %v3501_v23 = vpack.c.bf16 %v168_v21, %v166_v20  ;;  %v165_v24 = vld [vmem:[#allocation4 + $0x1c0] sm:$0xff]  ;;  %v167_v25 = vld [vmem:[#allocation4 + $0x1d0] sm:$0xff]  ;;  %v170_v26 = vld [vmem:[#allocation4 + $0x1e8] sm:$0xff]  ;;  %400 = vst.msk [vmem:[#allocation2 + $0x88] sm:$0x1] %vm396_vm6, %v5548_v40 }
  0x5e   :  { %3466 = vmatprep.subr.bf16.mxu0 %v3465_v32  ;;  %v172_v27 = vld [vmem:[#allocation4 + $0x1f8] sm:$0xff]  ;;  %v3503_v28 = vpack.c.bf16 %v167_v25, %v165_v24  ;;  %v169_v30 = vld [vmem:[#allocation4 + $0x1e0] sm:$0xff]  ;;  %v171_v31 = vld [vmem:[#allocation4 + $0x1f0] sm:$0xff]  ;;  %395 = vst.msk [vmem:[#allocation2 + $0x28] sm:$0xff] %vm394_vm7, %v5548_v40 }
  0x5f   :  { %v3505_v29 = vpack.c.bf16 %v172_v27, %v170_v26  ;;  %v3507_v32 = vpack.c.bf16 %v171_v31, %v169_v30  ;;  %v101_v33 = vld [vmem:[%s5534_s0] sm:$0xff]  ;;  %v104_v34 = vld [vmem:[%s5534_s0 + $0x18] sm:$0xff]  ;;  %v103_v35 = vld [vmem:[%s5534_s0 + $0x10] sm:$0xff]  ;;  %399 = vst.msk [vmem:[#allocation2 + $0x70] sm:$0xff] %vm394_vm7, %v5548_v40 }
  0x60   :  { %v106_v36 = vld [vmem:[%s5534_s0 + $0x28] sm:$0xff]  ;;  %v107_v39 = vld [vmem:[%s5534_s0 + $0x30] sm:$0xff]  ;;  %v262_v53 = vld [vmem:[%s5536_s2] sm:$0xff] }
  0x61   :  { %3468 = vmatpush1.bf16.msra.mxu0 %v3467_v37  ;;  %v105_v37 = vld [vmem:[%s5534_s0 + $0x20] sm:$0xff]  ;;  %v263_v54 = vld [vmem:[%s5536_s2 + $0x8] sm:$0xff]  ;;  %v264_v55 = vld [vmem:[%s5536_s2 + $0x10] sm:$0xff] }
  0x62   :  { %3470 = vmatprep.subr.bf16.mxu0 %v3469_v38  ;;  %v108_v38 = vld [vmem:[%s5534_s0 + $0x38] sm:$0xff]  ;;  %v648_v58 = vld [vmem:[#allocation7 + $0x258] sm:$0xff]  ;;  %v645_v59 = vld [vmem:[#allocation7 + $0x240] sm:$0xff] }
  0x63   :  { %v647_v61 = vld [vmem:[#allocation7 + $0x250] sm:$0xff]  ;;  %v649_v2 = vld [vmem:[#allocation7 + $0x260] sm:$0xff] }
  0x64   :  { %v3519_v0 = vpack.c.bf16 %v647_v61, %v645_v59  ;;  %v651_v3 = vld [vmem:[#allocation7 + $0x270] sm:$0xff]  ;;  %v653_v8 = vld [vmem:[#allocation7 + $0x280] sm:$0xff]  ;;  %v692_v61 = vld [vmem:[#allocation7 + $0x3b8] sm:$0xff] }
  0x65   :  { %3472 = vmatpush1.bf16.msra.mxu0 %v3471_v44  ;;  %v3523_v6 = vpack.c.bf16 %v651_v3, %v649_v2  ;;  %v655_v9 = vld [vmem:[#allocation7 + $0x290] sm:$0xff]  ;;  %v657_v14 = vld [vmem:[#allocation7 + $0x2a0] sm:$0xff]  ;;  %v5550_v2 = vlaneseq  ;;  %v694_v3 = vld [vmem:[#allocation7 + $0x3c8] sm:$0xff] }
  0x66   :  { %3474 = vmatprep.subr.bf16.mxu0 %v3473_v45  ;;  %v3527_v12 = vpack.c.bf16 %v655_v9, %v653_v8  ;;  %v659_v15 = vld [vmem:[#allocation7 + $0x2b0] sm:$0xff]  ;;  %v661_v20 = vld [vmem:[#allocation7 + $0x2c0] sm:$0xff]  ;;  %v698_v9 = vld [vmem:[#allocation7 + $0x3e8] sm:$0xff] }
  0x67   :  { %v3531_v18 = vpack.c.bf16 %v659_v15, %v657_v14  ;;  %v663_v21 = vld [vmem:[#allocation7 + $0x2d0] sm:$0xff]  ;;  %v665_v26 = vld [vmem:[#allocation7 + $0x2e0] sm:$0xff]  ;;  %vm370_vm4 = vcmp.lt.s32.totalorder %v5550_v2, 288  ;;  %v702_v15 = vld [vmem:[#allocation7 + $0x408] sm:$0xff] }
  0x68   :  { %v3535_v24 = vpack.c.bf16 %v663_v21, %v661_v20  ;;  %v667_v27 = vld [vmem:[#allocation7 + $0x2f0] sm:$0xff]  ;;  %372 = vst.msk [vmem:[#allocation2] ss:$8 sm:$0x7] %vm370_vm4, %v5548_v40 }
  0x69   :  { %3476 = vmatpush1.bf16.msra.mxu0 %v3475_v50  ;;  %v3539_v30 = vpack.c.bf16 %v667_v27, %v665_v26  ;;  %375 = vst.msk [vmem:[#allocation2 + $0x48] ss:$8 sm:$0x7] %vm370_vm4, %v5548_v40  ;;  %378 = vst.msk [vmem:[#allocation2 + $0x31] ss:$8 sm:$0x7] %vm370_vm4, %v5548_v40 }
  0x6a   :  { %3478 = vmatprep.subr.bf16.mxu0 %v3477_v51  ;;  %381 = vst.msk [vmem:[#allocation2 + $0x79] ss:$8 sm:$0x7] %vm370_vm4, %v5548_v40  ;;  %v705_v27 = vld [vmem:[#allocation7 + $0x420] sm:$0xff] }
  0x6d   :  { %3480 = vmatpush1.bf16.msra.mxu0 %v3479_v56  ;;  %v265_v56 = vld [vmem:[%s5536_s2 + $0x18] sm:$0xff] }
  0x6e   :  { %3482 = vmatprep.subr.bf16.mxu0 %v3481_v57  ;;  %v646_v57 = vld [vmem:[#allocation7 + $0x248] sm:$0xff] }
  0x6f   :  { %v3517_v60 = vpack.c.bf16 %v648_v58, %v646_v57  ;;  %v685_v57 = vld [vmem:[#allocation7 + $0x380] sm:$0xff]  ;;  %v687_v58 = vld [vmem:[#allocation7 + $0x390] sm:$0xff] }
  0x70   :  { %v3559_v59 = vpack.c.bf16 %v687_v58, %v685_v57 }
  0x71   :  { %3484 = vmatpush1.bf16.msra.mxu0 %v3483_v62  ;;  %v650_v62 = vld [vmem:[#allocation7 + $0x268] sm:$0xff] }
  0x72   :  { %3486 = vmatprep.subr.bf16.mxu0 %v3485_v63  ;;  %v652_v63 = vld [vmem:[#allocation7 + $0x278] sm:$0xff] }
  0x73   :  { %v3521_v1 = vpack.c.bf16 %v652_v63, %v650_v62  ;;  %v689_v63 = vld [vmem:[#allocation7 + $0x3a0] sm:$0xff] }
  0x75   :  { %3488 = vmatpush1.bf16.msra.mxu0 %v3487_v4  ;;  %v654_v4 = vld [vmem:[#allocation7 + $0x288] sm:$0xff] }
  0x76   :  { %3490 = vmatprep.subr.bf16.mxu0 %v3489_v5  ;;  %v656_v5 = vld [vmem:[#allocation7 + $0x298] sm:$0xff] }
  0x77   :  { %v3525_v7 = vpack.c.bf16 %v656_v5, %v654_v4  ;;  %v696_v4 = vld [vmem:[#allocation7 + $0x3d8] sm:$0xff] }
  0x78   :  { %v3565_v5 = vpack.c.bf16 %v696_v4, %v694_v3 }
  0x79   :  { %3492 = vmatpush1.bf16.msra.mxu0 %v3491_v10  ;;  %v658_v10 = vld [vmem:[#allocation7 + $0x2a8] sm:$0xff] }
  0x7a   :  { %3494 = vmatprep.subr.bf16.mxu0 %v3493_v11  ;;  %v660_v11 = vld [vmem:[#allocation7 + $0x2b8] sm:$0xff] }
  0x7b   :  { %v3529_v13 = vpack.c.bf16 %v660_v11, %v658_v10  ;;  %v700_v10 = vld [vmem:[#allocation7 + $0x3f8] sm:$0xff] }
  0x7c   :  { %v3569_v11 = vpack.c.bf16 %v700_v10, %v698_v9 }
  0x7d   :  { %3496 = vmatpush1.bf16.msra.mxu0 %v3495_v16  ;;  %v662_v16 = vld [vmem:[#allocation7 + $0x2c8] sm:$0xff] }
  0x7e   :  { %3498 = vmatprep.subr.bf16.mxu0 %v3497_v17  ;;  %v664_v17 = vld [vmem:[#allocation7 + $0x2d8] sm:$0xff] }
  0x7f   :  { %v3533_v19 = vpack.c.bf16 %v664_v17, %v662_v16  ;;  %v704_v16 = vld [vmem:[#allocation7 + $0x418] sm:$0xff] }
  0x80   :  { %v3573_v17 = vpack.c.bf16 %v704_v16, %v702_v15  ;;  %v713_v15 = vld [vmem:[#allocation7 + $0x460] sm:$0xff]  ;;  %v715_v16 = vld [vmem:[#allocation7 + $0x470] sm:$0xff] }
  0x81   :  { %3500 = vmatpush1.bf16.msra.mxu0 %v3499_v22  ;;  %v666_v22 = vld [vmem:[#allocation7 + $0x2e8] sm:$0xff] }
  0x82   :  { %3502 = vmatprep.subr.bf16.mxu0 %v3501_v23  ;;  %v668_v23 = vld [vmem:[#allocation7 + $0x2f8] sm:$0xff] }
  0x83   :  { %v3537_v25 = vpack.c.bf16 %v668_v23, %v666_v22 }
  0x85   :  { %3504 = vmatpush1.bf16.msra.mxu0 %v3503_v28  ;;  %v670_v28 = vld [vmem:[#allocation7 + $0x308] sm:$0xff] }
  0x86   :  { %3506 = vmatprep.subr.bf16.mxu0 %v3505_v29  ;;  %v672_v29 = vld [vmem:[#allocation7 + $0x318] sm:$0xff] }
  0x87   :  { %v3541_v31 = vpack.c.bf16 %v672_v29, %v670_v28  ;;  %v707_v28 = vld [vmem:[#allocation7 + $0x430] sm:$0xff] }
  0x88   :  { %v3579_v29 = vpack.c.bf16 %v707_v28, %v705_v27 }
  0x89   :  { %3508 = vmatpush1.bf16.msra.mxu0 %v3507_v32  ;;  %v669_v32 = vld [vmem:[#allocation7 + $0x300] sm:$0xff] }
  0x8c   :  { %238 = vmatmul.mubr.f32.vlgmr.msra.gmra.mrb[0].mxu0 %v101_v33  ;;  %v671_v33 = vld [vmem:[#allocation7 + $0x310] sm:$0xff] }
  0x8d   :  { %243 = vmatprep.mubr.f32.mxu0 %v104_v34  ;;  %v674_v34 = vld [vmem:[#allocation7 + $0x328] sm:$0xff] }
  0x90   :  { %244 = vmatmul.mubr.f32.gmra.mrb[2].mxu0 %v103_v35  ;;  %v676_v35 = vld [vmem:[#allocation7 + $0x338] sm:$0xff] }
  0x91   :  { %249 = vmatprep.mubr.f32.mxu0 %v106_v36  ;;  %v3543_v36 = vpack.c.bf16 %v671_v33, %v669_v32 }
  0x94   :  { %250 = vmatmul.mubr.f32.gmra.mrb[4].mxu0 %v105_v37  ;;  %v3545_v37 = vpack.c.bf16 %v676_v35, %v674_v34 }
  0x95   :  { %255 = vmatprep.mubr.f32.mxu0 %v108_v38  ;;  %v673_v38 = vld [vmem:[#allocation7 + $0x320] sm:$0xff] }
  0x98   :  { %256 = vmatmul.mubr.f32.gmra.mrb[6].mxu0 %v107_v39  ;;  %v675_v39 = vld [vmem:[#allocation7 + $0x330] sm:$0xff] }
 0x15f   :  { %v239_v41 = vpop.f32.mrb[0].mxu0 }
 0x160   :  { %v241_v42 = vpop.f32.mrb[1].mxu0 }
 0x163   :  { %v245_v43 = vpop.f32.mrb[2].mxu0 }
 0x164   :  { %v3511_v44 = vpack.c.bf16 %v245_v43, %v239_v41  ;;  %v247_v45 = vpop.f32.mrb[3].mxu0  ;;  %v678_v41 = vld [vmem:[#allocation7 + $0x348] sm:$0xff]  ;;  %v3547_v43 = vpack.c.bf16 %v675_v39, %v673_v38 }
 0x165   :  { %v3509_v46 = vpack.c.bf16 %v247_v45, %v241_v42  ;;  %v680_v42 = vld [vmem:[#allocation7 + $0x358] sm:$0xff]  ;;  %v677_v45 = vld [vmem:[#allocation7 + $0x340] sm:$0xff] }
 0x167   :  { %v251_v47 = vpop.f32.mrb[4].mxu0  ;;  %3510 = vmatprep.subr.bf16.mxu1 %v3509_v46  ;;  %v679_v46 = vld [vmem:[#allocation7 + $0x350] sm:$0xff] }
 0x168   :  { %v253_v48 = vpop.f32.mrb[5].mxu0  ;;  %3512 = vmatpush1.bf16.msra.mxu1 %v3511_v44  ;;  %v3549_v44 = vpack.c.bf16 %v680_v42, %v678_v41 }
 0x16b   :  { %v257_v49 = vpop.f32.mrb[6].mxu0 }
 0x16c   :  { %v3515_v50 = vpack.c.bf16 %v257_v49, %v251_v47  ;;  %v259_v51 = vpop.f32.mrb[7].mxu0  ;;  %v682_v47 = vld [vmem:[#allocation7 + $0x368] sm:$0xff]  ;;  %v3551_v49 = vpack.c.bf16 %v679_v46, %v677_v45 }
 0x16d   :  { %v3513_v52 = vpack.c.bf16 %v259_v51, %v253_v48  ;;  %v684_v48 = vld [vmem:[#allocation7 + $0x378] sm:$0xff]  ;;  %v681_v51 = vld [vmem:[#allocation7 + $0x360] sm:$0xff] }
 0x16f   :  { %3514 = vmatprep.subr.bf16.mxu1 %v3513_v52  ;;  %v683_v52 = vld [vmem:[#allocation7 + $0x370] sm:$0xff] }
 0x170   :  { %3516 = vmatpush1.bf16.msra.mxu1 %v3515_v50  ;;  %v3553_v50 = vpack.c.bf16 %v684_v48, %v682_v47  ;;  %v710_v48 = vld [vmem:[#allocation7 + $0x448] sm:$0xff] }
 0x171   :  { %3518 = vmatprep.subr.bf16.mxu1 %v3517_v60  ;;  %v690_v60 = vld [vmem:[#allocation7 + $0x3a8] sm:$0xff] }
 0x172   :  { %v3561_v62 = vpack.c.bf16 %v692_v61, %v690_v60  ;;  %v711_v60 = vld [vmem:[#allocation7 + $0x450] sm:$0xff] }
 0x173   :  { %3373 = vmatmul.mubr.msk.f32.vlgmr.msra.gmra.mrb[0].mxu1 %vm266_vm0, %v262_v53  ;;  %v3555_v53 = vpack.c.bf16 %v683_v52, %v681_v51 }
 0x174   :  { %349 = vmatprep.mubr.f32.mxu1 %v5548_v40  ;;  %3520 = vmatpush1.bf16.msra.mxu1 %v3519_v0  ;;  %v691_v0 = vld [vmem:[#allocation7 + $0x3b0] sm:$0xff] }
 0x175   :  { %3522 = vmatprep.subr.bf16.mxu1 %v3521_v1  ;;  %v3563_v1 = vpack.c.bf16 %v691_v0, %v689_v63 }
 0x177   :  { %3374 = vmatmul.mubr.msk.f32.gmra.mrb[2].mxu1 %vm266_vm0, %v263_v54  ;;  %v686_v54 = vld [vmem:[#allocation7 + $0x388] sm:$0xff] }
 0x178   :  { %355 = vmatprep.mubr.f32.mxu1 %v5548_v40  ;;  %3524 = vmatpush1.bf16.msra.mxu1 %v3523_v6  ;;  %v693_v6 = vld [vmem:[#allocation7 + $0x3c0] sm:$0xff] }
 0x179   :  { %3526 = vmatprep.subr.bf16.mxu1 %v3525_v7  ;;  %v695_v7 = vld [vmem:[#allocation7 + $0x3d0] sm:$0xff] }
 0x17a   :  { %v3567_v8 = vpack.c.bf16 %v695_v7, %v693_v6  ;;  %v716_v6 = vld [vmem:[#allocation7 + $0x478] sm:$0xff] }
 0x17b   :  { %3375 = vmatmul.mubr.msk.f32.gmra.mrb[4].mxu1 %vm266_vm0, %v264_v55  ;;  %v688_v55 = vld [vmem:[#allocation7 + $0x398] sm:$0xff] }
 0x17c   :  { %361 = vmatprep.mubr.f32.mxu1 %v5548_v40  ;;  %3528 = vmatpush1.bf16.msra.mxu1 %v3527_v12  ;;  %v697_v12 = vld [vmem:[#allocation7 + $0x3e0] sm:$0xff] }
 0x17d   :  { %3530 = vmatprep.subr.bf16.mxu1 %v3529_v13  ;;  %v699_v13 = vld [vmem:[#allocation7 + $0x3f0] sm:$0xff] }
 0x17e   :  { %v3571_v14 = vpack.c.bf16 %v699_v13, %v697_v12 }
 0x17f   :  { %3376 = vmatmul.mubr.msk.f32.gmra.mrb[6].mxu1 %vm266_vm0, %v265_v56  ;;  %v3557_v56 = vpack.c.bf16 %v688_v55, %v686_v54 }
 0x180   :  { %3532 = vmatpush1.bf16.msra.mxu1 %v3531_v18  ;;  %v701_v18 = vld [vmem:[#allocation7 + $0x400] sm:$0xff] }
 0x181   :  { %3534 = vmatprep.subr.bf16.mxu1 %v3533_v19  ;;  %v703_v19 = vld [vmem:[#allocation7 + $0x410] sm:$0xff] }
 0x182   :  { %v3575_v20 = vpack.c.bf16 %v703_v19, %v701_v18 }
 0x184   :  { %3536 = vmatpush1.bf16.msra.mxu1 %v3535_v24  ;;  %v706_v24 = vld [vmem:[#allocation7 + $0x428] sm:$0xff] }
 0x185   :  { %3538 = vmatprep.subr.bf16.mxu1 %v3537_v25  ;;  %v708_v25 = vld [vmem:[#allocation7 + $0x438] sm:$0xff] }
 0x186   :  { %v3577_v26 = vpack.c.bf16 %v708_v25, %v706_v24  ;;  %v3587_v25 = vpack.c.bf16 %v715_v16, %v713_v15 }
 0x188   :  { %3540 = vmatpush1.bf16.msra.mxu1 %v3539_v30 }
 0x189   :  { %3542 = vmatprep.subr.bf16.mxu1 %v3541_v31 }
 0x18c   :  { %3544 = vmatpush1.bf16.msra.mxu1 %v3543_v36 }
 0x18d   :  { %3546 = vmatprep.subr.bf16.mxu1 %v3545_v37 }
 0x190   :  { %3548 = vmatpush1.bf16.msra.mxu1 %v3547_v43 }
 0x191   :  { %3550 = vmatprep.subr.bf16.mxu1 %v3549_v44 }
 0x194   :  { %3552 = vmatpush1.bf16.msra.mxu1 %v3551_v49  ;;  %v712_v49 = vld [vmem:[#allocation7 + $0x458] sm:$0xff] }
 0x195   :  { %3554 = vmatprep.subr.bf16.mxu1 %v3553_v50  ;;  %v3581_v50 = vpack.c.bf16 %v712_v49, %v710_v48 }
 0x198   :  { %3556 = vmatpush1.bf16.msra.mxu1 %v3555_v53 }
 0x199   :  { %3558 = vmatprep.subr.bf16.mxu1 %v3557_v56 }
 0x19c   :  { %3560 = vmatpush1.bf16.msra.mxu1 %v3559_v59  ;;  %v709_v59 = vld [vmem:[#allocation7 + $0x440] sm:$0xff] }
 0x19d   :  { %3562 = vmatprep.subr.bf16.mxu1 %v3561_v62  ;;  %v3583_v10 = vpack.c.bf16 %v711_v60, %v709_v59  ;;  %v507_v60 = vld [vmem:[#allocation7 + $0x20] sm:$0xff] }
 0x1a0   :  { %3564 = vmatpush1.bf16.msra.mxu1 %v3563_v1 }
 0x1a1   :  { %3566 = vmatprep.subr.bf16.mxu1 %v3565_v5  ;;  %v714_v5 = vld [vmem:[#allocation7 + $0x468] sm:$0xff] }
 0x1a4   :  { %3568 = vmatpush1.bf16.msra.mxu1 %v3567_v8 }
 0x1a5   :  { %3570 = vmatprep.subr.bf16.mxu1 %v3569_v11 }
 0x1a8   :  { %3572 = vmatpush1.bf16.msra.mxu1 %v3571_v14  ;;  %v3585_v14 = vpack.c.bf16 %v716_v6, %v714_v5 }
 0x1a9   :  { %3574 = vmatprep.subr.bf16.mxu1 %v3573_v17 }
 0x1ac   :  { %3576 = vmatpush1.bf16.msra.mxu1 %v3575_v20 }
 0x1ad   :  { %3578 = vmatprep.subr.bf16.mxu1 %v3577_v26 }
 0x1b0   :  { %3580 = vmatpush1.bf16.msra.mxu1 %v3579_v29 }
 0x1b1   :  { %3582 = vmatprep.subr.bf16.mxu1 %v3581_v50  ;;  %v503_v50 = vld [vmem:[#allocation7] sm:$0xff] }
 0x246   :  { %v345_v21 = vpop.f32.mrb[0].mxu1 }
 0x247   :  { %v410_v22 = vrot.slane %v345_v21, 7  ;;  %v347_v23 = vpop.f32.mrb[1].mxu1  ;;  %v504_v21 = vld [vmem:[#allocation7 + $0x8] sm:$0xff] }
 0x248   :  { %v411_v31 = vrot.slane %v347_v23, 7 }
 0x249   :  { %422 = vrot.lane.b32.xlu0 %v410_v22, %s4476_s21 }
 0x24a   :  { %v351_v30 = vpop.f32.mrb[2].mxu1 }
 0x24b   :  { %v412_v32 = vrot.slane %v351_v30, 7  ;;  %v353_v33 = vpop.f32.mrb[3].mxu1 }
 0x24c   :  { %v414_v34 = vrot.slane %v353_v33, 7 }
 0x24d   :  { %424 = vrot.lane.b32.xlu0 %v411_v31, %s4476_s21  ;;  %v413_v35 = vsel %vm409_vm8, %v410_v22, %v412_v32  ;;  %v506_v22 = vld [vmem:[#allocation7 + $0x18] sm:$0xff] }
 0x24e   :  { %426 = vrot.lane.b32.xlu1 %v413_v35, %s4476_s21  ;;  %v357_v36 = vpop.f32.mrb[4].mxu1  ;;  %v415_v37 = vsel %vm409_vm8, %v411_v31, %v414_v34  ;;  %v3589_v28 = vpack.c.bf16 %v506_v22, %v504_v21 }
 0x24f   :  { %v359_v38 = vpop.f32.mrb[5].mxu1  ;;  %v416_v39 = vrot.slane %v357_v36, 7 }
 0x250   :  { %v417_v41 = vrot.slane %v359_v38, 7 }
 0x251   :  { %430 = vrot.lane.b32.xlu0 %v412_v32, %s4476_s21 }
 0x252   :  { %432 = vrot.lane.b32.xlu1 %v414_v34, %s4476_s21  ;;  %v363_v42 = vpop.f32.mrb[6].mxu1 }
 0x253   :  { %v418_v43 = vrot.slane %v363_v42, 7  ;;  %v365_v44 = vpop.f32.mrb[7].mxu1 }
 0x254   :  { %v420_v45 = vrot.slane %v365_v44, 7 }
 0x255   :  { %434 = vrot.lane.b32.xlu0 %v416_v39, %s4476_s21  ;;  %v419_v46 = vsel %vm409_vm8, %v416_v39, %v418_v43 }
 0x256   :  { %428 = vrot.lane.b32.xlu1 %v415_v37, %s4476_s21  ;;  %v421_v47 = vsel %vm409_vm8, %v417_v41, %v420_v45 }
 0x259   :  { %438 = vrot.lane.b32.xlu0 %v419_v46, %s4476_s21 }
 0x25a   :  { %436 = vrot.lane.b32.xlu1 %v417_v41, %s4476_s21 }
 0x25d   :  { %442 = vrot.lane.b32.xlu0 %v418_v43, %s4476_s21 }
 0x25e   :  { %440 = vrot.lane.b32.xlu1 %v421_v47, %s4476_s21 }
 0x262   :  { %444 = vrot.lane.b32.xlu1 %v420_v45, %s4476_s21 }
 0x2bb   :  { %v423_v51 = vpop.permute.xlu0 %422 }
 0x2bc   :  { %471 = vst.msk [vmem:[#allocation2] sm:$0xfe] %vm470_vm9, %v423_v51 }
 0x2bf   :  { %v425_v52 = vpop.permute.xlu0 %424 }
 0x2c0   :  { %v446_v53 = vsel %vm385_vm2, %v423_v51, %v425_v52  ;;  %473 = vst.msk [vmem:[#allocation2 + $0x10] sm:$0xfe] %vm383_vm1, %v425_v52  ;;  %v427_v54 = vpop.permute.xlu1 %426  ;;  %v505_v51 = vld [vmem:[#allocation7 + $0x10] sm:$0xff] }
 0x2c1   :  { %472 = vst [vmem:[#allocation2 + $0x8] sm:$0xfe] %v446_v53  ;;  %475 = vst.msk [vmem:[#allocation2 + $0x18] sm:$0xff] %vm474_vm10, %v427_v54 }
 0x2c3   :  { %v431_v55 = vpop.permute.xlu0 %430  ;;  %v575_v0 = vld [vmem:[#allocation2] sm:$0xfe] }
 0x2c4   :  { %479 = vst.msk [vmem:[#allocation2 + $0x30] sm:$0x1] %vm478_vm11, %v431_v55  ;;  %v433_v56 = vpop.permute.xlu1 %432  ;;  %v606_v9 = vrot.slane %v575_v0, 1  ;;  %v512_v0 = vld [vmem:[#allocation7 + $0x48] sm:$0xff] }
 0x2c5   :  { %v448_v57 = vsel %vm385_vm2, %v431_v55, %v433_v56  ;;  %481 = vst.msk [vmem:[#allocation2 + $0x40] sm:$0x1] %vm387_vm5, %v433_v56  ;;  %v510_v55 = vld [vmem:[#allocation7 + $0x38] sm:$0xff] }
 0x2c6   :  { %480 = vst [vmem:[#allocation2 + $0x38] sm:$0x1] %v448_v57  ;;  %v3591_v57 = vpack.c.bf16 %v505_v51, %v503_v50  ;;  %v531_v51 = vld [vmem:[#allocation7 + $0xe0] sm:$0xff] }
 0x2c7   :  { %v435_v58 = vpop.permute.xlu0 %434  ;;  %v577_v49 = vld [vmem:[#allocation2 + $0x10] sm:$0xfe] }
 0x2c8   :  { %482 = vst.msk [vmem:[#allocation2 + $0x48] sm:$0xfe] %vm470_vm9, %v435_v58  ;;  %v429_v61 = vpop.permute.xlu1 %428  ;;  %v576_v62 = vld [vmem:[#allocation2 + $0x8] sm:$0xfe]  ;;  %v4716_v63 = vld [vmem:[#allocation2 + $0x18] sm:$0xff]  ;;  %v612_v56 = vrot.slane %v577_v49, 1 }
 0x2c9   :  { %v4719_v1 = vsel %vm385_vm2, %v427_v54, %v429_v61  ;;  %477 = vst.msk [vmem:[#allocation2 + $0x28] sm:$0xff] %vm385_vm2, %v429_v61  ;;  %v609_v3 = vrot.slane %v576_v62, 1  ;;  %v607_v4 = vrot.slane %v4716_v63, 1  ;;  %v508_v54 = vld [vmem:[#allocation7 + $0x28] sm:$0xff]  ;;  %v509_v61 = vld [vmem:[#allocation7 + $0x30] sm:$0xff] }
 0x2ca   :  { %v610_v7 = vrot.slane %v4719_v1, 1  ;;  %v3595_v6 = vpack.c.bf16 %v509_v61, %v507_v60  ;;  %v542_v60 = vld [vmem:[#allocation7 + $0x138] sm:$0xff] }
 0x2cb   :  { %v439_v8 = vpop.permute.xlu0 %438  ;;  %v578_v11 = vld [vmem:[#allocation2 + $0x30] sm:$0x1]  ;;  %v608_v18 = vsel %vm605_vm12, %v606_v9, %v607_v4 }
 0x2cc   :  { %485 = vst.msk [vmem:[#allocation2 + $0x60] sm:$0xff] %vm474_vm10, %v439_v8  ;;  %v437_v12 = vpop.permute.xlu1 %436  ;;  %v611_v13 = vsel %vm605_vm12, %v609_v3, %v610_v7  ;;  %v615_v20 = vrot.slane %v578_v11, 1  ;;  %v580_v59 = vld [vmem:[#allocation2 + $0x40] sm:$0x1]  ;;  %v514_v3 = vld [vmem:[#allocation7 + $0x58] sm:$0xff]  ;;  %v511_v9 = vld [vmem:[#allocation7 + $0x40] sm:$0xff] }
 0x2cd   :  { %v449_v17 = vsel %vm385_vm2, %v435_v58, %v437_v12  ;;  %484 = vst.msk [vmem:[#allocation2 + $0x58] sm:$0xfe] %vm383_vm1, %v437_v12  ;;  %789 = vmatprep.mubr.f32.mxu1 %v611_v13  ;;  %v579_v19 = vld [vmem:[#allocation2 + $0x38] sm:$0x1]  ;;  %v3593_v58 = vpack.c.bf16 %v510_v55, %v508_v54  ;;  %v619_v5 = vrot.slane %v580_v59, 1  ;;  %v538_v54 = vld [vmem:[#allocation7 + $0x118] sm:$0xff] }
 0x2ce   :  { %483 = vst [vmem:[#allocation2 + $0x50] sm:$0xfe] %v449_v17  ;;  %790 = vmatmul.mubr.f32.vlgmr.msra.gmra.mrb[8].mxu1 %v608_v18  ;;  %v617_v23 = vrot.slane %v579_v19, 1  ;;  %v616_v29 = vsel %vm605_vm12, %v607_v4, %v615_v20  ;;  %v516_v13 = vld [vmem:[#allocation7 + $0x68] sm:$0xff]  ;;  %v515_v19 = vld [vmem:[#allocation7 + $0x60] sm:$0xff]  ;;  %v517_v20 = vld [vmem:[#allocation7 + $0x70] sm:$0xff] }
 0x2cf   :  { %v443_v24 = vpop.permute.xlu0 %442  ;;  %3584 = vmatpush1.bf16.msra.mxu1 %v3583_v10  ;;  %v581_v30 = vld [vmem:[#allocation2 + $0x48] sm:$0xfe]  ;;  %v513_v10 = vld [vmem:[#allocation7 + $0x50] sm:$0xff]  ;;  %v540_v59 = vld [vmem:[#allocation7 + $0x128] sm:$0xff] }
 0x2d0   :  { %488 = vst.msk [vmem:[#allocation2 + $0x78] sm:$0x1] %vm478_vm11, %v443_v24  ;;  %v441_v26 = vpop.permute.xlu1 %440  ;;  %v618_v27 = vsel %vm605_vm12, %v610_v7, %v617_v23  ;;  %3586 = vmatprep.subr.bf16.mxu1 %v3585_v14  ;;  %v621_v36 = vrot.slane %v581_v30, 1  ;;  %v4744_v47 = vld [vmem:[#allocation2 + $0x28] sm:$0xff]  ;;  %v3597_v7 = vpack.c.bf16 %v514_v3, %v512_v0  ;;  %v3599_v17 = vpack.c.bf16 %v513_v10, %v511_v9  ;;  %v520_v23 = vld [vmem:[#allocation7 + $0x88] sm:$0xff]  ;;  %v539_v0 = vld [vmem:[#allocation7 + $0x120] sm:$0xff] }
 0x2d1   :  { %487 = vst.msk [vmem:[#allocation2 + $0x70] sm:$0xff] %vm385_vm2, %v441_v26  ;;  %795 = vmatprep.mubr.f32.mxu1 %v618_v27  ;;  %v4734_v31 = vsel %vm385_vm2, %v439_v8, %v441_v26  ;;  %v613_v53 = vrot.slane %v4744_v47, 1  ;;  %v518_v14 = vld [vmem:[#allocation7 + $0x78] sm:$0xff]  ;;  %v519_v27 = vld [vmem:[#allocation7 + $0x80] sm:$0xff]  ;;  %v524_v30 = vld [vmem:[#allocation7 + $0xa8] sm:$0xff] }
 0x2d2   :  { %796 = vmatmul.mubr.f32.gmra.mrb[10].mxu1 %v616_v29  ;;  %v625_v39 = vrot.slane %v4734_v31, 1  ;;  %v3601_v18 = vpack.c.bf16 %v518_v14, %v516_v13  ;;  %v541_v3 = vld [vmem:[#allocation7 + $0x130] sm:$0xff]  ;;  %v543_v9 = vld [vmem:[#allocation7 + $0x140] sm:$0xff] }
 0x2d3   :  { %v4736_v32 = vld [vmem:[#allocation2 + $0x60] sm:$0xff]  ;;  %3588 = vmatpush1.bf16.msra.mxu1 %v3587_v25  ;;  %v614_v62 = vsel %vm605_vm12, %v612_v56, %v613_v53  ;;  %v620_v11 = vsel %vm605_vm12, %v613_v53, %v619_v5  ;;  %v3603_v25 = vpack.c.bf16 %v517_v20, %v515_v19  ;;  %v536_v53 = vld [vmem:[#allocation7 + $0x108] sm:$0xff] }
 0x2d4   :  { %v445_v33 = vpop.permute.xlu1 %444  ;;  %3590 = vmatprep.subr.bf16.mxu1 %v3589_v28  ;;  %v622_v37 = vrot.slane %v4736_v32, 1  ;;  %v583_v8 = vld [vmem:[#allocation2 + $0x58] sm:$0xfe]  ;;  %v521_v28 = vld [vmem:[#allocation7 + $0x90] sm:$0xff]  ;;  %v3621_v56 = vpack.c.bf16 %v538_v54, %v536_v53 }
 0x2d5   :  { %v451_v34 = vsel %vm385_vm2, %v443_v24, %v445_v33  ;;  %490 = vst.msk [vmem:[#allocation2 + $0x88] sm:$0x1] %vm387_vm5, %v445_v33  ;;  %v582_v35 = vld [vmem:[#allocation2 + $0x50] sm:$0xfe]  ;;  %v627_v16 = vrot.slane %v583_v8, 1  ;;  %v522_v24 = vld [vmem:[#allocation7 + $0x98] sm:$0xff] }
 0x2d6   :  { %489 = vst [vmem:[#allocation2 + $0x80] sm:$0x1] %v451_v34  ;;  %v624_v38 = vrot.slane %v582_v35, 1  ;;  %v623_v42 = vsel %vm605_vm12, %v621_v36, %v622_v37  ;;  %v3605_v26 = vpack.c.bf16 %v522_v24, %v520_v23  ;;  %v526_v33 = vld [vmem:[#allocation7 + $0xb8] sm:$0xff]  ;;  %v3607_v35 = vpack.c.bf16 %v521_v28, %v519_v27  ;;  %v544_v5 = vld [vmem:[#allocation7 + $0x148] sm:$0xff]  ;;  %v545_v10 = vld [vmem:[#allocation7 + $0x150] sm:$0xff] }
 0x2d7   :  { %v584_v43 = vld [vmem:[#allocation2 + $0x78] sm:$0x1]  ;;  %v492_v34 = vld [vmem:[#allocation2 + $0x8] sm:$0xff]  ;;  %v3609_v36 = vpack.c.bf16 %v526_v33, %v524_v30  ;;  %v3631_v13 = vpack.c.bf16 %v545_v10, %v543_v9  ;;  %v1475_v53 = vld [vmem:[#allocation10 + $0x50] sm:$0xff] }
 0x2d8   :  { %v626_v41 = vsel %vm605_vm12, %v624_v38, %v625_v39  ;;  %v630_v45 = vrot.slane %v584_v43, 1  ;;  %v4752_v4 = vld [vmem:[#allocation2 + $0x70] sm:$0xff]  ;;  %v525_v38 = vld [vmem:[#allocation7 + $0xb0] sm:$0xff]  ;;  %v556_v23 = vld [vmem:[#allocation7 + $0x1a8] sm:$0xff] }
 0x2d9   :  { %801 = vmatprep.mubr.f32.mxu1 %v626_v41  ;;  %v628_v12 = vrot.slane %v4752_v4, 1  ;;  %v530_v41 = vld [vmem:[#allocation7 + $0xd8] sm:$0xff]  ;;  %v1466_v27 = vld [vmem:[#allocation10 + $0x8] sm:$0xff] }
 0x2da   :  { %802 = vmatmul.mubr.f32.gmra.mrb[12].mxu1 %v623_v42  ;;  %v631_v52 = vsel %vm605_vm12, %v622_v37, %v630_v45  ;;  %v523_v37 = vld [vmem:[#allocation7 + $0xa0] sm:$0xff]  ;;  %v529_v45 = vld [vmem:[#allocation7 + $0xd0] sm:$0xff]  ;;  %v558_v24 = vld [vmem:[#allocation7 + $0x1b8] sm:$0xff] }
 0x2db   :  { %v629_v21 = vsel %vm605_vm12, %v627_v16, %v628_v12  ;;  %v3611_v42 = vpack.c.bf16 %v525_v38, %v523_v37  ;;  %v549_v16 = vld [vmem:[#allocation7 + $0x170] sm:$0xff]  ;;  %v1468_v28 = vld [vmem:[#allocation10 + $0x18] sm:$0xff]  ;;  %v3641_v37 = vpack.c.bf16 %v558_v24, %v556_v23  ;;  %v568_v10 = vld [vmem:[#allocation7 + $0x208] sm:$0xff] }
 0x2dc   :  { %v586_v15 = vld [vmem:[#allocation2 + $0x88] sm:$0x1]  ;;  %v4764_v33 = vpack.c.bf16 %v1468_v28, %v1466_v27  ;;  %v1485_v27 = vld [vmem:[#allocation10 + $0xa0] sm:$0xff]  ;;  %v1487_v28 = vld [vmem:[#allocation10 + $0xb0] sm:$0xff] }
 0x2dd   :  { %v585_v44 = vld [vmem:[#allocation2 + $0x80] sm:$0x1]  ;;  %v634_v22 = vrot.slane %v586_v15, 1  ;;  %v547_v15 = vld [vmem:[#allocation7 + $0x160] sm:$0xff]  ;;  %v1484_v9 = vld [vmem:[#allocation10 + $0x98] sm:$0xff] }
 0x2de   :  { %v632_v46 = vrot.slane %v585_v44, 1  ;;  %v527_v44 = vld [vmem:[#allocation7 + $0xc0] sm:$0xff]  ;;  %v3635_v19 = vpack.c.bf16 %v549_v16, %v547_v15  ;;  %3734 = vmatprep.subr.bf16.mxu0 %v4764_v33  ;;  %v1483_v16 = vld [vmem:[#allocation10 + $0x90] sm:$0xff]  ;;  %v1488_v23 = vld [vmem:[#allocation10 + $0xb8] sm:$0xff] }
 0x2df   :  { %v635_v29 = vsel %vm605_vm12, %v628_v12, %v634_v22  ;;  %v3615_v49 = vpack.c.bf16 %v529_v45, %v527_v44  ;;  %v550_v12 = vld [vmem:[#allocation7 + $0x178] sm:$0xff]  ;;  %v553_v22 = vld [vmem:[#allocation7 + $0x190] sm:$0xff]  ;;  %v560_v44 = vld [vmem:[#allocation7 + $0x1c8] sm:$0xff] }
 0x2e0   :  { %v633_v48 = vsel %vm605_vm12, %v625_v39, %v632_v46  ;;  %v528_v39 = vld [vmem:[#allocation7 + $0xc8] sm:$0xff]  ;;  %v562_v45 = vld [vmem:[#allocation7 + $0x1d8] sm:$0xff]  ;;  %v1481_v15 = vld [vmem:[#allocation10 + $0x80] sm:$0xff] }
 0x2e1   :  { %807 = vmatprep.mubr.f32.mxu1 %v633_v48  ;;  %v3613_v43 = vpack.c.bf16 %v530_v41, %v528_v39  ;;  %v532_v46 = vld [vmem:[#allocation7 + $0xe8] sm:$0xff]  ;;  %v534_v48 = vld [vmem:[#allocation7 + $0xf8] sm:$0xff]  ;;  %v1469_v41 = vld [vmem:[#allocation10 + $0x20] sm:$0xff]  ;;  %v3645_v54 = vpack.c.bf16 %v562_v45, %v560_v44  ;;  %v4790_v24 = vpack.c.bf16 %v1483_v16, %v1481_v15 }
 0x2e2   :  { %808 = vmatmul.mubr.f32.gmra.mrb[14].mxu1 %v631_v52  ;;  %v3617_v50 = vpack.c.bf16 %v534_v48, %v532_v46  ;;  %v533_v52 = vld [vmem:[#allocation7 + $0xf0] sm:$0xff]  ;;  %v1476_v46 = vld [vmem:[#allocation10 + $0x58] sm:$0xff]  ;;  %v1489_v45 = vld [vmem:[#allocation10 + $0xc0] sm:$0xff] }
 0x2e3   :  { %878 = vmatprep.mubr.f32.mxu1 %v5548_v40  ;;  %v3619_v55 = vpack.c.bf16 %v533_v52, %v531_v51  ;;  %v1473_v52 = vld [vmem:[#allocation10 + $0x40] sm:$0xff] }
 0x2e6   :  { %3377 = vmatmul.mubr.msk.f32.vlgmr.msra.gmra.mrb[8].mxu1 %vm266_vm0, %v614_v62  ;;  %v3625_v62 = vpack.c.bf16 %v542_v60, %v540_v59  ;;  %v566_v59 = vld [vmem:[#allocation7 + $0x1f8] sm:$0xff]  ;;  %v4778_v60 = vpack.c.bf16 %v1475_v53, %v1473_v52  ;;  %v1494_v52 = vld [vmem:[#allocation10 + $0xe8] sm:$0xff] }
 0x2e7   :  { %3592 = vmatpush1.bf16.msra.mxu1 %v3591_v57  ;;  %884 = vmatprep.mubr.f32.mxu1 %v5548_v40  ;;  %v535_v57 = vld [vmem:[#allocation7 + $0x100] sm:$0xff]  ;;  %v1496_v53 = vld [vmem:[#allocation10 + $0xf8] sm:$0xff] }
 0x2e8   :  { %3594 = vmatprep.subr.bf16.mxu1 %v3593_v58  ;;  %v537_v58 = vld [vmem:[#allocation7 + $0x110] sm:$0xff] }
 0x2e9   :  { %v3623_v61 = vpack.c.bf16 %v537_v58, %v535_v57  ;;  %v1480_v57 = vld [vmem:[#allocation10 + $0x78] sm:$0xff]  ;;  %v564_v58 = vld [vmem:[#allocation7 + $0x1e8] sm:$0xff] }
 0x2ea   :  { %3378 = vmatmul.mubr.msk.f32.gmra.mrb[10].mxu1 %vm266_vm0, %v620_v11  ;;  %v548_v11 = vld [vmem:[#allocation7 + $0x168] sm:$0xff] }
 0x2eb   :  { %3596 = vmatpush1.bf16.msra.mxu1 %v3595_v6  ;;  %890 = vmatprep.mubr.f32.mxu1 %v5548_v40  ;;  %v546_v6 = vld [vmem:[#allocation7 + $0x158] sm:$0xff]  ;;  %v3633_v14 = vpack.c.bf16 %v550_v12, %v548_v11 }
 0x2ec   :  { %3598 = vmatprep.subr.bf16.mxu1 %v3597_v7  ;;  %v3627_v7 = vpack.c.bf16 %v541_v3, %v539_v0  ;;  %v3629_v8 = vpack.c.bf16 %v546_v6, %v544_v5  ;;  %v1477_v3 = vld [vmem:[#allocation10 + $0x60] sm:$0xff]  ;;  %v1479_v5 = vld [vmem:[#allocation10 + $0x70] sm:$0xff]  ;;  %v3649_v6 = vpack.c.bf16 %v566_v59, %v564_v58  ;;  %v570_v11 = vld [vmem:[#allocation7 + $0x218] sm:$0xff] }
 0x2ed   :  { %v4784_v12 = vpack.c.bf16 %v1479_v5, %v1477_v3  ;;  %v1495_v58 = vld [vmem:[#allocation10 + $0xf0] sm:$0xff]  ;;  %v1498_v59 = vld [vmem:[#allocation10 + $0x108] sm:$0xff] }
 0x2ee   :  { %3379 = vmatmul.mubr.msk.f32.gmra.mrb[12].mxu1 %vm266_vm0, %v629_v21  ;;  %v551_v21 = vld [vmem:[#allocation7 + $0x180] sm:$0xff] }
 0x2ef   :  { %3600 = vmatpush1.bf16.msra.mxu1 %v3599_v17  ;;  %896 = vmatprep.mubr.f32.mxu1 %v5548_v40  ;;  %v552_v17 = vld [vmem:[#allocation7 + $0x188] sm:$0xff]  ;;  %v3639_v30 = vpack.c.bf16 %v553_v22, %v551_v21  ;;  %v574_v21 = vld [vmem:[#allocation7 + $0x238] sm:$0xff] }
 0x2f0   :  { %3602 = vmatprep.subr.bf16.mxu1 %v3601_v18  ;;  %v554_v18 = vld [vmem:[#allocation7 + $0x198] sm:$0xff]  ;;  %v1486_v22 = vld [vmem:[#allocation10 + $0xa8] sm:$0xff] }
 0x2f1   :  { %v3637_v20 = vpack.c.bf16 %v554_v18, %v552_v17  ;;  %v3653_v17 = vpack.c.bf16 %v570_v11, %v568_v10  ;;  %v567_v18 = vld [vmem:[#allocation7 + $0x200] sm:$0xff]  ;;  %v1160_v10 = vld [vmem:[#allocation7 + $0x4a8] sm:$0xff]  ;;  %v1162_v11 = vld [vmem:[#allocation7 + $0x4b8] sm:$0xff] }
 0x2f2   :  { %3380 = vmatmul.mubr.msk.f32.gmra.mrb[14].mxu1 %vm266_vm0, %v635_v29  ;;  %v1465_v29 = vld [vmem:[#allocation10] sm:$0xff]  ;;  %v3665_v16 = vpack.c.bf16 %v1162_v11, %v1160_v10 }
 0x2f3   :  { %3604 = vmatpush1.bf16.msra.mxu1 %v3603_v25  ;;  %977 = vmatprep.mubr.f32.mxu1 %v492_v34  ;;  %v555_v25 = vld [vmem:[#allocation7 + $0x1a0] sm:$0xff]  ;;  %v1467_v34 = vld [vmem:[#allocation10 + $0x10] sm:$0xff] }
 0x2f4   :  { %3606 = vmatprep.subr.bf16.mxu1 %v3605_v26  ;;  %v557_v26 = vld [vmem:[#allocation7 + $0x1b0] sm:$0xff]  ;;  %v4766_v38 = vpack.c.bf16 %v1467_v34, %v1465_v29  ;;  %v1156_v34 = vld [vmem:[#allocation7 + $0x488] sm:$0xff] }
 0x2f6   :  { %3736 = vmatpush1.bf16.msra.mxu0 %v4766_v38 }
 0x2f7   :  { %3608 = vmatpush1.bf16.msra.mxu1 %v3607_v35  ;;  %v1470_v35 = vld [vmem:[#allocation10 + $0x28] sm:$0xff] }
 0x2f8   :  { %3610 = vmatprep.subr.bf16.mxu1 %v3609_v36  ;;  %v1472_v36 = vld [vmem:[#allocation10 + $0x38] sm:$0xff] }
 0x2f9   :  { %v4768_v39 = vpack.c.bf16 %v1472_v36, %v1470_v35  ;;  %v1158_v35 = vld [vmem:[#allocation7 + $0x498] sm:$0xff]  ;;  %v4793_v36 = vpack.c.bf16 %v1488_v23, %v1486_v22 }
 0x2fb   :  { %3612 = vmatpush1.bf16.msra.mxu1 %v3611_v42  ;;  %v1471_v42 = vld [vmem:[#allocation10 + $0x30] sm:$0xff]  ;;  %3738 = vmatprep.subr.bf16.mxu0 %v4768_v39 }
 0x2fc   :  { %3614 = vmatprep.subr.bf16.mxu1 %v3613_v43  ;;  %v1474_v43 = vld [vmem:[#allocation10 + $0x48] sm:$0xff]  ;;  %v4772_v48 = vpack.c.bf16 %v1471_v42, %v1469_v41  ;;  %v1492_v42 = vld [vmem:[#allocation10 + $0xd8] sm:$0xff] }
 0x2fd   :  { %v4775_v51 = vpack.c.bf16 %v1476_v46, %v1474_v43  ;;  %v1490_v41 = vld [vmem:[#allocation10 + $0xc8] sm:$0xff]  ;;  %v4796_v43 = vpack.c.bf16 %v1487_v28, %v1485_v27  ;;  %v1491_v46 = vld [vmem:[#allocation10 + $0xd0] sm:$0xff]  ;;  %v1170_v28 = vld [vmem:[#allocation7 + $0x4f8] sm:$0xff] }
 0x2fe   :  { %3740 = vmatpush1.bf16.msra.mxu0 %v4772_v48  ;;  %v1168_v27 = vld [vmem:[#allocation7 + $0x4e8] sm:$0xff] }
 0x2ff   :  { %3616 = vmatpush1.bf16.msra.mxu1 %v3615_v49  ;;  %v3643_v49 = vpack.c.bf16 %v557_v26, %v555_v25  ;;  %3742 = vmatprep.subr.bf16.mxu0 %v4775_v51  ;;  %v571_v26 = vld [vmem:[#allocation7 + $0x220] sm:$0xff] }
 0x300   :  { %3618 = vmatprep.subr.bf16.mxu1 %v3617_v50  ;;  %v559_v50 = vld [vmem:[#allocation7 + $0x1c0] sm:$0xff] }
 0x302   :  { %3744 = vmatpush1.bf16.msra.mxu0 %v4778_v60 }
 0x303   :  { %3620 = vmatpush1.bf16.msra.mxu1 %v3619_v55  ;;  %v561_v55 = vld [vmem:[#allocation7 + $0x1d0] sm:$0xff] }
 0x304   :  { %3622 = vmatprep.subr.bf16.mxu1 %v3621_v56  ;;  %v1478_v56 = vld [vmem:[#allocation10 + $0x68] sm:$0xff] }
 0x305   :  { %v4781_v0 = vpack.c.bf16 %v1480_v57, %v1478_v56  ;;  %v4806_v56 = vpack.c.bf16 %v1496_v53, %v1494_v52  ;;  %v1493_v57 = vld [vmem:[#allocation10 + $0xe0] sm:$0xff] }
 0x306   :  { %v4810_v3 = vpack.c.bf16 %v1495_v58, %v1493_v57  ;;  %v1171_v53 = vld [vmem:[#allocation7 + $0x500] sm:$0xff]  ;;  %v1176_v57 = vld [vmem:[#allocation7 + $0x528] sm:$0xff]  ;;  %v1178_v58 = vld [vmem:[#allocation7 + $0x538] sm:$0xff] }
 0x307   :  { %3624 = vmatpush1.bf16.msra.mxu1 %v3623_v61  ;;  %v3647_v61 = vpack.c.bf16 %v561_v55, %v559_v50  ;;  %3746 = vmatprep.subr.bf16.mxu0 %v4781_v0  ;;  %v4800_v50 = vpack.c.bf16 %v1492_v42, %v1490_v41  ;;  %v4804_v55 = vpack.c.bf16 %v1491_v46, %v1489_v45  ;;  %v499_v41 = vld [vmem:[#allocation2 + $0x58] sm:$0xff]  ;;  %v1120_v46 = vrot.slane %v4719_v1, 2 }
 0x308   :  { %3626 = vmatprep.subr.bf16.mxu1 %v3625_v62  ;;  %v563_v62 = vld [vmem:[#allocation7 + $0x1e0] sm:$0xff]  ;;  %3748 = vmatpush1.bf16.msra.mxu0 %v4784_v12  ;;  %v1172_v42 = vld [vmem:[#allocation7 + $0x508] sm:$0xff] }
 0x30b   :  { %3628 = vmatpush1.bf16.msra.mxu1 %v3627_v7  ;;  %v565_v7 = vld [vmem:[#allocation7 + $0x1f0] sm:$0xff] }
 0x30c   :  { %3630 = vmatprep.subr.bf16.mxu1 %v3629_v8  ;;  %v1482_v8 = vld [vmem:[#allocation10 + $0x88] sm:$0xff] }
 0x30f   :  { %3632 = vmatpush1.bf16.msra.mxu1 %v3631_v13  ;;  %v3651_v13 = vpack.c.bf16 %v565_v7, %v563_v62  ;;  %v497_v62 = vld [vmem:[#allocation2 + $0x48] sm:$0xff]  ;;  %v1499_v7 = vld [vmem:[#allocation10 + $0x110] sm:$0xff] }
 0x310   :  { %3634 = vmatprep.subr.bf16.mxu1 %v3633_v14  ;;  %v4787_v14 = vpack.c.bf16 %v1484_v9, %v1482_v8  ;;  %v1155_v8 = vld [vmem:[#allocation7 + $0x480] sm:$0xff]  ;;  %v1157_v9 = vld [vmem:[#allocation7 + $0x490] sm:$0xff] }
 0x311   :  { %v3663_v15 = vpack.c.bf16 %v1157_v9, %v1155_v8  ;;  %v1180_v8 = vld [vmem:[#allocation7 + $0x548] sm:$0xff]  ;;  %v1182_v9 = vld [vmem:[#allocation7 + $0x558] sm:$0xff] }
 0x312   :  { %3750 = vmatprep.subr.bf16.mxu0 %v4787_v14  ;;  %v3685_v11 = vpack.c.bf16 %v1182_v9, %v1180_v8  ;;  %v1206_v8 = vld [vmem:[#allocation7 + $0x618] sm:$0xff] }
 0x313   :  { %3636 = vmatpush1.bf16.msra.mxu1 %v3635_v19  ;;  %v569_v19 = vld [vmem:[#allocation7 + $0x210] sm:$0xff]  ;;  %3752 = vmatpush1.bf16.msra.mxu0 %v4790_v24 }
 0x314   :  { %3638 = vmatprep.subr.bf16.mxu1 %v3637_v20  ;;  %v572_v20 = vld [vmem:[#allocation7 + $0x228] sm:$0xff]  ;;  %v3655_v25 = vpack.c.bf16 %v569_v19, %v567_v18  ;;  %3754 = vmatprep.subr.bf16.mxu0 %v4793_v36  ;;  %v1161_v18 = vld [vmem:[#allocation7 + $0x4b0] sm:$0xff]  ;;  %v493_v19 = vld [vmem:[#allocation2 + $0x10] sm:$0xff] }
 0x315   :  { %v3657_v29 = vpack.c.bf16 %v574_v21, %v572_v20  ;;  %v1164_v20 = vld [vmem:[#allocation7 + $0x4c8] sm:$0xff]  ;;  %v1166_v21 = vld [vmem:[#allocation7 + $0x4d8] sm:$0xff] }
 0x316   :  { %v3669_v23 = vpack.c.bf16 %v1166_v21, %v1164_v20  ;;  %v1183_v21 = vld [vmem:[#allocation7 + $0x560] sm:$0xff] }
 0x317   :  { %3640 = vmatpush1.bf16.msra.mxu1 %v3639_v30  ;;  %v573_v30 = vld [vmem:[#allocation7 + $0x230] sm:$0xff]  ;;  %3756 = vmatpush1.bf16.msra.mxu0 %v4796_v43 }
 0x318   :  { %3642 = vmatprep.subr.bf16.mxu1 %v3641_v37  ;;  %v491_v37 = vld [vmem:[#allocation2] sm:$0xff]  ;;  %v3659_v44 = vpack.c.bf16 %v573_v30, %v571_v26  ;;  %3758 = vmatprep.subr.bf16.mxu0 %v4800_v50  ;;  %v1092_v30 = vld [vmem:[#allocation2 + $0x8] sm:$0xfc] }
 0x319   :  { %v1165_v26 = vld [vmem:[#allocation7 + $0x4d0] sm:$0xff]  ;;  %v1119_v45 = vrot.slane %v1092_v30, 2  ;;  %v1192_v30 = vld [vmem:[#allocation7 + $0x5a8] sm:$0xff] }
 0x31b   :  { %3644 = vmatpush1.bf16.msra.mxu1 %v3643_v49  ;;  %v3661_v49 = vpack.c.bf16 %v1158_v35, %v1156_v34  ;;  %3760 = vmatpush1.bf16.msra.mxu0 %v4804_v55  ;;  %v3673_v34 = vpack.c.bf16 %v1170_v28, %v1168_v27  ;;  %v1167_v35 = vld [vmem:[#allocation7 + $0x4e0] sm:$0xff] }
 0x31c   :  { %3646 = vmatprep.subr.bf16.mxu1 %v3645_v54  ;;  %v498_v54 = vld [vmem:[#allocation2 + $0x50] sm:$0xff]  ;;  %3762 = vmatprep.subr.bf16.mxu0 %v4806_v56 }
 0x31d   :  { %v1187_v28 = vld [vmem:[#allocation7 + $0x580] sm:$0xff] }
 0x31f   :  { %3648 = vmatpush1.bf16.msra.mxu1 %v3647_v61  ;;  %v1500_v61 = vld [vmem:[#allocation10 + $0x118] sm:$0xff]  ;;  %3764 = vmatpush1.bf16.msra.mxu0 %v4810_v3 }
 0x320   :  { %3650 = vmatprep.subr.bf16.mxu1 %v3649_v6  ;;  %v4814_v5 = vpack.c.bf16 %v1500_v61, %v1498_v59  ;;  %v1497_v6 = vld [vmem:[#allocation10 + $0x100] sm:$0xff]  ;;  %v1121_v59 = vsel %vm1115_vm13, %v1119_v45, %v1120_v46  ;;  %v1198_v45 = vld [vmem:[#allocation7 + $0x5d8] sm:$0xff] }
 0x322   :  { %3766 = vmatprep.subr.bf16.mxu0 %v4814_v5 }
 0x323   :  { %3652 = vmatpush1.bf16.msra.mxu1 %v3651_v13  ;;  %v4818_v13 = vpack.c.bf16 %v1499_v7, %v1497_v6  ;;  %v1175_v6 = vld [vmem:[#allocation7 + $0x520] sm:$0xff]  ;;  %v1177_v7 = vld [vmem:[#allocation7 + $0x530] sm:$0xff] }
 0x324   :  { %3654 = vmatprep.subr.bf16.mxu1 %v3653_v17  ;;  %v1159_v17 = vld [vmem:[#allocation7 + $0x4a0] sm:$0xff]  ;;  %v3683_v10 = vpack.c.bf16 %v1177_v7, %v1175_v6  ;;  %v1201_v6 = vld [vmem:[#allocation7 + $0x5f0] sm:$0xff]  ;;  %v1204_v7 = vld [vmem:[#allocation7 + $0x608] sm:$0xff] }
 0x325   :  { %3768 = vmatpush1.bf16.msra.mxu0 %v4818_v13  ;;  %v3667_v22 = vpack.c.bf16 %v1161_v18, %v1159_v17  ;;  %v1184_v17 = vld [vmem:[#allocation7 + $0x568] sm:$0xff]  ;;  %v1186_v18 = vld [vmem:[#allocation7 + $0x578] sm:$0xff] }
 0x326   :  { %978 = vmatmul.mubr.f32.vlgmr.msra.gmra.mrb[8].mxu1 %v491_v37  ;;  %v1169_v37 = vld [vmem:[#allocation7 + $0x4f0] sm:$0xff]  ;;  %v3689_v20 = vpack.c.bf16 %v1186_v18, %v1184_v17  ;;  %v1210_v17 = vld [vmem:[#allocation7 + $0x638] sm:$0xff] }
 0x327   :  { %983 = vmatprep.mubr.f32.mxu1 %v4719_v1  ;;  %3656 = vmatpush1.bf16.msra.mxu1 %v3655_v25  ;;  %v1163_v25 = vld [vmem:[#allocation7 + $0x4c0] sm:$0xff] }
 0x328   :  { %3658 = vmatprep.subr.bf16.mxu1 %v3657_v29  ;;  %v3671_v29 = vpack.c.bf16 %v1165_v26, %v1163_v25  ;;  %v1190_v25 = vld [vmem:[#allocation7 + $0x598] sm:$0xff] }
 0x32a   :  { %984 = vmatmul.mubr.f32.gmra.mrb[10].mxu1 %v4716_v63 }
 0x32b   :  { %989 = vmatprep.mubr.f32.mxu1 %v498_v54  ;;  %3660 = vmatpush1.bf16.msra.mxu1 %v3659_v44  ;;  %v1174_v44 = vld [vmem:[#allocation7 + $0x518] sm:$0xff]  ;;  %v1173_v54 = vld [vmem:[#allocation7 + $0x510] sm:$0xff] }
 0x32c   :  { %3662 = vmatprep.subr.bf16.mxu1 %v3661_v49  ;;  %v3675_v49 = vpack.c.bf16 %v1169_v37, %v1167_v35  ;;  %v3677_v52 = vpack.c.bf16 %v1174_v44, %v1172_v42  ;;  %v3679_v61 = vpack.c.bf16 %v1173_v54, %v1171_v53  ;;  %v1193_v42 = vld [vmem:[#allocation7 + $0x5b0] sm:$0xff]  ;;  %v1196_v44 = vld [vmem:[#allocation7 + $0x5c8] sm:$0xff]  ;;  %v1195_v53 = vld [vmem:[#allocation7 + $0x5c0] sm:$0xff] }
 0x32d   :  { %v1197_v54 = vld [vmem:[#allocation7 + $0x5d0] sm:$0xff] }
 0x32e   :  { %990 = vmatmul.mubr.f32.gmra.mrb[12].mxu1 %v497_v62  ;;  %v3681_v62 = vpack.c.bf16 %v1178_v58, %v1176_v57  ;;  %v1200_v57 = vld [vmem:[#allocation7 + $0x5e8] sm:$0xff]  ;;  %v1202_v58 = vld [vmem:[#allocation7 + $0x5f8] sm:$0xff] }
 0x32f   :  { %995 = vmatprep.mubr.f32.mxu1 %v4734_v31 }
 0x332   :  { %996 = vmatmul.mubr.f32.gmra.mrb[14].mxu1 %v4736_v32 }
 0x333   :  { %1066 = vmatprep.mubr.f32.mxu1 %v5548_v40 }
 0x336   :  { %3381 = vmatmul.mubr.msk.f32.vlgmr.msra.gmra.mrb[8].mxu1 %vm266_vm0, %v493_v19 }
 0x337   :  { %3664 = vmatpush1.bf16.msra.mxu1 %v3663_v15  ;;  %1072 = vmatprep.mubr.f32.mxu1 %v5548_v40  ;;  %v1179_v15 = vld [vmem:[#allocation7 + $0x540] sm:$0xff] }
 0x338   :  { %3666 = vmatprep.subr.bf16.mxu1 %v3665_v16  ;;  %v1181_v16 = vld [vmem:[#allocation7 + $0x550] sm:$0xff] }
 0x339   :  { %v3687_v19 = vpack.c.bf16 %v1181_v16, %v1179_v15  ;;  %v1205_v15 = vld [vmem:[#allocation7 + $0x610] sm:$0xff]  ;;  %v1208_v16 = vld [vmem:[#allocation7 + $0x628] sm:$0xff] }
 0x33a   :  { %3382 = vmatmul.mubr.msk.f32.gmra.mrb[10].mxu1 %vm266_vm0, %v4744_v47 }
 0x33b   :  { %3668 = vmatpush1.bf16.msra.mxu1 %v3667_v22  ;;  %1078 = vmatprep.mubr.f32.mxu1 %v5548_v40  ;;  %v1185_v22 = vld [vmem:[#allocation7 + $0x570] sm:$0xff] }
 0x33c   :  { %3670 = vmatprep.subr.bf16.mxu1 %v3669_v23  ;;  %v1188_v23 = vld [vmem:[#allocation7 + $0x588] sm:$0xff]  ;;  %v3691_v26 = vpack.c.bf16 %v1185_v22, %v1183_v21  ;;  %v1209_v21 = vld [vmem:[#allocation7 + $0x630] sm:$0xff] }
 0x33d   :  { %v3693_v27 = vpack.c.bf16 %v1190_v25, %v1188_v23  ;;  %v1212_v22 = vld [vmem:[#allocation7 + $0x648] sm:$0xff]  ;;  %v1214_v23 = vld [vmem:[#allocation7 + $0x658] sm:$0xff] }
 0x33e   :  { %3383 = vmatmul.mubr.msk.f32.gmra.mrb[12].mxu1 %vm266_vm0, %v499_v41  ;;  %v1191_v41 = vld [vmem:[#allocation7 + $0x5a0] sm:$0xff] }
 0x33f   :  { %3672 = vmatpush1.bf16.msra.mxu1 %v3671_v29  ;;  %1084 = vmatprep.mubr.f32.mxu1 %v5548_v40  ;;  %v1189_v29 = vld [vmem:[#allocation7 + $0x590] sm:$0xff] }
 0x340   :  { %3674 = vmatprep.subr.bf16.mxu1 %v3673_v34  ;;  %v1194_v34 = vld [vmem:[#allocation7 + $0x5b8] sm:$0xff]  ;;  %v3695_v35 = vpack.c.bf16 %v1189_v29, %v1187_v28  ;;  %v1213_v28 = vld [vmem:[#allocation7 + $0x650] sm:$0xff]  ;;  %v1216_v29 = vld [vmem:[#allocation7 + $0x668] sm:$0xff] }
 0x341   :  { %v3697_v37 = vpack.c.bf16 %v1194_v34, %v1192_v30  ;;  %v1218_v30 = vld [vmem:[#allocation7 + $0x678] sm:$0xff] }
 0x342   :  { %3384 = vmatmul.mubr.msk.f32.gmra.mrb[14].mxu1 %vm266_vm0, %v4752_v4 }
 0x343   :  { %3676 = vmatpush1.bf16.msra.mxu1 %v3675_v49  ;;  %1299 = vmatprep.mubr.f32.mxu1 %v1121_v59  ;;  %v3699_v49 = vpack.c.bf16 %v1193_v42, %v1191_v41  ;;  %v3703_v59 = vpack.c.bf16 %v1197_v54, %v1195_v53  ;;  %v1217_v41 = vld [vmem:[#allocation7 + $0x670] sm:$0xff]  ;;  %v1220_v42 = vld [vmem:[#allocation7 + $0x688] sm:$0xff]  ;;  %v1219_v54 = vld [vmem:[#allocation7 + $0x680] sm:$0xff] }
 0x344   :  { %3678 = vmatprep.subr.bf16.mxu1 %v3677_v52  ;;  %v3701_v52 = vpack.c.bf16 %v1198_v45, %v1196_v44  ;;  %v1222_v44 = vld [vmem:[#allocation7 + $0x698] sm:$0xff] }
 0x345   :  { %v3725_v53 = vpack.c.bf16 %v1222_v44, %v1220_v42  ;;  %v1099_v44 = vld [vmem:[#allocation2 + $0x58] sm:$0xfc] }
 0x347   :  { %3680 = vmatpush1.bf16.msra.mxu1 %v3679_v61  ;;  %v3705_v61 = vpack.c.bf16 %v1202_v58, %v1200_v57  ;;  %v1221_v57 = vld [vmem:[#allocation7 + $0x690] sm:$0xff]  ;;  %v1117_v58 = vrot.slane %v4716_v63, 2 }
 0x348   :  { %3682 = vmatprep.subr.bf16.mxu1 %v3681_v62  ;;  %v1199_v62 = vld [vmem:[#allocation7 + $0x5e0] sm:$0xff] }
 0x349   :  { %v3707_v9 = vpack.c.bf16 %v1201_v6, %v1199_v62  ;;  %v1094_v6 = vld [vmem:[#allocation2 + $0x30] sm:$0x3] }
 0x34b   :  { %3684 = vmatpush1.bf16.msra.mxu1 %v3683_v10  ;;  %v3709_v10 = vpack.c.bf16 %v1206_v8, %v1204_v7  ;;  %v3727_v8 = vpack.c.bf16 %v1221_v57, %v1219_v54 }
 0x34c   :  { %3686 = vmatprep.subr.bf16.mxu1 %v3685_v11  ;;  %v1203_v11 = vld [vmem:[#allocation7 + $0x600] sm:$0xff] }
 0x34d   :  { %v3711_v18 = vpack.c.bf16 %v1205_v15, %v1203_v11  ;;  %v1223_v11 = vld [vmem:[#allocation7 + $0x6a0] sm:$0xff]  ;;  %v1225_v15 = vld [vmem:[#allocation7 + $0x6b0] sm:$0xff] }
 0x34f   :  { %3688 = vmatpush1.bf16.msra.mxu1 %v3687_v19  ;;  %v3713_v19 = vpack.c.bf16 %v1210_v17, %v1208_v16  ;;  %v1125_v17 = vrot.slane %v1094_v6, 2 }
 0x350   :  { %3690 = vmatprep.subr.bf16.mxu1 %v3689_v20  ;;  %v1207_v20 = vld [vmem:[#allocation7 + $0x620] sm:$0xff] }
 0x351   :  { %v3715_v25 = vpack.c.bf16 %v1209_v21, %v1207_v20  ;;  %v1101_v20 = vld [vmem:[#allocation2 + $0x80] sm:$0x3]  ;;  %v3731_v21 = vpack.c.bf16 %v1225_v15, %v1223_v11 }
 0x352   :  { %v1142_v1 = vrot.slane %v1101_v20, 2  ;;  %v1507_v11 = vld [vmem:[#allocation10 + $0x150] sm:$0xff] }
 0x353   :  { %3692 = vmatpush1.bf16.msra.mxu1 %v3691_v26  ;;  %v3717_v26 = vpack.c.bf16 %v1214_v23, %v1212_v22  ;;  %v1135_v22 = vrot.slane %v4734_v31, 2  ;;  %v1126_v23 = vsel %vm1115_vm13, %v1117_v58, %v1125_v17  ;;  %v1093_v31 = vld [vmem:[#allocation2 + $0x10] sm:$0xfc]  ;;  %v1512_v17 = vld [vmem:[#allocation10 + $0x178] sm:$0xff] }
 0x354   :  { %3694 = vmatprep.subr.bf16.mxu1 %v3693_v27  ;;  %v1211_v27 = vld [vmem:[#allocation7 + $0x640] sm:$0xff] }
 0x355   :  { %v3719_v34 = vpack.c.bf16 %v1213_v28, %v1211_v27  ;;  %v1100_v28 = vld [vmem:[#allocation2 + $0x78] sm:$0x3] }
 0x357   :  { %3696 = vmatpush1.bf16.msra.mxu1 %v3695_v35  ;;  %v3721_v35 = vpack.c.bf16 %v1218_v30, %v1216_v29  ;;  %v1140_v29 = vrot.slane %v1100_v28, 2  ;;  %v1143_v30 = vsel %vm1115_vm13, %v1135_v22, %v1142_v1  ;;  %v1518_v1 = vld [vmem:[#allocation10 + $0x1a8] sm:$0xff]  ;;  %v1520_v28 = vld [vmem:[#allocation10 + $0x1b8] sm:$0xff] }
 0x358   :  { %3698 = vmatprep.subr.bf16.mxu1 %v3697_v37  ;;  %v1215_v37 = vld [vmem:[#allocation7 + $0x660] sm:$0xff] }
 0x359   :  { %v3723_v45 = vpack.c.bf16 %v1217_v41, %v1215_v37  ;;  %v1096_v37 = vld [vmem:[#allocation2 + $0x40] sm:$0x3] }
 0x35a   :  { %v1129_v42 = vrot.slane %v1096_v37, 2  ;;  %v1521_v37 = vld [vmem:[#allocation10 + $0x1c0] sm:$0xff] }
 0x35b   :  { %3700 = vmatpush1.bf16.msra.mxu1 %v3699_v49  ;;  %v1095_v49 = vld [vmem:[#allocation2 + $0x38] sm:$0x3] }
 0x35c   :  { %3702 = vmatprep.subr.bf16.mxu1 %v3701_v52  ;;  %v1091_v52 = vld [vmem:[#allocation2] sm:$0xfc]  ;;  %v1127_v62 = vrot.slane %v1095_v49, 2  ;;  %v1138_v49 = vrot.slane %v4752_v4, 2  ;;  %v1502_v4 = vld [vmem:[#allocation10 + $0x128] sm:$0xff] }
 0x35d   :  { %v1116_v7 = vrot.slane %v1091_v52, 2  ;;  %v1137_v52 = vrot.slane %v1099_v44, 2  ;;  %v1526_v44 = vld [vmem:[#allocation10 + $0x1e8] sm:$0xff] }
 0x35e   :  { %v1128_v63 = vsel %vm1115_vm13, %v1120_v46, %v1127_v62  ;;  %v1503_v62 = vld [vmem:[#allocation10 + $0x130] sm:$0xff] }
 0x35f   :  { %3704 = vmatpush1.bf16.msra.mxu1 %v3703_v59  ;;  %v1224_v59 = vld [vmem:[#allocation7 + $0x6a8] sm:$0xff]  ;;  %v1118_v16 = vsel %vm1115_vm13, %v1116_v7, %v1117_v58  ;;  %v1504_v58 = vld [vmem:[#allocation10 + $0x138] sm:$0xff] }
 0x360   :  { %3706 = vmatprep.subr.bf16.mxu1 %v3705_v61  ;;  %v1226_v61 = vld [vmem:[#allocation7 + $0x6b8] sm:$0xff]  ;;  %v1506_v7 = vld [vmem:[#allocation10 + $0x148] sm:$0xff] }
 0x363   :  { %3708 = vmatpush1.bf16.msra.mxu1 %v3707_v9  ;;  %v1098_v9 = vld [vmem:[#allocation2 + $0x50] sm:$0xfc] }
 0x364   :  { %3710 = vmatprep.subr.bf16.mxu1 %v3709_v10  ;;  %v3729_v10 = vpack.c.bf16 %v1226_v61, %v1224_v59  ;;  %v4863_v59 = vpack.c.bf16 %v1504_v58, %v1502_v4  ;;  %v1501_v61 = vld [vmem:[#allocation10 + $0x120] sm:$0xff] }
 0x365   :  { %v4865_v6 = vpack.c.bf16 %v1503_v62, %v1501_v61 }
 0x366   :  { %3770 = vmatprep.subr.bf16.mxu0 %v4863_v59 }
 0x367   :  { %3712 = vmatpush1.bf16.msra.mxu1 %v3711_v18  ;;  %v1134_v18 = vrot.slane %v1098_v9, 2  ;;  %3772 = vmatpush1.bf16.msra.mxu0 %v4865_v6 }
 0x368   :  { %3714 = vmatprep.subr.bf16.mxu1 %v3713_v19  ;;  %v1097_v19 = vld [vmem:[#allocation2 + $0x48] sm:$0xfc] }
 0x369   :  { %v1136_v27 = vsel %vm1115_vm13, %v1134_v18, %v1135_v22  ;;  %v1509_v18 = vld [vmem:[#allocation10 + $0x160] sm:$0xff]  ;;  %v1516_v22 = vld [vmem:[#allocation10 + $0x198] sm:$0xff] }
 0x36b   :  { %3716 = vmatpush1.bf16.msra.mxu1 %v3715_v25  ;;  %v1131_v25 = vrot.slane %v1097_v19, 2  ;;  %v1511_v19 = vld [vmem:[#allocation10 + $0x170] sm:$0xff] }
 0x36c   :  { %3718 = vmatprep.subr.bf16.mxu1 %v3717_v26  ;;  %v1132_v26 = vrot.slane %v4736_v32, 2  ;;  %v1122_v32 = vrot.slane %v1093_v31, 2  ;;  %v4877_v20 = vpack.c.bf16 %v1511_v19, %v1509_v18 }
 0x36e   :  { %v1133_v46 = vsel %vm1115_vm13, %v1131_v25, %v1132_v26  ;;  %v1513_v25 = vld [vmem:[#allocation10 + $0x180] sm:$0xff] }
 0x36f   :  { %3720 = vmatpush1.bf16.msra.mxu1 %v3719_v34  ;;  %v1141_v34 = vsel %vm1115_vm13, %v1132_v26, %v1140_v29  ;;  %v1515_v26 = vld [vmem:[#allocation10 + $0x190] sm:$0xff]  ;;  %v1517_v29 = vld [vmem:[#allocation10 + $0x1a0] sm:$0xff] }
 0x370   :  { %3722 = vmatprep.subr.bf16.mxu1 %v3721_v35  ;;  %v1123_v35 = vrot.slane %v4744_v47, 2  ;;  %v1102_v47 = vld [vmem:[#allocation2 + $0x88] sm:$0x3] }
 0x371   :  { %v1144_v54 = vrot.slane %v1102_v47, 2  ;;  %v1525_v47 = vld [vmem:[#allocation10 + $0x1e0] sm:$0xff] }
 0x372   :  { %v1124_v41 = vsel %vm1115_vm13, %v1122_v32, %v1123_v35 }
 0x373   :  { %3724 = vmatpush1.bf16.msra.mxu1 %v3723_v45  ;;  %v1130_v45 = vsel %vm1115_vm13, %v1123_v35, %v1129_v42  ;;  %v1145_v57 = vsel %vm1115_vm13, %v1138_v49, %v1144_v54  ;;  %v1524_v35 = vld [vmem:[#allocation10 + $0x1d8] sm:$0xff] }
 0x374   :  { %3726 = vmatprep.subr.bf16.mxu1 %v3725_v53  ;;  %v1139_v53 = vsel %vm1115_vm13, %v1137_v52, %v1138_v49  ;;  %v1527_v52 = vld [vmem:[#allocation10 + $0x1f0] sm:$0xff] }
 0x376   :  { %1300 = vmatmul.mubr.f32.vlgmr.msra.gmra.mrb[8].mxu1 %v1118_v16  ;;  %v1510_v16 = vld [vmem:[#allocation10 + $0x168] sm:$0xff] }
 0x377   :  { %1305 = vmatprep.mubr.f32.mxu1 %v1128_v63  ;;  %3728 = vmatpush1.bf16.msra.mxu1 %v3727_v8  ;;  %v1508_v8 = vld [vmem:[#allocation10 + $0x158] sm:$0xff]  ;;  %v4875_v63 = vpack.c.bf16 %v1512_v17, %v1510_v16 }
 0x378   :  { %3730 = vmatprep.subr.bf16.mxu1 %v3729_v10  ;;  %v4869_v9 = vpack.c.bf16 %v1508_v8, %v1506_v7  ;;  %v1505_v10 = vld [vmem:[#allocation10 + $0x140] sm:$0xff] }
 0x379   :  { %v4871_v15 = vpack.c.bf16 %v1507_v11, %v1505_v10 }
 0x37a   :  { %1306 = vmatmul.mubr.f32.gmra.mrb[10].mxu1 %v1126_v23  ;;  %3774 = vmatprep.subr.bf16.mxu0 %v4869_v9 }
 0x37b   :  { %1311 = vmatprep.mubr.f32.mxu1 %v1136_v27  ;;  %3732 = vmatpush1.bf16.msra.mxu1 %v3731_v21  ;;  %v1514_v21 = vld [vmem:[#allocation10 + $0x188] sm:$0xff]  ;;  %v4883_v27 = vpack.c.bf16 %v1515_v26, %v1513_v25 }
 0x37c   :  { %3776 = vmatpush1.bf16.msra.mxu0 %v4871_v15  ;;  %v4881_v23 = vpack.c.bf16 %v1516_v22, %v1514_v21 }
 0x37d   :  { %3778 = vmatprep.subr.bf16.mxu0 %v4875_v63 }
 0x37e   :  { %1312 = vmatmul.mubr.f32.gmra.mrb[12].mxu1 %v1133_v46  ;;  %v4887_v46 = vpack.c.bf16 %v1520_v28, %v1518_v1 }
 0x37f   :  { %1317 = vmatprep.mubr.f32.mxu1 %v1143_v30  ;;  %v1519_v30 = vld [vmem:[#allocation10 + $0x1b0] sm:$0xff] }
 0x380   :  { %3780 = vmatpush1.bf16.msra.mxu0 %v4877_v20  ;;  %v4889_v31 = vpack.c.bf16 %v1519_v30, %v1517_v29 }
 0x381   :  { %3782 = vmatprep.subr.bf16.mxu0 %v4881_v23 }
 0x382   :  { %1318 = vmatmul.mubr.f32.gmra.mrb[14].mxu1 %v1141_v34  ;;  %v1522_v34 = vld [vmem:[#allocation10 + $0x1c8] sm:$0xff] }
 0x383   :  { %1388 = vmatprep.mubr.f32.mxu1 %v5548_v40  ;;  %v4893_v32 = vpack.c.bf16 %v1524_v35, %v1522_v34 }
 0x384   :  { %3784 = vmatpush1.bf16.msra.mxu0 %v4883_v27 }
 0x385   :  { %3786 = vmatprep.subr.bf16.mxu0 %v4887_v46 }
 0x386   :  { %3385 = vmatmul.mubr.msk.f32.vlgmr.msra.gmra.mrb[8].mxu1 %vm266_vm0, %v1124_v41  ;;  %v1523_v41 = vld [vmem:[#allocation10 + $0x1d0] sm:$0xff] }
 0x387   :  { %1394 = vmatprep.mubr.f32.mxu1 %v5548_v40  ;;  %v4895_v42 = vpack.c.bf16 %v1523_v41, %v1521_v37 }
 0x388   :  { %3788 = vmatpush1.bf16.msra.mxu0 %v4889_v31 }
 0x389   :  { %3790 = vmatprep.subr.bf16.mxu0 %v4893_v32 }
 0x38a   :  { %3386 = vmatmul.mubr.msk.f32.gmra.mrb[10].mxu1 %vm266_vm0, %v1130_v45  ;;  %v1528_v45 = vld [vmem:[#allocation10 + $0x1f8] sm:$0xff] }
 0x38b   :  { %1400 = vmatprep.mubr.f32.mxu1 %v5548_v40  ;;  %v4899_v49 = vpack.c.bf16 %v1528_v45, %v1526_v44 }
 0x38c   :  { %3792 = vmatpush1.bf16.msra.mxu0 %v4895_v42 }
 0x38d   :  { %3794 = vmatprep.subr.bf16.mxu0 %v4899_v49 }
 0x38e   :  { %3387 = vmatmul.mubr.msk.f32.gmra.mrb[12].mxu1 %vm266_vm0, %v1139_v53  ;;  %v4901_v53 = vpack.c.bf16 %v1527_v52, %v1525_v47 }
 0x38f   :  { %1406 = vmatprep.mubr.f32.mxu1 %v5548_v40 }
 0x390   :  { %3796 = vmatpush1.bf16.msra.mxu0 %v4901_v53 }
 0x391   :  { %3798 = vmatprep.subr.bf16.mxu0 %v4764_v33 }
 0x392   :  { %3388 = vmatmul.mubr.msk.f32.gmra.mrb[14].mxu1 %vm266_vm0, %v1145_v57 }
 0x393   :  { %2233 = vmatprep.mubr.f32.mxu1 %v5548_v40 }
 0x459   :  { %v4906_v54 = vpop.f32.mrb[8].mxu1 }
 0x45a   :  { %v4908_v57 = vpop.f32.mrb[9].mxu1  ;;  %v1439_v58 = vmul.f32 %v4906_v54, %v4906_v54 }
 0x45b   :  { %v1440_v33 = vmul.f32 %v4908_v57, %v4908_v57 }
 0x45d   :  { %v4910_v4 = vpop.f32.mrb[10].mxu1 }
 0x45e   :  { %v1421_v61 = vadd.f32 %v4910_v4, %v4906_v54  ;;  %v1441_v62 = vmul.f32 %v4910_v4, %v4910_v4  ;;  %v4918_v7 = vpop.f32.mrb[11].mxu1 }
 0x45f   :  { %v1430_v8 = vadd.f32 %v4918_v7, %v4908_v57  ;;  %v1442_v10 = vmul.f32 %v4918_v7, %v4918_v7 }
 0x460   :  { %v1447_v11 = vadd.f32 %v1441_v62, %v1439_v58 }
 0x461   :  { %v1456_v16 = vadd.f32 %v1442_v10, %v1440_v33  ;;  %v4926_v17 = vpop.f32.mrb[12].mxu1 }
 0x462   :  { %v1422_v18 = vadd.f32 %v1421_v61, %v4926_v17  ;;  %v1443_v19 = vmul.f32 %v4926_v17, %v4926_v17  ;;  %v4931_v21 = vpop.f32.mrb[13].mxu1 }
 0x463   :  { %5553 = vst [vmem:[#allocation17_spill] sm:$0xff] %v4931_v21  ;;  %v1431_v22 = vadd.f32 %v1430_v8, %v4931_v21  ;;  %v1444_v25 = vmul.f32 %v4931_v21, %v4931_v21 }
 0x464   :  { %v1448_v26 = vadd.f32 %v1447_v11, %v1443_v19 }
 0x465   :  { %v1457_v1 = vadd.f32 %v1456_v16, %v1444_v25  ;;  %v4936_v28 = vpop.f32.mrb[14].mxu1 }
 0x466   :  { %v1423_v29 = vadd.f32 %v1422_v18, %v4936_v28  ;;  %v1445_v30 = vmul.f32 %v4936_v28, %v4936_v28  ;;  %v4941_v34 = vpop.f32.mrb[15].mxu1 }
 0x467   :  { %v1432_v35 = vadd.f32 %v1431_v22, %v4941_v34  ;;  %v1446_v37 = vmul.f32 %v4941_v34, %v4941_v34 }
 0x468   :  { %v1424_v41 = vrot.slane %v1423_v29, 4  ;;  %v1449_v44 = vadd.f32 %v1448_v26, %v1445_v30  ;;  %v2016_v26 = vld [vmem:[#allocation9 + $0x2c0] sm:$0xff]  ;;  %v2021_v30 = vld [vmem:[#allocation9 + $0x2e8] sm:$0xff] }
 0x469   :  { %v1433_v45 = vrot.slane %v1432_v35, 4  ;;  %v1458_v47 = vadd.f32 %v1457_v1, %v1446_v37 }
 0x46a   :  { %v1425_v52 = vadd.f32 %v1424_v41, %v1423_v29  ;;  %v2018_v29 = vld [vmem:[#allocation9 + $0x2d0] sm:$0xff] }
 0x46b   :  { %v1434_v58 = vadd.f32 %v1433_v45, %v1432_v35  ;;  %v1459_v61 = vrot.slane %v1458_v47, 4  ;;  %v2023_v35 = vld [vmem:[#allocation9 + $0x2f8] sm:$0xff] }
 0x46c   :  { %v1426_v62 = vrot.slane %v1425_v52, 2 }
 0x46d   :  { %v1435_v33 = vrot.slane %v1434_v58, 2  ;;  %v1460_v8 = vadd.f32 %v1459_v61, %v1458_v47 }
 0x46e   :  { %v1427_v10 = vadd.f32 %v1426_v62, %v1425_v52  ;;  %v3879_v52 = vpack.c.bf16 %v2018_v29, %v2016_v26  ;;  %v2044_v29 = vld [vmem:[#allocation9 + $0x3a0] sm:$0xff] }
 0x46f   :  { %v1436_v11 = vadd.f32 %v1435_v33, %v1434_v58  ;;  %v1461_v16 = vrot.slane %v1460_v8, 2  ;;  %v3881_v58 = vpack.c.bf16 %v2023_v35, %v2021_v30  ;;  %v2046_v30 = vld [vmem:[#allocation9 + $0x3b0] sm:$0xff] }
 0x470   :  { %v1428_v18 = vrot.slane %v1427_v10, 1  ;;  %v3907_v35 = vpack.c.bf16 %v2046_v30, %v2044_v29  ;;  %v2065_v29 = vld [vmem:[#allocation9 + $0x448] sm:$0xff] }
 0x471   :  { %v1437_v19 = vrot.slane %v1436_v11, 1  ;;  %v1462_v25 = vadd.f32 %v1461_v16, %v1460_v8  ;;  %v2057_v30 = vld [vmem:[#allocation9 + $0x408] sm:$0xff] }
 0x472   :  { %v1429_v2 = vadd.f32 %v1428_v18, %v1427_v10  ;;  %v5555_v18 = vld [vmem:[#allocation17_spill] sm:$0xff] }
 0x473   :  { %v1438_v22 = vadd.f32 %v1437_v19, %v1436_v11  ;;  %v1463_v40 = vrot.slane %v1462_v25, 1 }
 0x475   :  { %1593 = vmatprep.mubr.f32.mxu0 %v1438_v22  ;;  %v1464_v21 = vadd.f32 %v1463_v40, %v1462_v25  ;;  %v1450_v40 = vrot.slane %v1449_v44, 4  ;;  %v2020_v25 = vld [vmem:[#allocation9 + $0x2e0] sm:$0xff]  ;;  %v2022_v22 = vld [vmem:[#allocation9 + $0x2f0] sm:$0xff] }
 0x476   :  { %1594 = vmatmul.mubr.f32.vlgmr.msra.gmra.mrb[8].mxu0 %v1429_v2 }
 0x477   :  { %3800 = vmatpush1.bf16.msra.mxu0 %v4766_v38  ;;  %1664 = vmatprep.mubr.f32.mxu0 %v1464_v21  ;;  %v1451_v2 = vadd.f32 %v1450_v40, %v1449_v44  ;;  %v2019_v21 = vld [vmem:[#allocation9 + $0x2d8] sm:$0xff]  ;;  %v2025_v40 = vld [vmem:[#allocation9 + $0x308] sm:$0xff] }
 0x478   :  { %3802 = vmatprep.subr.bf16.mxu0 %v4768_v39 }
 0x479   :  { %v1452_v38 = vrot.slane %v1451_v2, 2 }
 0x47b   :  { %3804 = vmatpush1.bf16.msra.mxu0 %v4772_v48  ;;  %v1453_v39 = vadd.f32 %v1452_v38, %v1451_v2  ;;  %v2027_v2 = vld [vmem:[#allocation9 + $0x318] sm:$0xff]  ;;  %v3883_v38 = vpack.c.bf16 %v2022_v22, %v2020_v25 }
 0x47c   :  { %3806 = vmatprep.subr.bf16.mxu0 %v4775_v51 }
 0x47d   :  { %v1454_v48 = vrot.slane %v1453_v39, 1 }
 0x47f   :  { %3808 = vmatpush1.bf16.msra.mxu0 %v4778_v60  ;;  %v1455_v51 = vadd.f32 %v1454_v48, %v1453_v39  ;;  %v2001_v60 = vld [vmem:[#allocation9 + $0x248] sm:$0xff]  ;;  %v3885_v39 = vpack.c.bf16 %v2027_v2, %v2025_v40  ;;  %v2024_v48 = vld [vmem:[#allocation9 + $0x300] sm:$0xff] }
 0x480   :  { %3810 = vmatprep.subr.bf16.mxu0 %v4781_v0  ;;  %v2003_v0 = vld [vmem:[#allocation9 + $0x258] sm:$0xff] }
 0x483   :  { %3812 = vmatpush1.bf16.msra.mxu0 %v4784_v12  ;;  %v2000_v12 = vld [vmem:[#allocation9 + $0x240] sm:$0xff] }
 0x484   :  { %3814 = vmatprep.subr.bf16.mxu0 %v4787_v14  ;;  %v3861_v14 = vpack.c.bf16 %v2003_v0, %v2001_v60  ;;  %v2029_v60 = vld [vmem:[#allocation9 + $0x328] sm:$0xff]  ;;  %v2031_v0 = vld [vmem:[#allocation9 + $0x338] sm:$0xff] }
 0x487   :  { %3816 = vmatpush1.bf16.msra.mxu0 %v4790_v24  ;;  %v2002_v24 = vld [vmem:[#allocation9 + $0x250] sm:$0xff] }
 0x488   :  { %3818 = vmatprep.subr.bf16.mxu0 %v4793_v36  ;;  %v2005_v36 = vld [vmem:[#allocation9 + $0x268] sm:$0xff] }
 0x48b   :  { %3820 = vmatpush1.bf16.msra.mxu0 %v4796_v43  ;;  %v2007_v43 = vld [vmem:[#allocation9 + $0x278] sm:$0xff] }
 0x48c   :  { %3822 = vmatprep.subr.bf16.mxu0 %v4800_v50  ;;  %v3863_v50 = vpack.c.bf16 %v2002_v24, %v2000_v12  ;;  %v2028_v24 = vld [vmem:[#allocation9 + $0x320] sm:$0xff] }
 0x48f   :  { %3824 = vmatpush1.bf16.msra.mxu0 %v4804_v55  ;;  %v3865_v55 = vpack.c.bf16 %v2007_v43, %v2005_v36  ;;  %v2030_v36 = vld [vmem:[#allocation9 + $0x330] sm:$0xff]  ;;  %v2033_v43 = vld [vmem:[#allocation9 + $0x348] sm:$0xff] }
 0x490   :  { %3826 = vmatprep.subr.bf16.mxu0 %v4806_v56  ;;  %v2004_v56 = vld [vmem:[#allocation9 + $0x260] sm:$0xff] }
 0x493   :  { %3828 = vmatpush1.bf16.msra.mxu0 %v4810_v3  ;;  %v2006_v3 = vld [vmem:[#allocation9 + $0x270] sm:$0xff] }
 0x494   :  { %3830 = vmatprep.subr.bf16.mxu0 %v4814_v5  ;;  %v2009_v5 = vld [vmem:[#allocation9 + $0x288] sm:$0xff] }
 0x497   :  { %3832 = vmatpush1.bf16.msra.mxu0 %v4818_v13  ;;  %v2011_v13 = vld [vmem:[#allocation9 + $0x298] sm:$0xff] }
 0x498   :  { %3834 = vmatprep.subr.bf16.mxu0 %v4863_v59  ;;  %v3867_v59 = vpack.c.bf16 %v2006_v3, %v2004_v56  ;;  %v2032_v3 = vld [vmem:[#allocation9 + $0x340] sm:$0xff] }
 0x49b   :  { %3836 = vmatpush1.bf16.msra.mxu0 %v4865_v6  ;;  %v3869_v6 = vpack.c.bf16 %v2011_v13, %v2009_v5  ;;  %v2034_v5 = vld [vmem:[#allocation9 + $0x350] sm:$0xff]  ;;  %v2037_v13 = vld [vmem:[#allocation9 + $0x368] sm:$0xff] }
 0x49c   :  { %3838 = vmatprep.subr.bf16.mxu0 %v4869_v9  ;;  %v2008_v9 = vld [vmem:[#allocation9 + $0x280] sm:$0xff] }
 0x49f   :  { %3840 = vmatpush1.bf16.msra.mxu0 %v4871_v15  ;;  %v2010_v15 = vld [vmem:[#allocation9 + $0x290] sm:$0xff] }
 0x4a0   :  { %3842 = vmatprep.subr.bf16.mxu0 %v4875_v63  ;;  %v5554_v63 = vlaneseq }
 0x4a3   :  { %3844 = vmatpush1.bf16.msra.mxu0 %v4877_v20  ;;  %v4978_v20 = vshrl.u32 %v5554_v63, 7  ;;  %v2038_v63 = vld [vmem:[#allocation9 + $0x370] sm:$0xff] }
 0x4a4   :  { %3846 = vmatprep.subr.bf16.mxu0 %v4881_v23  ;;  %v2013_v23 = vld [vmem:[#allocation9 + $0x2a8] sm:$0xff] }
 0x4a7   :  { %3848 = vmatpush1.bf16.msra.mxu0 %v4883_v27  ;;  %v2015_v27 = vld [vmem:[#allocation9 + $0x2b8] sm:$0xff] }
 0x4a8   :  { %3850 = vmatprep.subr.bf16.mxu0 %v4887_v46  ;;  %v3871_v46 = vpack.c.bf16 %v2010_v15, %v2008_v9  ;;  %v2036_v15 = vld [vmem:[#allocation9 + $0x360] sm:$0xff] }
 0x4ab   :  { %3852 = vmatpush1.bf16.msra.mxu0 %v4889_v31  ;;  %v3873_v31 = vpack.c.bf16 %v2015_v27, %v2013_v23  ;;  %v2041_v23 = vld [vmem:[#allocation9 + $0x388] sm:$0xff]  ;;  %v2043_v27 = vld [vmem:[#allocation9 + $0x398] sm:$0xff] }
 0x4ac   :  { %3854 = vmatprep.subr.bf16.mxu0 %v4893_v32  ;;  %v2012_v32 = vld [vmem:[#allocation9 + $0x2a0] sm:$0xff] }
 0x4af   :  { %3856 = vmatpush1.bf16.msra.mxu0 %v4895_v42  ;;  %v2014_v42 = vld [vmem:[#allocation9 + $0x2b0] sm:$0xff] }
 0x4b0   :  { %3858 = vmatprep.subr.bf16.mxu0 %v4899_v49  ;;  %v4981_v49 = vsub.s32 0, %v4978_v20  ;;  %v3875_v1 = vpack.c.bf16 %v2014_v42, %v2012_v32  ;;  %v2040_v32 = vld [vmem:[#allocation9 + $0x380] sm:$0xff]  ;;  %v2042_v42 = vld [vmem:[#allocation9 + $0x390] sm:$0xff] }
 0x4b1   :  { %v3903_v26 = vpack.c.bf16 %v2042_v42, %v2040_v32 }
 0x4b3   :  { %3860 = vmatpush1.bf16.msra.mxu0 %v4901_v53  ;;  %v2017_v53 = vld [vmem:[#allocation9 + $0x2c8] sm:$0xff] }
 0x4b4   :  { %3862 = vmatprep.subr.bf16.mxu0 %v3861_v14  ;;  %v3877_v41 = vpack.c.bf16 %v2019_v21, %v2017_v53  ;;  %v3889_v14 = vpack.c.bf16 %v2031_v0, %v2029_v60  ;;  %v2045_v53 = vld [vmem:[#allocation9 + $0x3a8] sm:$0xff]  ;;  %v2047_v21 = vld [vmem:[#allocation9 + $0x3b8] sm:$0xff] }
 0x4b5   :  { %v2051_v60 = vld [vmem:[#allocation9 + $0x3d8] sm:$0xff] }
 0x4b6   :  { %1665 = vmatmul.mubr.f32.vlgmr.msra.gmra.mrb[10].mxu0 %v1455_v51  ;;  %v2026_v51 = vld [vmem:[#allocation9 + $0x310] sm:$0xff] }
 0x4b7   :  { %3864 = vmatpush1.bf16.msra.mxu0 %v3863_v50  ;;  %v3887_v12 = vpack.c.bf16 %v2026_v51, %v2024_v48  ;;  %v2035_v50 = vld [vmem:[#allocation9 + $0x358] sm:$0xff]  ;;  %v2049_v51 = vld [vmem:[#allocation9 + $0x3c8] sm:$0xff] }
 0x4b8   :  { %3866 = vmatprep.subr.bf16.mxu0 %v3865_v55  ;;  %v3891_v55 = vpack.c.bf16 %v2030_v36, %v2028_v24  ;;  %v3893_v56 = vpack.c.bf16 %v2035_v50, %v2033_v43  ;;  %v3909_v0 = vpack.c.bf16 %v2051_v60, %v2049_v51  ;;  %v1733_v36 = vld [vmem:[%s5539_s5] sm:$0x3]  ;;  %v2053_v43 = vld [vmem:[#allocation9 + $0x3e8] sm:$0xff]  ;;  %v2055_v50 = vld [vmem:[#allocation9 + $0x3f8] sm:$0xff] }
 0x4b9   :  { %v2061_v51 = vld [vmem:[#allocation9 + $0x428] sm:$0xff] }
 0x4bb   :  { %3868 = vmatpush1.bf16.msra.mxu0 %v3867_v59  ;;  %v2039_v59 = vld [vmem:[#allocation9 + $0x378] sm:$0xff] }
 0x4bc   :  { %3870 = vmatprep.subr.bf16.mxu0 %v3869_v6  ;;  %v3895_v6 = vpack.c.bf16 %v2034_v5, %v2032_v3  ;;  %v3897_v9 = vpack.c.bf16 %v2039_v59, %v2037_v13  ;;  %v2052_v3 = vld [vmem:[#allocation9 + $0x3e0] sm:$0xff]  ;;  %v2054_v5 = vld [vmem:[#allocation9 + $0x3f0] sm:$0xff] }
 0x4bf   :  { %3872 = vmatpush1.bf16.msra.mxu0 %v3871_v46  ;;  %v3899_v46 = vpack.c.bf16 %v2038_v63, %v2036_v15  ;;  %v1738_v15 = vrot.slane %v1733_v36, %v4981_v49 }
 0x4c0   :  { %3874 = vmatprep.subr.bf16.mxu0 %v3873_v31  ;;  %v3901_v31 = vpack.c.bf16 %v2043_v27, %v2041_v23 }
 0x4c3   :  { %3876 = vmatpush1.bf16.msra.mxu0 %v3875_v1  ;;  %v3905_v1 = vpack.c.bf16 %v2047_v21, %v2045_v53 }
 0x4c4   :  { %3878 = vmatprep.subr.bf16.mxu0 %v3877_v41 }
 0x4c7   :  { %3880 = vmatpush1.bf16.msra.mxu0 %v3879_v52 }
 0x4c8   :  { %3882 = vmatprep.subr.bf16.mxu0 %v3881_v58 }
 0x4cb   :  { %3884 = vmatpush1.bf16.msra.mxu0 %v3883_v38 }
 0x4cc   :  { %3886 = vmatprep.subr.bf16.mxu0 %v3885_v39 }
 0x4cf   :  { %3888 = vmatpush1.bf16.msra.mxu0 %v3887_v12  ;;  %v2048_v12 = vld [vmem:[#allocation9 + $0x3c0] sm:$0xff] }
 0x4d0   :  { %3890 = vmatprep.subr.bf16.mxu0 %v3889_v14  ;;  %v2050_v14 = vld [vmem:[#allocation9 + $0x3d0] sm:$0xff] }
 0x4d1   :  { %v3911_v24 = vpack.c.bf16 %v2050_v14, %v2048_v12 }
 0x4d3   :  { %3892 = vmatpush1.bf16.msra.mxu0 %v3891_v55 }
 0x4d4   :  { %3894 = vmatprep.subr.bf16.mxu0 %v3893_v56  ;;  %v3913_v56 = vpack.c.bf16 %v2055_v50, %v2053_v43 }
 0x4d7   :  { %3896 = vmatpush1.bf16.msra.mxu0 %v3895_v6 }
 0x4d8   :  { %3898 = vmatprep.subr.bf16.mxu0 %v3897_v9  ;;  %v3915_v9 = vpack.c.bf16 %v2054_v5, %v2052_v3  ;;  %v2071_v3 = vld [vmem:[#allocation9 + $0x478] sm:$0xff] }
 0x4db   :  { %3900 = vmatpush1.bf16.msra.mxu0 %v3899_v46 }
 0x4dc   :  { %3902 = vmatprep.subr.bf16.mxu0 %v3901_v31 }
 0x4df   :  { %3904 = vmatpush1.bf16.msra.mxu0 %v3903_v26 }
 0x4e0   :  { %3906 = vmatprep.subr.bf16.mxu0 %v3905_v1 }
 0x4e3   :  { %3908 = vmatpush1.bf16.msra.mxu0 %v3907_v35 }
 0x4e4   :  { %3910 = vmatprep.subr.bf16.mxu0 %v3909_v0 }
 0x4e7   :  { %3912 = vmatpush1.bf16.msra.mxu0 %v3911_v24  ;;  %v2063_v24 = vld [vmem:[#allocation9 + $0x438] sm:$0xff] }
 0x4e8   :  { %3914 = vmatprep.subr.bf16.mxu0 %v3913_v56  ;;  %v2069_v56 = vld [vmem:[#allocation9 + $0x468] sm:$0xff] }
 0x4eb   :  { %3916 = vmatpush1.bf16.msra.mxu0 %v3915_v9  ;;  %v2068_v9 = vld [vmem:[#allocation9 + $0x460] sm:$0xff] }
 0x549   :  { %v4983_v37 = vpop.f32.mrb[8].mxu0 }
 0x54a   :  { %v4987_v44 = vrot.slane %v4983_v37, %v4981_v49  ;;  %v4989_v45 = vpop.f32.mrb[9].mxu0  ;;  %v1671_v41 = vmul.f32 %v4983_v37, %v4983_v37  ;;  %v1713_v37 = vld [vmem:[%s5538_s4] sm:$0x3] }
 0x54b   :  { %v4993_v47 = vrot.slane %v4989_v45, %v4981_v49  ;;  %v1672_v52 = vmul.f32 %v4989_v45, %v4989_v45  ;;  %v5019_v45 = vsub.s32 1, %v4978_v20  ;;  %v1718_v6 = vrot.slane %v1713_v37, %v4981_v49 }
 0x54c   :  { %v1687_v61 = vsub.f32 %v4910_v4, %v4987_v44  ;;  %v1691_v62 = vsub.f32 %v4936_v28, %v4987_v44  ;;  %v1685_v33 = vsub.f32 %v4906_v54, %v4987_v44  ;;  %v1689_v8 = vsub.f32 %v4926_v17, %v4987_v44 }
 0x54d   :  { %v1688_v10 = vsub.f32 %v4918_v7, %v4993_v47  ;;  %v1692_v11 = vsub.f32 %v4941_v34, %v4993_v47  ;;  %v1686_v16 = vsub.f32 %v4908_v57, %v4993_v47  ;;  %v1690_v19 = vsub.f32 %v5555_v18, %v4993_v47  ;;  %v2059_v34 = vld [vmem:[#allocation9 + $0x418] sm:$0xff] }
 0x54e   :  { %v1722_v63 = vrot.slane %v1713_v37, %v5019_v45  ;;  %v1742_v23 = vrot.slane %v1733_v36, %v5019_v45  ;;  %v2060_v37 = vld [vmem:[#allocation9 + $0x420] sm:$0xff] }
 0x589   :  { %v1666_v58 = vpop.f32.mrb[10].mxu0 }
 0x58a   :  { %v1673_v25 = vsub.f32 %v1666_v58, %v1671_v41  ;;  %v1668_v22 = vpop.f32.mrb[11].mxu0  ;;  %v2064_v58 = vld [vmem:[#allocation9 + $0x440] sm:$0xff] }
 0x58b   :  { %v1674_v40 = vsub.f32 %v1668_v22, %v1672_v52  ;;  %v2067_v52 = vld [vmem:[#allocation9 + $0x458] sm:$0xff]  ;;  %v2058_v22 = vld [vmem:[#allocation9 + $0x410] sm:$0xff] }
 0x58c   :  { %v1675_v2 = vmax.f32 %v1673_v25, 0.0  ;;  %v2056_v25 = vld [vmem:[#allocation9 + $0x400] sm:$0xff] }
 0x58d   :  { %v1676_v38 = vmax.f32 %v1674_v40, 0.0 }
 0x58e   :  { %v1693_v39 = vadd.f32 1e-05, %v1675_v2 }
 0x58f   :  { %v1694_v48 = vadd.f32 1e-05, %v1676_v38 }
 0x590   :  { %4327 = vrsqrt.f32 %v1693_v39 }
 0x591   :  { %4329 = vrsqrt.f32 %v1694_v48  ;;  %v2066_v48 = vld [vmem:[#allocation9 + $0x450] sm:$0xff] }
 0x59a   :  { %v4328_v55 = vpop.eup %4327 }
 0x59b   :  { %v4330_v13 = vpop.eup %4329  ;;  %v1700_v59 = vrot.slane %v4328_v55, %v4981_v49 }
 0x59c   :  { %v1704_v20 = vrot.slane %v4330_v13, %v4981_v49 }
 0x59d   :  { %v1705_v27 = vmul.f32 %v1700_v59, %v1685_v33  ;;  %v1707_v46 = vmul.f32 %v1700_v59, %v1687_v61  ;;  %v1709_v31 = vmul.f32 %v1700_v59, %v1689_v8  ;;  %v1711_v32 = vmul.f32 %v1700_v59, %v1691_v62 }
 0x59e   :  { %v1706_v42 = vmul.f32 %v1704_v20, %v1686_v16  ;;  %v1708_v54 = vmul.f32 %v1704_v20, %v1688_v10  ;;  %v1710_v4 = vmul.f32 %v1704_v20, %v1690_v19  ;;  %v1712_v17 = vmul.f32 %v1704_v20, %v1692_v11  ;;  %v2070_v20 = vld [vmem:[#allocation9 + $0x470] sm:$0xff] }
 0x59f   :  { %v1725_v61 = vmul.f32 %v1718_v6, %v1705_v27  ;;  %v1727_v28 = vmul.f32 %v1718_v6, %v1707_v46  ;;  %v1729_v44 = vmul.f32 %v1718_v6, %v1709_v31  ;;  %v1731_v62 = vmul.f32 %v1718_v6, %v1711_v32  ;;  %v1860_v31 = vld [vmem:[#allocation9 + $0x8] sm:$0xff]  ;;  %v1862_v32 = vld [vmem:[#allocation9 + $0x18] sm:$0xff] }
 0x5a0   :  { %v1726_v33 = vmul.f32 %v1722_v63, %v1706_v42  ;;  %v1728_v8 = vmul.f32 %v1722_v63, %v1708_v54  ;;  %v1730_v57 = vmul.f32 %v1722_v63, %v1710_v4  ;;  %v1732_v16 = vmul.f32 %v1722_v63, %v1712_v17 }
 0x5a1   :  { %v1745_v53 = vadd.f32 %v1738_v15, %v1725_v61  ;;  %v1747_v21 = vadd.f32 %v1738_v15, %v1727_v28  ;;  %v1749_v7 = vadd.f32 %v1738_v15, %v1729_v44  ;;  %v1751_v10 = vadd.f32 %v1738_v15, %v1731_v62  ;;  %v2062_v15 = vld [vmem:[#allocation9 + $0x430] sm:$0xff] }
 0x5a2   :  { %v1746_v26 = vadd.f32 %v1742_v23, %v1726_v33  ;;  %v1748_v1 = vadd.f32 %v1742_v23, %v1728_v8  ;;  %v1750_v18 = vadd.f32 %v1742_v23, %v1730_v57  ;;  %v1752_v19 = vadd.f32 %v1742_v23, %v1732_v16 }
 0x5a3   :  { %v1753_v47 = vmax.f32 %v1745_v53, 0.0  ;;  %v1755_v11 = vmax.f32 %v1747_v21, 0.0  ;;  %v1757_v35 = vmax.f32 %v1749_v7, 0.0  ;;  %v1759_v41 = vmax.f32 %v1751_v10, 0.0  ;;  %v1859_v21 = vld [vmem:[#allocation9] sm:$0xff] }
 0x5a4   :  { %v1754_v40 = vmax.f32 %v1746_v26, 0.0  ;;  %v1756_v2 = vmax.f32 %v1748_v1, 0.0  ;;  %v1758_v38 = vmax.f32 %v1750_v18, 0.0  ;;  %v1760_v39 = vmax.f32 %v1752_v19, 0.0  ;;  %v1861_v1 = vld [vmem:[#allocation9 + $0x10] sm:$0xff] }
 0x5a5   :  { %v1769_v60 = vrot.slane %v1753_v47, 7  ;;  %v1771_v0 = vrot.slane %v1755_v11, 7  ;;  %v1775_v12 = vrot.slane %v1757_v35, 7  ;;  %v1777_v14 = vrot.slane %v1759_v41, 7 }
 0x5a6   :  { %v1770_v36 = vrot.slane %v1754_v40, 7  ;;  %v1773_v43 = vrot.slane %v1756_v2, 7  ;;  %v1776_v50 = vrot.slane %v1758_v38, 7  ;;  %v1779_v55 = vrot.slane %v1760_v39, 7 }
 0x5a7   :  { %1781 = vrot.lane.b32.xlu0 %v1769_v60, %s4476_s21  ;;  %v1772_v5 = vsel %vm409_vm8, %v1769_v60, %v1771_v0  ;;  %v1778_v13 = vsel %vm409_vm8, %v1775_v12, %v1777_v14  ;;  %v3925_v59 = vpack.c.bf16 %v2067_v52, %v2065_v29  ;;  %v3917_v6 = vpack.c.bf16 %v2059_v34, %v2057_v30  ;;  %v1864_v30 = vld [vmem:[#allocation9 + $0x28] sm:$0xff]  ;;  %v1866_v34 = vld [vmem:[#allocation9 + $0x38] sm:$0xff] }
 0x5a8   :  { %1783 = vrot.lane.b32.xlu1 %v1770_v36, %s4476_s21  ;;  %v1774_v63 = vsel %vm409_vm8, %v1770_v36, %v1773_v43  ;;  %v1780_v23 = vsel %vm409_vm8, %v1776_v50, %v1779_v55  ;;  %v3927_v27 = vpack.c.bf16 %v2066_v48, %v2064_v58  ;;  %v3919_v46 = vpack.c.bf16 %v2058_v22, %v2056_v25  ;;  %v1863_v48 = vld [vmem:[#allocation9 + $0x20] sm:$0xff] }
 0x5a9   :  { %3926 = vmatprep.subr.bf16.mxu1 %v3925_v59  ;;  %3918 = vmatprep.subr.bf16.mxu0 %v3917_v6  ;;  %v3929_v42 = vpack.c.bf16 %v2071_v3, %v2069_v56  ;;  %v3921_v54 = vpack.c.bf16 %v2063_v24, %v2061_v51  ;;  %v3931_v4 = vpack.c.bf16 %v2070_v20, %v2068_v9  ;;  %v1865_v51 = vld [vmem:[#allocation9 + $0x30] sm:$0xff]  ;;  %v5556_v56 = vmov 0.0   ;;  %v1867_v6 = vld [vmem:[#allocation9 + $0x40] sm:$0xff] }
 0x5aa   :  { %3928 = vmatpush1.bf16.msra.mxu1 %v3927_v27  ;;  %3920 = vmatpush1.bf16.msra.mxu0 %v3919_v46  ;;  %v3923_v17 = vpack.c.bf16 %v2062_v15, %v2060_v37  ;;  %v3933_v61 = vpack.c.bf16 %v1862_v32, %v1860_v31  ;;  %v3935_v22 = vpack.c.bf16 %v1861_v1, %v1859_v21  ;;  %v1869_v9 = vld [vmem:[#allocation9 + $0x50] sm:$0xff]  ;;  %v1872_v15 = vld [vmem:[#allocation9 + $0x68] sm:$0xff] }
 0x5ab   :  { %1785 = vrot.lane.b32.xlu0 %v1772_v5, %s4476_s21  ;;  %3930 = vmatprep.subr.bf16.mxu1 %v3929_v42  ;;  %v3937_v39 = vpack.c.bf16 %v1866_v34, %v1864_v30  ;;  %v3943_v32 = vpack.c.bf16 %v1869_v9, %v1867_v6  ;;  %v1871_v42 = vld [vmem:[#allocation9 + $0x60] sm:$0xff]  ;;  %v1888_v6 = vld [vmem:[#allocation9 + $0xe8] sm:$0xff]  ;;  %v1890_v9 = vld [vmem:[#allocation9 + $0xf8] sm:$0xff] }
 0x5ac   :  { %1787 = vrot.lane.b32.xlu1 %v1774_v63, %s4476_s21  ;;  %3922 = vmatprep.subr.bf16.mxu0 %v3921_v54  ;;  %v1874_v63 = vld [vmem:[#allocation9 + $0x78] sm:$0xff]  ;;  %v1875_v34 = vld [vmem:[#allocation9 + $0x80] sm:$0xff] }
 0x5ae   :  { %3932 = vmatpush1.bf16.msra.mxu1 %v3931_v4  ;;  %3924 = vmatpush1.bf16.msra.mxu0 %v3923_v17 }
 0x5af   :  { %1789 = vrot.lane.b32.xlu0 %v1771_v0, %s4476_s21  ;;  %3934 = vmatprep.subr.bf16.mxu0 %v3933_v61  ;;  %v1868_v0 = vld [vmem:[#allocation9 + $0x48] sm:$0xff]  ;;  %v3945_v61 = vpack.c.bf16 %v1874_v63, %v1872_v15  ;;  %v3961_v15 = vpack.c.bf16 %v1890_v9, %v1888_v6  ;;  %v1887_v63 = vld [vmem:[#allocation9 + $0xe0] sm:$0xff]  ;;  %v1926_v6 = vld [vmem:[#allocation9 + $0x218] sm:$0xff] }
 0x5b0   :  { %1791 = vrot.lane.b32.xlu1 %v1773_v43, %s4476_s21 }
 0x5b3   :  { %1793 = vrot.lane.b32.xlu0 %v1775_v12, %s4476_s21  ;;  %v1870_v12 = vld [vmem:[#allocation9 + $0x58] sm:$0xff] }
 0x5b4   :  { %1795 = vrot.lane.b32.xlu1 %v1776_v50, %s4476_s21  ;;  %v3939_v50 = vpack.c.bf16 %v1865_v51, %v1863_v48  ;;  %v3941_v59 = vpack.c.bf16 %v1870_v12, %v1868_v0  ;;  %v1881_v0 = vld [vmem:[#allocation9 + $0xb0] sm:$0xff] }
 0x5b7   :  { %1797 = vrot.lane.b32.xlu0 %v1778_v13, %s4476_s21 }
 0x5b8   :  { %1799 = vrot.lane.b32.xlu1 %v1780_v23, %s4476_s21 }
 0x5bb   :  { %1801 = vrot.lane.b32.xlu0 %v1777_v14, %s4476_s21 }
 0x5bc   :  { %1803 = vrot.lane.b32.xlu1 %v1779_v55, %s4476_s21  ;;  %s4455_s21 = scalar_lea.hbm %s5547_s13, 16 }
 0x5bd   :  { %p4456_p4 = scmp.ne.s32.totalorder %s5547_s13, %s4455_s21  ;;  %p4459_p5 = scmp.lt.u32.totalorder %s4455_s21, %s5547_s13 }
 0x5bf   :  { %p4461_p6 = pnand %p4459_p5, %p4456_p4 }
 0x619   :  { %v1782_v28 = vpop.permute.xlu0 %1781 }
 0x61a   :  { %1829 = vst.msk [vmem:[#allocation2] sm:$0xfe] %vm470_vm9, %v1782_v28  ;;  %v1784_v44 = vpop.permute.xlu1 %1783 }
 0x61b   :  { %v1805_v62 = vsel %vm385_vm2, %v1782_v28, %v1784_v44  ;;  %1831 = vst.msk [vmem:[#allocation2 + $0x10] sm:$0xfe] %vm383_vm1, %v1784_v44  ;;  %v1873_v44 = vld [vmem:[#allocation9 + $0x70] sm:$0xff] }
 0x61c   :  { %1830 = vst [vmem:[#allocation2 + $0x8] sm:$0xfe] %v1805_v62 }
 0x61d   :  { %v1786_v33 = vpop.permute.xlu0 %1785 }
 0x61e   :  { %1832 = vst.msk [vmem:[#allocation2 + $0x18] sm:$0xff] %vm474_vm10, %v1786_v33  ;;  %v1788_v8 = vpop.permute.xlu1 %1787 }
 0x61f   :  { %v5075_v57 = vsel %vm385_vm2, %v1786_v33, %v1788_v8  ;;  %1834 = vst.msk [vmem:[#allocation2 + $0x28] sm:$0xff] %vm385_vm2, %v1788_v8 }
 0x620   :  { %v1965_v29 = vrot.slane %v5075_v57, 1 }
 0x621   :  { %v1790_v16 = vpop.permute.xlu0 %1789  ;;  %v1931_v26 = vld [vmem:[#allocation2] sm:$0xfe] }
 0x622   :  { %1835 = vst.msk [vmem:[#allocation2 + $0x30] sm:$0x1] %vm478_vm11, %v1790_v16  ;;  %v1792_v53 = vpop.permute.xlu1 %1791  ;;  %v1933_v18 = vld [vmem:[#allocation2 + $0x10] sm:$0xfe]  ;;  %v1961_v58 = vrot.slane %v1931_v26, 1 }
 0x623   :  { %v1807_v7 = vsel %vm385_vm2, %v1790_v16, %v1792_v53  ;;  %1837 = vst.msk [vmem:[#allocation2 + $0x40] sm:$0x1] %vm387_vm5, %v1792_v53  ;;  %v1932_v10 = vld [vmem:[#allocation2 + $0x8] sm:$0xfe]  ;;  %v1967_v2 = vrot.slane %v1933_v18, 1  ;;  %v1876_v16 = vld [vmem:[#allocation9 + $0x88] sm:$0xff]  ;;  %v3947_v18 = vpack.c.bf16 %v1873_v44, %v1871_v42 }
 0x624   :  { %1836 = vst [vmem:[#allocation2 + $0x38] sm:$0x1] %v1807_v7  ;;  %v1964_v19 = vrot.slane %v1932_v10, 1  ;;  %v1878_v53 = vld [vmem:[#allocation9 + $0x98] sm:$0xff]  ;;  %v1891_v42 = vld [vmem:[#allocation9 + $0x100] sm:$0xff] }
 0x625   :  { %v1794_v47 = vpop.permute.xlu0 %1793  ;;  %v5082_v11 = vld [vmem:[#allocation2 + $0x18] sm:$0xff]  ;;  %v3949_v30 = vpack.c.bf16 %v1878_v53, %v1876_v16  ;;  %v1895_v44 = vld [vmem:[#allocation9 + $0x120] sm:$0xff] }
 0x626   :  { %1838 = vst.msk [vmem:[#allocation2 + $0x48] sm:$0xfe] %vm470_vm9, %v1794_v47  ;;  %v1796_v35 = vpop.permute.xlu1 %1795  ;;  %v5085_v41 = vld [vmem:[#allocation2 + $0x28] sm:$0xff]  ;;  %v1966_v52 = vsel %vm605_vm12, %v1964_v19, %v1965_v29  ;;  %v1962_v25 = vrot.slane %v5082_v11, 1 }
 0x627   :  { %v1808_v40 = vsel %vm385_vm2, %v1794_v47, %v1796_v35  ;;  %1840 = vst.msk [vmem:[#allocation2 + $0x58] sm:$0xfe] %vm383_vm1, %v1796_v35  ;;  %v1968_v38 = vrot.slane %v5085_v41, 1  ;;  %2144 = vmatprep.mubr.f32.mxu0 %v1966_v52  ;;  %v1877_v47 = vld [vmem:[#allocation9 + $0x90] sm:$0xff]  ;;  %v1880_v52 = vld [vmem:[#allocation9 + $0xa8] sm:$0xff] }
 0x628   :  { %1839 = vst [vmem:[#allocation2 + $0x50] sm:$0xfe] %v1808_v40  ;;  %v1963_v60 = vsel %vm605_vm12, %v1961_v58, %v1962_v25  ;;  %v1882_v58 = vld [vmem:[#allocation9 + $0xb8] sm:$0xff] }
 0x629   :  { %v1798_v14 = vpop.permute.xlu0 %1797  ;;  %v1969_v24 = vsel %vm605_vm12, %v1967_v2, %v1968_v38  ;;  %2145 = vmatmul.mubr.f32.vlgmr.msra.gmra.mrb[12].mxu0 %v1963_v60  ;;  %v1934_v37 = vld [vmem:[#allocation2 + $0x30] sm:$0x1]  ;;  %v3951_v2 = vpack.c.bf16 %v1877_v47, %v1875_v34  ;;  %v3953_v51 = vpack.c.bf16 %v1882_v58, %v1880_v52  ;;  %v1905_v34 = vld [vmem:[#allocation9 + $0x170] sm:$0xff]  ;;  %v1908_v47 = vld [vmem:[#allocation9 + $0x188] sm:$0xff] }
 0x62a   :  { %1841 = vst.msk [vmem:[#allocation2 + $0x60] sm:$0xff] %vm474_vm10, %v1798_v14  ;;  %3389 = vmatmul.mubr.msk.f32.vlgmr.msra.gmra.mrb[16].mxu1 %vm266_vm0, %v1969_v24  ;;  %v1800_v36 = vpop.permute.xlu1 %1799  ;;  %3936 = vmatpush1.bf16.msra.mxu0 %v3935_v22  ;;  %v1936_v43 = vld [vmem:[#allocation2 + $0x40] sm:$0x1]  ;;  %v1970_v13 = vrot.slane %v1934_v37, 1  ;;  %v1879_v60 = vld [vmem:[#allocation9 + $0xa0] sm:$0xff]  ;;  %v1886_v24 = vld [vmem:[#allocation9 + $0xd8] sm:$0xff] }
 0x62b   :  { %v5097_v55 = vsel %vm385_vm2, %v1798_v14, %v1800_v36  ;;  %1843 = vst.msk [vmem:[#allocation2 + $0x70] sm:$0xff] %vm385_vm2, %v1800_v36  ;;  %2239 = vmatprep.mubr.f32.mxu1 %v5556_v56  ;;  %v1974_v3 = vrot.slane %v1936_v43, 1  ;;  %v1935_v5 = vld [vmem:[#allocation2 + $0x38] sm:$0x1]  ;;  %3938 = vmatprep.subr.bf16.mxu0 %v3937_v39  ;;  %v3955_v43 = vpack.c.bf16 %v1881_v0, %v1879_v60  ;;  %v1918_v0 = vld [vmem:[#allocation9 + $0x1d8] sm:$0xff] }
 0x62c   :  { %v1972_v20 = vrot.slane %v1935_v5, 1  ;;  %v1971_v4 = vsel %vm605_vm12, %v1962_v25, %v1970_v13  ;;  %v1980_v8 = vrot.slane %v5097_v55, 1  ;;  %v1884_v14 = vld [vmem:[#allocation9 + $0xc8] sm:$0xff]  ;;  %v1883_v5 = vld [vmem:[#allocation9 + $0xc0] sm:$0xff]  ;;  %v1885_v13 = vld [vmem:[#allocation9 + $0xd0] sm:$0xff] }
 0x62d   :  { %v1802_v23 = vpop.permute.xlu0 %1801  ;;  %v1975_v27 = vsel %vm605_vm12, %v1968_v38, %v1974_v3  ;;  %v1937_v28 = vld [vmem:[#allocation2 + $0x48] sm:$0xfe]  ;;  %v3957_v3 = vpack.c.bf16 %v1886_v24, %v1884_v14  ;;  %v1916_v60 = vld [vmem:[#allocation9 + $0x1c8] sm:$0xff]  ;;  %v1915_v24 = vld [vmem:[#allocation9 + $0x1c0] sm:$0xff] }
 0x62e   :  { %1844 = vst.msk [vmem:[#allocation2 + $0x78] sm:$0x1] %vm478_vm11, %v1802_v23  ;;  %3390 = vmatmul.mubr.msk.f32.gmra.mrb[18].mxu1 %vm266_vm0, %v1975_v27  ;;  %v1804_v46 = vpop.permute.xlu1 %1803  ;;  %v1973_v31 = vsel %vm605_vm12, %v1965_v29, %v1972_v20  ;;  %3940 = vmatpush1.bf16.msra.mxu0 %v3939_v50  ;;  %v1939_v62 = vld [vmem:[#allocation2 + $0x58] sm:$0xfe]  ;;  %v1976_v26 = vrot.slane %v1937_v28, 1  ;;  %v3959_v20 = vpack.c.bf16 %v1885_v13, %v1883_v5  ;;  %v1919_v5 = vld [vmem:[#allocation9 + $0x1e0] sm:$0xff] }
 0x62f   :  { %v1810_v54 = vsel %vm385_vm2, %v1802_v23, %v1804_v46  ;;  %1846 = vst.msk [vmem:[#allocation2 + $0x88] sm:$0x1] %vm387_vm5, %v1804_v46  ;;  %2150 = vmatprep.mubr.f32.mxu0 %v1973_v31  ;;  %3942 = vmatprep.subr.bf16.mxu0 %v3941_v59  ;;  %v1938_v17 = vld [vmem:[#allocation2 + $0x50] sm:$0xfe]  ;;  %v1982_v19 = vrot.slane %v1939_v62, 1  ;;  %v1848_v59 = vld [vmem:[#allocation2 + $0x8] sm:$0xff]  ;;  %v3989_v14 = vpack.c.bf16 %v1918_v0, %v1916_v60 }
 0x630   :  { %1845 = vst [vmem:[#allocation2 + $0x80] sm:$0x1] %v1810_v54  ;;  %2151 = vmatmul.mubr.f32.gmra.mrb[14].mxu0 %v1971_v4  ;;  %2245 = vmatprep.mubr.f32.mxu1 %v5556_v56  ;;  %v1979_v33 = vrot.slane %v1938_v17, 1  ;;  %v1889_v23 = vld [vmem:[#allocation9 + $0xf0] sm:$0xff]  ;;  %v1892_v27 = vld [vmem:[#allocation9 + $0x108] sm:$0xff]  ;;  %v1894_v46 = vld [vmem:[#allocation9 + $0x118] sm:$0xff] }
 0x631   :  { %v5110_v21 = vld [vmem:[#allocation2 + $0x60] sm:$0xff]  ;;  %v3963_v31 = vpack.c.bf16 %v1889_v23, %v1887_v63  ;;  %v1896_v4 = vld [vmem:[#allocation9 + $0x128] sm:$0xff]  ;;  %v1898_v17 = vld [vmem:[#allocation9 + $0x138] sm:$0xff] }
 0x632   :  { %3944 = vmatpush1.bf16.msra.mxu0 %v3943_v32  ;;  %v5112_v7 = vld [vmem:[#allocation2 + $0x70] sm:$0xff]  ;;  %v1981_v10 = vsel %vm605_vm12, %v1979_v33, %v1980_v8  ;;  %v1977_v1 = vrot.slane %v5110_v21, 1  ;;  %v3965_v32 = vpack.c.bf16 %v1894_v46, %v1892_v27  ;;  %v1893_v54 = vld [vmem:[#allocation9 + $0x110] sm:$0xff]  ;;  %v3969_v28 = vpack.c.bf16 %v1898_v17, %v1896_v4  ;;  %v1900_v33 = vld [vmem:[#allocation9 + $0x148] sm:$0xff] }
 0x633   :  { %v1983_v29 = vrot.slane %v5112_v7, 1  ;;  %2156 = vmatprep.mubr.f32.mxu0 %v1981_v10  ;;  %3946 = vmatprep.subr.bf16.mxu0 %v3945_v61  ;;  %v3967_v61 = vpack.c.bf16 %v1893_v54, %v1891_v42  ;;  %v1897_v62 = vld [vmem:[#allocation9 + $0x130] sm:$0xff]  ;;  %v1899_v10 = vld [vmem:[#allocation9 + $0x140] sm:$0xff]  ;;  %v1928_v23 = vld [vmem:[#allocation9 + $0x228] sm:$0xff] }
 0x634   :  { %v1978_v35 = vsel %vm605_vm12, %v1976_v26, %v1977_v1  ;;  %v3971_v16 = vpack.c.bf16 %v1897_v62, %v1895_v44  ;;  %v1901_v26 = vld [vmem:[#allocation9 + $0x150] sm:$0xff]  ;;  %v1930_v27 = vld [vmem:[#allocation9 + $0x238] sm:$0xff]  ;;  %v2510_v4 = vld [vmem:[#allocation9 + $0x488] sm:$0xff] }
 0x635   :  { %v1984_v25 = vsel %vm605_vm12, %v1982_v19, %v1983_v29  ;;  %2157 = vmatmul.mubr.f32.gmra.mrb[16].mxu0 %v1978_v35  ;;  %v1940_v22 = vld [vmem:[#allocation2 + $0x78] sm:$0x1]  ;;  %v3975_v19 = vpack.c.bf16 %v1901_v26, %v1899_v10  ;;  %v1910_v35 = vld [vmem:[#allocation9 + $0x198] sm:$0xff]  ;;  %v1921_v13 = vld [vmem:[#allocation9 + $0x1f0] sm:$0xff] }
 0x636   :  { %3391 = vmatmul.mubr.msk.f32.gmra.mrb[20].mxu1 %vm266_vm0, %v1984_v25  ;;  %3948 = vmatpush1.bf16.msra.mxu0 %v3947_v18  ;;  %v1942_v40 = vld [vmem:[#allocation2 + $0x88] sm:$0x1]  ;;  %v1985_v48 = vrot.slane %v1940_v22, 1  ;;  %v3981_v58 = vpack.c.bf16 %v1910_v35, %v1908_v47  ;;  %v1907_v25 = vld [vmem:[#allocation9 + $0x180] sm:$0xff]  ;;  %v1909_v22 = vld [vmem:[#allocation9 + $0x190] sm:$0xff]  ;;  %v3995_v9 = vpack.c.bf16 %v1921_v13, %v1919_v5 }
 0x637   :  { %2251 = vmatprep.mubr.f32.mxu1 %v5556_v56  ;;  %v1989_v38 = vrot.slane %v1942_v40, 1  ;;  %v1941_v39 = vld [vmem:[#allocation2 + $0x80] sm:$0x1]  ;;  %3950 = vmatprep.subr.bf16.mxu0 %v3949_v30  ;;  %v1906_v18 = vld [vmem:[#allocation9 + $0x178] sm:$0xff]  ;;  %v1903_v30 = vld [vmem:[#allocation9 + $0x160] sm:$0xff] }
 0x638   :  { %v1987_v12 = vrot.slane %v1941_v39, 1  ;;  %v1986_v50 = vsel %vm605_vm12, %v1977_v1, %v1985_v48  ;;  %v1904_v1 = vld [vmem:[#allocation9 + $0x168] sm:$0xff]  ;;  %v3979_v52 = vpack.c.bf16 %v1905_v34, %v1903_v30  ;;  %v1911_v48 = vld [vmem:[#allocation9 + $0x1a0] sm:$0xff]  ;;  %v1925_v63 = vld [vmem:[#allocation9 + $0x210] sm:$0xff] }
 0x639   :  { %v1990_v37 = vsel %vm605_vm12, %v1983_v29, %v1989_v38  ;;  %v3977_v29 = vpack.c.bf16 %v1906_v18, %v1904_v1  ;;  %v1912_v40 = vld [vmem:[#allocation9 + $0x1a8] sm:$0xff]  ;;  %v3983_v38 = vpack.c.bf16 %v1909_v22, %v1907_v25  ;;  %v1929_v42 = vld [vmem:[#allocation9 + $0x230] sm:$0xff]  ;;  %v2512_v17 = vld [vmem:[#allocation9 + $0x498] sm:$0xff] }
 0x63a   :  { %3392 = vmatmul.mubr.msk.f32.gmra.mrb[22].mxu1 %vm266_vm0, %v1990_v37  ;;  %v1988_v36 = vsel %vm605_vm12, %v1980_v8, %v1987_v12  ;;  %3952 = vmatpush1.bf16.msra.mxu0 %v3951_v2  ;;  %v1902_v8 = vld [vmem:[#allocation9 + $0x158] sm:$0xff]  ;;  %v1917_v37 = vld [vmem:[#allocation9 + $0x1d0] sm:$0xff]  ;;  %v1854_v44 = vld [vmem:[#allocation2 + $0x50] sm:$0xff] }
 0x63b   :  { %2162 = vmatprep.mubr.f32.mxu0 %v1988_v36  ;;  %3954 = vmatprep.subr.bf16.mxu0 %v3953_v51  ;;  %v3973_v53 = vpack.c.bf16 %v1902_v8, %v1900_v33  ;;  %v1914_v2 = vld [vmem:[#allocation9 + $0x1b8] sm:$0xff]  ;;  %v1913_v51 = vld [vmem:[#allocation9 + $0x1b0] sm:$0xff]  ;;  %v1920_v36 = vld [vmem:[#allocation9 + $0x1e8] sm:$0xff] }
 0x63c   :  { %2163 = vmatmul.mubr.f32.gmra.mrb[18].mxu0 %v1986_v50  ;;  %v3985_v39 = vpack.c.bf16 %v1914_v2, %v1912_v40  ;;  %v3987_v12 = vpack.c.bf16 %v1913_v51, %v1911_v48  ;;  %v3991_v50 = vpack.c.bf16 %v1917_v37, %v1915_v24  ;;  %v1847_v54 = vld [vmem:[#allocation2] sm:$0xff]  ;;  %v1853_v62 = vld [vmem:[#allocation2 + $0x48] sm:$0xff]  ;;  %v2509_v33 = vld [vmem:[#allocation9 + $0x480] sm:$0xff] }
 0x63d   :  { %2332 = vmatprep.mubr.f32.mxu0 %v1848_v59  ;;  %v1924_v59 = vld [vmem:[#allocation9 + $0x208] sm:$0xff]  ;;  %v2511_v8 = vld [vmem:[#allocation9 + $0x490] sm:$0xff]  ;;  %v2513_v1 = vld [vmem:[#allocation9 + $0x4a0] sm:$0xff] }
 0x63e   :  { %3956 = vmatpush1.bf16.msra.mxu0 %v3955_v43  ;;  %v1922_v43 = vld [vmem:[#allocation9 + $0x1f8] sm:$0xff]  ;;  %v4007_v10 = vpack.c.bf16 %v2511_v8, %v2509_v33  ;;  %v2515_v18 = vld [vmem:[#allocation9 + $0x4b0] sm:$0xff]  ;;  %v2517_v35 = vld [vmem:[#allocation9 + $0x4c0] sm:$0xff] }
 0x63f   :  { %3958 = vmatprep.subr.bf16.mxu0 %v3957_v3  ;;  %v3993_v3 = vpack.c.bf16 %v1922_v43, %v1920_v36  ;;  %v2520_v30 = vld [vmem:[#allocation9 + $0x4d8] sm:$0xff]  ;;  %v4011_v34 = vpack.c.bf16 %v2515_v18, %v2513_v1  ;;  %v1855_v48 = vld [vmem:[#allocation2 + $0x58] sm:$0xff]  ;;  %v2525_v37 = vld [vmem:[#allocation9 + $0x500] sm:$0xff] }
 0x640   :  { %v2524_v25 = vld [vmem:[#allocation9 + $0x4f8] sm:$0xff]  ;;  %v2526_v51 = vld [vmem:[#allocation9 + $0x508] sm:$0xff]  ;;  %v2527_v36 = vld [vmem:[#allocation9 + $0x510] sm:$0xff] }
 0x641   :  { %v2447_v40 = vld [vmem:[#allocation2 + $0x8] sm:$0xfc]  ;;  %v2530_v43 = vld [vmem:[#allocation9 + $0x528] sm:$0xff]  ;;  %v4023_v5 = vpack.c.bf16 %v2527_v36, %v2525_v37  ;;  %v2819_v8 = vld [vmem:[#allocation10] sm:$0xff] }
 0x642   :  { %3960 = vmatpush1.bf16.msra.mxu0 %v3959_v20  ;;  %v3997_v20 = vpack.c.bf16 %v1926_v6, %v1924_v59  ;;  %v2528_v60 = vld [vmem:[#allocation9 + $0x518] sm:$0xff]  ;;  %v2473_v0 = vrot.slane %v2447_v40, 2  ;;  %v2529_v59 = vld [vmem:[#allocation9 + $0x520] sm:$0xff]  ;;  %v2531_v6 = vld [vmem:[#allocation9 + $0x530] sm:$0xff] }
 0x643   :  { %3962 = vmatprep.subr.bf16.mxu0 %v3961_v15  ;;  %v1923_v15 = vld [vmem:[#allocation9 + $0x200] sm:$0xff]  ;;  %v4021_v24 = vpack.c.bf16 %v2528_v60, %v2526_v51  ;;  %v2822_v33 = vld [vmem:[#allocation10 + $0x18] sm:$0xff]  ;;  %v2547_v51 = vld [vmem:[#allocation9 + $0x5b0] sm:$0xff] }
 0x644   :  { %v3999_v46 = vpack.c.bf16 %v1925_v63, %v1923_v15  ;;  %v4027_v15 = vpack.c.bf16 %v2531_v6, %v2529_v59  ;;  %v2826_v1 = vld [vmem:[#allocation10 + $0x38] sm:$0xff]  ;;  %v2545_v40 = vld [vmem:[#allocation9 + $0x5a0] sm:$0xff]  ;;  %v2832_v60 = vld [vmem:[#allocation10 + $0x68] sm:$0xff] }
 0x645   :  { %v4043_v36 = vpack.c.bf16 %v2547_v51, %v2545_v40  ;;  %v2551_v59 = vld [vmem:[#allocation9 + $0x5d0] sm:$0xff]  ;;  %v2836_v6 = vld [vmem:[#allocation10 + $0x88] sm:$0xff]  ;;  %v2843_v40 = vld [vmem:[#allocation10 + $0xc0] sm:$0xff] }
 0x646   :  { %3964 = vmatpush1.bf16.msra.mxu0 %v3963_v31  ;;  %v4001_v31 = vpack.c.bf16 %v1930_v27, %v1928_v23  ;;  %v2533_v23 = vld [vmem:[#allocation9 + $0x540] sm:$0xff]  ;;  %v2535_v27 = vld [vmem:[#allocation9 + $0x550] sm:$0xff]  ;;  %v2848_v51 = vld [vmem:[#allocation10 + $0xe8] sm:$0xff] }
 0x647   :  { %3966 = vmatprep.subr.bf16.mxu0 %v3965_v32  ;;  %v1927_v32 = vld [vmem:[#allocation9 + $0x220] sm:$0xff] }
 0x64a   :  { %3968 = vmatpush1.bf16.msra.mxu0 %v3967_v61  ;;  %v4003_v61 = vpack.c.bf16 %v1929_v42, %v1927_v32  ;;  %v4031_v32 = vpack.c.bf16 %v2535_v27, %v2533_v23  ;;  %v2553_v27 = vld [vmem:[#allocation9 + $0x5e0] sm:$0xff] }
 0x64b   :  { %3970 = vmatprep.subr.bf16.mxu0 %v3969_v28  ;;  %v4005_v28 = vpack.c.bf16 %v2512_v17, %v2510_v4  ;;  %v2539_v4 = vld [vmem:[#allocation9 + $0x570] sm:$0xff]  ;;  %v2542_v17 = vld [vmem:[#allocation9 + $0x588] sm:$0xff] }
 0x64e   :  { %3972 = vmatpush1.bf16.msra.mxu0 %v3971_v16  ;;  %v2514_v16 = vld [vmem:[#allocation9 + $0x4a8] sm:$0xff] }
 0x64f   :  { %3974 = vmatprep.subr.bf16.mxu0 %v3973_v53  ;;  %v2516_v53 = vld [vmem:[#allocation9 + $0x4b8] sm:$0xff] }
 0x650   :  { %v4009_v26 = vpack.c.bf16 %v2516_v53, %v2514_v16 }
 0x652   :  { %3976 = vmatpush1.bf16.msra.mxu0 %v3975_v19  ;;  %v1849_v19 = vld [vmem:[#allocation2 + $0x10] sm:$0xff] }
 0x653   :  { %3978 = vmatprep.subr.bf16.mxu0 %v3977_v29  ;;  %v2518_v29 = vld [vmem:[#allocation9 + $0x4c8] sm:$0xff] }
 0x654   :  { %v4013_v47 = vpack.c.bf16 %v2520_v30, %v2518_v29  ;;  %v2823_v30 = vld [vmem:[#allocation10 + $0x20] sm:$0xff] }
 0x656   :  { %3980 = vmatpush1.bf16.msra.mxu0 %v3979_v52  ;;  %v2519_v52 = vld [vmem:[#allocation9 + $0x4d0] sm:$0xff] }
 0x657   :  { %3982 = vmatprep.subr.bf16.mxu0 %v3981_v58  ;;  %v2522_v58 = vld [vmem:[#allocation9 + $0x4e8] sm:$0xff]  ;;  %v4015_v22 = vpack.c.bf16 %v2519_v52, %v2517_v35  ;;  %v2548_v52 = vld [vmem:[#allocation9 + $0x5b8] sm:$0xff] }
 0x658   :  { %v4017_v2 = vpack.c.bf16 %v2524_v25, %v2522_v58  ;;  %v2546_v35 = vld [vmem:[#allocation9 + $0x5a8] sm:$0xff]  ;;  %v2830_v58 = vld [vmem:[#allocation10 + $0x58] sm:$0xff] }
 0x65a   :  { %3984 = vmatpush1.bf16.msra.mxu0 %v3983_v38  ;;  %v2521_v38 = vld [vmem:[#allocation9 + $0x4e0] sm:$0xff] }
 0x65b   :  { %3986 = vmatprep.subr.bf16.mxu0 %v3985_v39  ;;  %v2523_v39 = vld [vmem:[#allocation9 + $0x4f0] sm:$0xff] }
 0x65e   :  { %3988 = vmatpush1.bf16.msra.mxu0 %v3987_v12  ;;  %v4019_v12 = vpack.c.bf16 %v2523_v39, %v2521_v38  ;;  %v2827_v38 = vld [vmem:[#allocation10 + $0x40] sm:$0xff]  ;;  %v2829_v39 = vld [vmem:[#allocation10 + $0x50] sm:$0xff] }
 0x65f   :  { %3990 = vmatprep.subr.bf16.mxu0 %v3989_v14  ;;  %v2474_v14 = vrot.slane %v5075_v57, 2  ;;  %v5157_v37 = vpack.c.bf16 %v2829_v39, %v2827_v38  ;;  %v2845_v38 = vld [vmem:[#allocation10 + $0xd0] sm:$0xff] }
 0x662   :  { %3992 = vmatpush1.bf16.msra.mxu0 %v3991_v50  ;;  %v2532_v50 = vld [vmem:[#allocation9 + $0x538] sm:$0xff] }
 0x663   :  { %3994 = vmatprep.subr.bf16.mxu0 %v3993_v3  ;;  %v2475_v3 = vsel %vm1115_vm13, %v2473_v0, %v2474_v14  ;;  %v4025_v13 = vpack.c.bf16 %v2532_v50, %v2530_v43  ;;  %v2834_v0 = vld [vmem:[#allocation10 + $0x78] sm:$0xff]  ;;  %v2549_v43 = vld [vmem:[#allocation9 + $0x5c0] sm:$0xff] }
 0x664   :  { %v5160_v50 = vpack.c.bf16 %v2834_v0, %v2832_v60  ;;  %v4047_v23 = vpack.c.bf16 %v2551_v59, %v2549_v43  ;;  %v2850_v60 = vld [vmem:[#allocation10 + $0xf8] sm:$0xff]  ;;  %v2566_v0 = vld [vmem:[#allocation9 + $0x648] sm:$0xff]  ;;  %v2565_v43 = vld [vmem:[#allocation9 + $0x640] sm:$0xff] }
 0x666   :  { %3996 = vmatpush1.bf16.msra.mxu0 %v3995_v9  ;;  %v2534_v9 = vld [vmem:[#allocation9 + $0x548] sm:$0xff] }
 0x667   :  { %3998 = vmatprep.subr.bf16.mxu0 %v3997_v20  ;;  %v2536_v20 = vld [vmem:[#allocation9 + $0x558] sm:$0xff] }
 0x668   :  { %v4029_v63 = vpack.c.bf16 %v2536_v20, %v2534_v9  ;;  %v2838_v9 = vld [vmem:[#allocation10 + $0x98] sm:$0xff]  ;;  %v2554_v20 = vld [vmem:[#allocation9 + $0x5e8] sm:$0xff] }
 0x669   :  { %2333 = vmatmul.mubr.f32.vlgmr.msra.gmra.mrb[20].mxu0 %v1847_v54  ;;  %v2537_v54 = vld [vmem:[#allocation9 + $0x560] sm:$0xff] }
 0x66a   :  { %2338 = vmatprep.mubr.f32.mxu0 %v5075_v57  ;;  %4000 = vmatpush1.bf16.msra.mxu0 %v3999_v46  ;;  %v2538_v46 = vld [vmem:[#allocation9 + $0x568] sm:$0xff]  ;;  %v4035_v16 = vpack.c.bf16 %v2539_v4, %v2537_v54  ;;  %v2555_v54 = vld [vmem:[#allocation9 + $0x5f0] sm:$0xff] }
 0x66b   :  { %4002 = vmatprep.subr.bf16.mxu0 %v4001_v31  ;;  %v2540_v31 = vld [vmem:[#allocation9 + $0x578] sm:$0xff]  ;;  %v2840_v4 = vld [vmem:[#allocation10 + $0xa8] sm:$0xff] }
 0x66c   :  { %v4033_v42 = vpack.c.bf16 %v2540_v31, %v2538_v46  ;;  %v5166_v46 = vpack.c.bf16 %v2838_v9, %v2836_v6  ;;  %v2835_v31 = vld [vmem:[#allocation10 + $0x80] sm:$0xff]  ;;  %v2567_v6 = vld [vmem:[#allocation9 + $0x650] sm:$0xff]  ;;  %v2852_v9 = vld [vmem:[#allocation10 + $0x108] sm:$0xff] }
 0x66d   :  { %2339 = vmatmul.mubr.f32.gmra.mrb[22].mxu0 %v5082_v11  ;;  %v2455_v57 = vld [vmem:[#allocation2 + $0x78] sm:$0x3] }
 0x66e   :  { %2344 = vmatprep.mubr.f32.mxu0 %v1854_v44  ;;  %4004 = vmatpush1.bf16.msra.mxu0 %v4003_v61  ;;  %v2544_v61 = vld [vmem:[#allocation9 + $0x598] sm:$0xff]  ;;  %v2543_v44 = vld [vmem:[#allocation9 + $0x590] sm:$0xff] }
 0x66f   :  { %4006 = vmatprep.subr.bf16.mxu0 %v4005_v28  ;;  %v2541_v28 = vld [vmem:[#allocation9 + $0x580] sm:$0xff]  ;;  %v4037_v18 = vpack.c.bf16 %v2544_v61, %v2542_v17  ;;  %v2842_v17 = vld [vmem:[#allocation10 + $0xb8] sm:$0xff]  ;;  %v2558_v61 = vld [vmem:[#allocation9 + $0x608] sm:$0xff] }
 0x671   :  { %2345 = vmatmul.mubr.f32.gmra.mrb[24].mxu0 %v1853_v62  ;;  %v2820_v62 = vld [vmem:[#allocation10 + $0x8] sm:$0xff] }
 0x672   :  { %2350 = vmatprep.mubr.f32.mxu0 %v5097_v55  ;;  %v5143_v53 = vpack.c.bf16 %v2822_v33, %v2820_v62  ;;  %v4051_v62 = vpack.c.bf16 %v2555_v54, %v2553_v27  ;;  %v2557_v33 = vld [vmem:[#allocation9 + $0x600] sm:$0xff]  ;;  %v2853_v54 = vld [vmem:[#allocation10 + $0x110] sm:$0xff] }
 0x674   :  { %4078 = vmatprep.subr.bf16.mxu1 %v5143_v53 }
 0x675   :  { %2351 = vmatmul.mubr.f32.gmra.mrb[26].mxu0 %v5110_v21 }
 0x676   :  { %2421 = vmatprep.mubr.f32.mxu0 %v5556_v56 }
 0x679   :  { %3393 = vmatmul.mubr.msk.f32.vlgmr.msra.gmra.mrb[20].mxu0 %vm266_vm0, %v1849_v19 }
 0x67a   :  { %4008 = vmatpush1.bf16.msra.mxu0 %v4007_v10  ;;  %2427 = vmatprep.mubr.f32.mxu0 %v5556_v56  ;;  %v2821_v10 = vld [vmem:[#allocation10 + $0x10] sm:$0xff] }
 0x67b   :  { %4010 = vmatprep.subr.bf16.mxu0 %v4009_v26  ;;  %v2824_v26 = vld [vmem:[#allocation10 + $0x28] sm:$0xff]  ;;  %v5145_v19 = vpack.c.bf16 %v2821_v10, %v2819_v8  ;;  %v5172_v8 = vpack.c.bf16 %v2842_v17, %v2840_v4  ;;  %v2841_v10 = vld [vmem:[#allocation10 + $0xb0] sm:$0xff]  ;;  %v2569_v17 = vld [vmem:[#allocation9 + $0x660] sm:$0xff] }
 0x67c   :  { %v5147_v29 = vpack.c.bf16 %v2826_v1, %v2824_v26  ;;  %v2559_v1 = vld [vmem:[#allocation9 + $0x610] sm:$0xff] }
 0x67d   :  { %3394 = vmatmul.mubr.msk.f32.gmra.mrb[22].mxu0 %vm266_vm0, %v5085_v41  ;;  %4080 = vmatpush1.bf16.msra.mxu1 %v5145_v19 }
 0x67e   :  { %4012 = vmatpush1.bf16.msra.mxu0 %v4011_v34  ;;  %2433 = vmatprep.mubr.f32.mxu0 %v5556_v56  ;;  %v2825_v34 = vld [vmem:[#allocation10 + $0x30] sm:$0xff] }
 0x67f   :  { %4014 = vmatprep.subr.bf16.mxu0 %v4013_v47  ;;  %v2828_v47 = vld [vmem:[#allocation10 + $0x48] sm:$0xff]  ;;  %v5151_v25 = vpack.c.bf16 %v2825_v34, %v2823_v30  ;;  %4082 = vmatprep.subr.bf16.mxu1 %v5147_v29  ;;  %v2846_v30 = vld [vmem:[#allocation10 + $0xd8] sm:$0xff] }
 0x680   :  { %v2562_v34 = vld [vmem:[#allocation9 + $0x628] sm:$0xff] }
 0x681   :  { %3395 = vmatmul.mubr.msk.f32.gmra.mrb[24].mxu0 %vm266_vm0, %v1855_v48  ;;  %v4041_v48 = vpack.c.bf16 %v2548_v52, %v2546_v35  ;;  %4084 = vmatpush1.bf16.msra.mxu1 %v5151_v25  ;;  %v4055_v52 = vpack.c.bf16 %v2559_v1, %v2557_v33 }
 0x682   :  { %4016 = vmatpush1.bf16.msra.mxu0 %v4015_v22  ;;  %2439 = vmatprep.mubr.f32.mxu0 %v5556_v56  ;;  %v4039_v22 = vpack.c.bf16 %v2543_v44, %v2541_v28  ;;  %v2560_v28 = vld [vmem:[#allocation9 + $0x618] sm:$0xff] }
 0x683   :  { %4018 = vmatprep.subr.bf16.mxu0 %v4017_v2  ;;  %v5154_v2 = vpack.c.bf16 %v2830_v58, %v2828_v47  ;;  %v4053_v26 = vpack.c.bf16 %v2560_v28, %v2558_v61  ;;  %v2564_v47 = vld [vmem:[#allocation9 + $0x638] sm:$0xff]  ;;  %v2561_v58 = vld [vmem:[#allocation9 + $0x620] sm:$0xff]  ;;  %v2571_v61 = vld [vmem:[#allocation9 + $0x670] sm:$0xff] }
 0x684   :  { %v4057_v39 = vpack.c.bf16 %v2564_v47, %v2562_v34  ;;  %v2574_v28 = vld [vmem:[#allocation9 + $0x688] sm:$0xff]  ;;  %v2471_v34 = vrot.slane %v5082_v11, 2 }
 0x685   :  { %3396 = vmatmul.mubr.msk.f32.gmra.mrb[26].mxu0 %vm266_vm0, %v5112_v7  ;;  %4086 = vmatprep.subr.bf16.mxu1 %v5154_v2  ;;  %v2578_v47 = vld [vmem:[#allocation9 + $0x6a8] sm:$0xff] }
 0x686   :  { %4020 = vmatpush1.bf16.msra.mxu0 %v4019_v12  ;;  %2653 = vmatprep.mubr.f32.mxu0 %v2475_v3  ;;  %v2550_v12 = vld [vmem:[#allocation9 + $0x5c8] sm:$0xff]  ;;  %v2831_v3 = vld [vmem:[#allocation10 + $0x60] sm:$0xff] }
 0x687   :  { %4022 = vmatprep.subr.bf16.mxu0 %v4021_v24  ;;  %v2552_v24 = vld [vmem:[#allocation9 + $0x5d8] sm:$0xff]  ;;  %4088 = vmatpush1.bf16.msra.mxu1 %v5157_v37 }
 0x688   :  { %4090 = vmatprep.subr.bf16.mxu1 %v5160_v50 }
 0x68a   :  { %4024 = vmatpush1.bf16.msra.mxu0 %v4023_v5  ;;  %v2833_v5 = vld [vmem:[#allocation10 + $0x70] sm:$0xff] }
 0x68b   :  { %4026 = vmatprep.subr.bf16.mxu0 %v4025_v13  ;;  %v4045_v13 = vpack.c.bf16 %v2552_v24, %v2550_v12  ;;  %v2568_v12 = vld [vmem:[#allocation9 + $0x658] sm:$0xff]  ;;  %v5181_v24 = vpack.c.bf16 %v2845_v38, %v2843_v40  ;;  %v2449_v40 = vld [vmem:[#allocation2 + $0x30] sm:$0x3] }
 0x68c   :  { %v4061_v59 = vpack.c.bf16 %v2568_v12, %v2566_v0  ;;  %v2579_v0 = vld [vmem:[#allocation9 + $0x6b0] sm:$0xff] }
 0x68e   :  { %4028 = vmatpush1.bf16.msra.mxu0 %v4027_v15  ;;  %v2556_v15 = vld [vmem:[#allocation9 + $0x5f8] sm:$0xff] }
 0x68f   :  { %4030 = vmatprep.subr.bf16.mxu0 %v4029_v63  ;;  %v5163_v63 = vpack.c.bf16 %v2833_v5, %v2831_v3  ;;  %v5184_v3 = vpack.c.bf16 %v2850_v60, %v2848_v51  ;;  %v2847_v5 = vld [vmem:[#allocation10 + $0xe0] sm:$0xff] }
 0x690   :  { %v2577_v60 = vld [vmem:[#allocation9 + $0x6a0] sm:$0xff] }
 0x691   :  { %4092 = vmatpush1.bf16.msra.mxu1 %v5163_v63 }
 0x692   :  { %4032 = vmatpush1.bf16.msra.mxu0 %v4031_v32  ;;  %v2837_v32 = vld [vmem:[#allocation10 + $0x90] sm:$0xff]  ;;  %4094 = vmatprep.subr.bf16.mxu1 %v5166_v46 }
 0x693   :  { %4034 = vmatprep.subr.bf16.mxu0 %v4033_v42  ;;  %v4049_v42 = vpack.c.bf16 %v2556_v15, %v2554_v20  ;;  %v5169_v44 = vpack.c.bf16 %v2837_v32, %v2835_v31  ;;  %v2854_v20 = vld [vmem:[#allocation10 + $0x118] sm:$0xff]  ;;  %v2570_v15 = vld [vmem:[#allocation9 + $0x668] sm:$0xff]  ;;  %v4063_v31 = vpack.c.bf16 %v2567_v6, %v2565_v43 }
 0x694   :  { %v5190_v32 = vpack.c.bf16 %v2854_v20, %v2852_v9  ;;  %v2452_v6 = vld [vmem:[#allocation2 + $0x48] sm:$0xfc]  ;;  %v2486_v20 = vrot.slane %v5110_v21, 2  ;;  %v2477_v21 = vrot.slane %v5085_v41, 2  ;;  %v2457_v41 = vld [vmem:[#allocation2 + $0x88] sm:$0x3] }
 0x695   :  { %4096 = vmatpush1.bf16.msra.mxu1 %v5169_v44 }
 0x696   :  { %4036 = vmatpush1.bf16.msra.mxu0 %v4035_v16  ;;  %v2839_v16 = vld [vmem:[#allocation10 + $0xa0] sm:$0xff]  ;;  %4098 = vmatprep.subr.bf16.mxu1 %v5172_v8 }
 0x697   :  { %4038 = vmatprep.subr.bf16.mxu0 %v4037_v18  ;;  %v2844_v18 = vld [vmem:[#allocation10 + $0xc8] sm:$0xff]  ;;  %v5175_v35 = vpack.c.bf16 %v2841_v10, %v2839_v16  ;;  %v4067_v16 = vpack.c.bf16 %v2571_v61, %v2569_v17  ;;  %v2451_v17 = vld [vmem:[#allocation2 + $0x40] sm:$0x3] }
 0x698   :  { %v2450_v10 = vld [vmem:[#allocation2 + $0x38] sm:$0x3] }
 0x699   :  { %4100 = vmatpush1.bf16.msra.mxu1 %v5175_v35 }
 0x69a   :  { %4040 = vmatpush1.bf16.msra.mxu0 %v4039_v22  ;;  %v5178_v22 = vpack.c.bf16 %v2846_v30, %v2844_v18  ;;  %v2573_v18 = vld [vmem:[#allocation9 + $0x680] sm:$0xff]  ;;  %v2575_v30 = vld [vmem:[#allocation9 + $0x690] sm:$0xff] }
 0x69b   :  { %4042 = vmatprep.subr.bf16.mxu0 %v4041_v48  ;;  %v2563_v48 = vld [vmem:[#allocation9 + $0x630] sm:$0xff] }
 0x69c   :  { %4102 = vmatprep.subr.bf16.mxu1 %v5178_v22 }
 0x69d   :  { %4104 = vmatpush1.bf16.msra.mxu1 %v5181_v24 }
 0x69e   :  { %4044 = vmatpush1.bf16.msra.mxu0 %v4043_v36  ;;  %v4059_v36 = vpack.c.bf16 %v2563_v48, %v2561_v58  ;;  %4106 = vmatprep.subr.bf16.mxu1 %v5184_v3  ;;  %v2481_v58 = vrot.slane %v2450_v10, 2  ;;  %v2453_v48 = vld [vmem:[#allocation2 + $0x50] sm:$0xfc] }
 0x69f   :  { %4046 = vmatprep.subr.bf16.mxu0 %v4045_v13  ;;  %v2849_v13 = vld [vmem:[#allocation10 + $0xf0] sm:$0xff]  ;;  %v2488_v43 = vrot.slane %v2453_v48, 2 }
 0x6a0   :  { %v5187_v27 = vpack.c.bf16 %v2849_v13, %v2847_v5  ;;  %v2482_v11 = vsel %vm1115_vm13, %v2474_v14, %v2481_v58  ;;  %v2456_v5 = vld [vmem:[#allocation2 + $0x80] sm:$0x3]  ;;  %v4075_v13 = vpack.c.bf16 %v2579_v0, %v2577_v60  ;;  %v2485_v14 = vrot.slane %v2452_v6, 2 }
 0x6a2   :  { %4048 = vmatpush1.bf16.msra.mxu0 %v4047_v23  ;;  %v2572_v23 = vld [vmem:[#allocation9 + $0x678] sm:$0xff]  ;;  %4108 = vmatpush1.bf16.msra.mxu1 %v5187_v27 }
 0x6a3   :  { %4050 = vmatprep.subr.bf16.mxu0 %v4049_v42  ;;  %v2851_v42 = vld [vmem:[#allocation10 + $0x100] sm:$0xff]  ;;  %v4065_v4 = vpack.c.bf16 %v2572_v23, %v2570_v15  ;;  %4110 = vmatprep.subr.bf16.mxu1 %v5190_v32  ;;  %v2496_v23 = vrot.slane %v2456_v5, 2 }
 0x6a4   :  { %v5193_v33 = vpack.c.bf16 %v2853_v54, %v2851_v42  ;;  %v2494_v42 = vrot.slane %v2455_v57, 2  ;;  %v2448_v54 = vld [vmem:[#allocation2 + $0x10] sm:$0xfc]  ;;  %v2856_v57 = vld [vmem:[#allocation10 + $0x128] sm:$0xff] }
 0x6a5   :  { %v2476_v61 = vrot.slane %v2448_v54, 2 }
 0x6a6   :  { %4052 = vmatpush1.bf16.msra.mxu0 %v4051_v62  ;;  %v2576_v62 = vld [vmem:[#allocation9 + $0x698] sm:$0xff]  ;;  %4112 = vmatpush1.bf16.msra.mxu1 %v5193_v33 }
 0x6a7   :  { %4054 = vmatprep.subr.bf16.mxu0 %v4053_v26  ;;  %v2446_v26 = vld [vmem:[#allocation2] sm:$0xfc]  ;;  %v4069_v1 = vpack.c.bf16 %v2576_v62, %v2574_v28  ;;  %v2478_v28 = vsel %vm1115_vm13, %v2476_v61, %v2477_v21  ;;  %v2483_v62 = vrot.slane %v2451_v17, 2  ;;  %v2859_v61 = vld [vmem:[#allocation10 + $0x140] sm:$0xff] }
 0x6a8   :  { %v2470_v38 = vrot.slane %v2446_v26, 2  ;;  %v2492_v26 = vrot.slane %v5112_v7, 2 }
 0x6a9   :  { %v2484_v10 = vsel %vm1115_vm13, %v2477_v21, %v2483_v62  ;;  %v2862_v21 = vld [vmem:[#allocation10 + $0x158] sm:$0xff] }
 0x6aa   :  { %4056 = vmatpush1.bf16.msra.mxu0 %v4055_v52  ;;  %v2580_v52 = vld [vmem:[#allocation9 + $0x6b8] sm:$0xff]  ;;  %v2472_v12 = vsel %vm1115_vm13, %v2470_v38, %v2471_v34 }
 0x6ab   :  { %4058 = vmatprep.subr.bf16.mxu0 %v4057_v39  ;;  %v4071_v39 = vpack.c.bf16 %v2575_v30, %v2573_v18  ;;  %v4073_v51 = vpack.c.bf16 %v2580_v52, %v2578_v47  ;;  %v2498_v30 = vrot.slane %v2457_v41, 2  ;;  %v2863_v41 = vld [vmem:[#allocation10 + $0x160] sm:$0xff] }
 0x6ae   :  { %4060 = vmatpush1.bf16.msra.mxu0 %v4059_v36  ;;  %v2479_v36 = vrot.slane %v2449_v40, 2 }
 0x6af   :  { %4062 = vmatprep.subr.bf16.mxu0 %v4061_v59  ;;  %v2489_v59 = vrot.slane %v5097_v55, 2 }
 0x6b0   :  { %v2480_v9 = vsel %vm1115_vm13, %v2471_v34, %v2479_v36  ;;  %v2499_v34 = vsel %vm1115_vm13, %v2492_v26, %v2498_v30  ;;  %v2868_v30 = vld [vmem:[#allocation10 + $0x188] sm:$0xff] }
 0x6b1   :  { %v2490_v15 = vsel %vm1115_vm13, %v2488_v43, %v2489_v59  ;;  %v2497_v55 = vsel %vm1115_vm13, %v2489_v59, %v2496_v23 }
 0x6b2   :  { %4064 = vmatpush1.bf16.msra.mxu0 %v4063_v31  ;;  %v2487_v31 = vsel %vm1115_vm13, %v2485_v14, %v2486_v20  ;;  %v2858_v14 = vld [vmem:[#allocation10 + $0x138] sm:$0xff] }
 0x6b3   :  { %4066 = vmatprep.subr.bf16.mxu0 %v4065_v4  ;;  %v2495_v4 = vsel %vm1115_vm13, %v2486_v20, %v2494_v42  ;;  %v2855_v42 = vld [vmem:[#allocation10 + $0x120] sm:$0xff] }
 0x6b6   :  { %4068 = vmatpush1.bf16.msra.mxu0 %v4067_v16  ;;  %v2454_v16 = vld [vmem:[#allocation2 + $0x58] sm:$0xfc] }
 0x6b7   :  { %4070 = vmatprep.subr.bf16.mxu0 %v4069_v1  ;;  %v2491_v1 = vrot.slane %v2454_v16, 2  ;;  %v2864_v16 = vld [vmem:[#allocation10 + $0x168] sm:$0xff] }
 0x6b9   :  { %2654 = vmatmul.mubr.f32.vlgmr.msra.gmra.mrb[20].mxu0 %v2472_v12  ;;  %v2493_v18 = vsel %vm1115_vm13, %v2491_v1, %v2492_v26  ;;  %v2865_v1 = vld [vmem:[#allocation10 + $0x170] sm:$0xff] }
 0x6ba   :  { %2659 = vmatprep.mubr.f32.mxu0 %v2482_v11  ;;  %4072 = vmatpush1.bf16.msra.mxu0 %v4071_v39 }
 0x6bb   :  { %4074 = vmatprep.subr.bf16.mxu0 %v4073_v51 }
 0x6bd   :  { %2660 = vmatmul.mubr.f32.gmra.mrb[22].mxu0 %v2480_v9 }
 0x6be   :  { %2665 = vmatprep.mubr.f32.mxu0 %v2490_v15  ;;  %4076 = vmatpush1.bf16.msra.mxu0 %v4075_v13 }
 0x6c1   :  { %2666 = vmatmul.mubr.f32.gmra.mrb[24].mxu0 %v2487_v31  ;;  %v5239_v31 = vpack.c.bf16 %v2858_v14, %v2856_v57  ;;  %v2880_v57 = vld [vmem:[#allocation10 + $0x1e8] sm:$0xff]  ;;  %v2882_v14 = vld [vmem:[#allocation10 + $0x1f8] sm:$0xff] }
 0x6c2   :  { %2671 = vmatprep.mubr.f32.mxu0 %v2497_v55  ;;  %v2857_v55 = vld [vmem:[#allocation10 + $0x130] sm:$0xff] }
 0x6c3   :  { %v5241_v54 = vpack.c.bf16 %v2857_v55, %v2855_v42  ;;  %4114 = vmatprep.subr.bf16.mxu1 %v5239_v31  ;;  %v5275_v42 = vpack.c.bf16 %v2882_v14, %v2880_v57  ;;  %v2879_v55 = vld [vmem:[#allocation10 + $0x1e0] sm:$0xff] }
 0x6c5   :  { %2672 = vmatmul.mubr.f32.gmra.mrb[26].mxu0 %v2495_v4  ;;  %4116 = vmatpush1.bf16.msra.mxu1 %v5241_v54  ;;  %v2860_v4 = vld [vmem:[#allocation10 + $0x148] sm:$0xff] }
 0x6c6   :  { %2742 = vmatprep.mubr.f32.mxu0 %v5556_v56  ;;  %v5245_v17 = vpack.c.bf16 %v2862_v21, %v2860_v4  ;;  %v2881_v4 = vld [vmem:[#allocation10 + $0x1f0] sm:$0xff] }
 0x6c7   :  { %v5277_v21 = vpack.c.bf16 %v2881_v4, %v2879_v55 }
 0x6c8   :  { %4118 = vmatprep.subr.bf16.mxu1 %v5245_v17 }
 0x6c9   :  { %3397 = vmatmul.mubr.msk.f32.vlgmr.msra.gmra.mrb[20].mxu0 %vm266_vm0, %v2478_v28  ;;  %v2861_v28 = vld [vmem:[#allocation10 + $0x150] sm:$0xff] }
 0x6ca   :  { %2748 = vmatprep.mubr.f32.mxu0 %v5556_v56  ;;  %v5247_v62 = vpack.c.bf16 %v2861_v28, %v2859_v61 }
 0x6cc   :  { %4120 = vmatpush1.bf16.msra.mxu1 %v5247_v62 }
 0x6cd   :  { %3398 = vmatmul.mubr.msk.f32.gmra.mrb[22].mxu0 %vm266_vm0, %v2484_v10  ;;  %v2866_v10 = vld [vmem:[#allocation10 + $0x178] sm:$0xff] }
 0x6ce   :  { %2754 = vmatprep.mubr.f32.mxu0 %v5556_v56  ;;  %v5251_v26 = vpack.c.bf16 %v2866_v10, %v2864_v16 }
 0x6d0   :  { %4122 = vmatprep.subr.bf16.mxu1 %v5251_v26 }
 0x6d1   :  { %3399 = vmatmul.mubr.msk.f32.gmra.mrb[24].mxu0 %vm266_vm0, %v2493_v18  ;;  %v5253_v18 = vpack.c.bf16 %v2865_v1, %v2863_v41 }
 0x6d2   :  { %2760 = vmatprep.mubr.f32.mxu0 %v5556_v56 }
 0x6d3   :  { %4124 = vmatpush1.bf16.msra.mxu1 %v5253_v18 }
 0x6d5   :  { %3400 = vmatmul.mubr.msk.f32.gmra.mrb[26].mxu0 %vm266_vm0, %v2499_v34  ;;  %v2870_v34 = vld [vmem:[#allocation10 + $0x198] sm:$0xff] }
 0x6fc   :  { %v2146_v47 = vpop.f32.mrb[12].mxu0 }
 0x6fd   :  { %v2235_v52 = vpop.f32.mrb[16].mxu1  ;;  %v2148_v7 = vpop.f32.mrb[13].mxu0 }
 0x6fe   :  { %v2237_v58 = vpop.f32.mrb[17].mxu1  ;;  %v5223_v40 = vadd.f32 %v2235_v52, %v2146_v47  ;;  %v5257_v47 = vpack.c.bf16 %v2870_v34, %v2868_v30  ;;  %v2867_v52 = vld [vmem:[#allocation10 + $0x180] sm:$0xff] }
 0x6ff   :  { %v5225_v38 = vadd.f32 %v2237_v58, %v2148_v7  ;;  %v2869_v7 = vld [vmem:[#allocation10 + $0x190] sm:$0xff] }
 0x700   :  { %v5259_v58 = vpack.c.bf16 %v2869_v7, %v2867_v52  ;;  %4126 = vmatprep.subr.bf16.mxu1 %v5257_v47 }
 0x701   :  { %v2241_v39 = vpop.f32.mrb[18].mxu1 }
 0x702   :  { %v2243_v48 = vpop.f32.mrb[19].mxu1  ;;  %4128 = vmatpush1.bf16.msra.mxu1 %v5259_v58 }
 0x703   :  { %v2152_v51 = vpop.f32.mrb[14].mxu0 }
 0x704   :  { %v5227_v60 = vadd.f32 %v2241_v39, %v2152_v51  ;;  %v2154_v0 = vpop.f32.mrb[15].mxu0  ;;  %v2872_v39 = vld [vmem:[#allocation10 + $0x1a8] sm:$0xff] }
 0x705   :  { %v5229_v12 = vadd.f32 %v2243_v48, %v2154_v0  ;;  %v2874_v48 = vld [vmem:[#allocation10 + $0x1b8] sm:$0xff]  ;;  %v2871_v0 = vld [vmem:[#allocation10 + $0x1a0] sm:$0xff] }
 0x706   :  { %v5263_v51 = vpack.c.bf16 %v2874_v48, %v2872_v39 }
 0x708   :  { %v2158_v56 = vpop.f32.mrb[16].mxu0  ;;  %4130 = vmatprep.subr.bf16.mxu1 %v5263_v51 }
 0x709   :  { %v2247_v36 = vpop.f32.mrb[20].mxu1  ;;  %v2160_v11 = vpop.f32.mrb[17].mxu0 }
 0x70a   :  { %v2249_v43 = vpop.f32.mrb[21].mxu1  ;;  %v5231_v5 = vadd.f32 %v2247_v36, %v2158_v56  ;;  %v2873_v56 = vld [vmem:[#allocation10 + $0x1b0] sm:$0xff] }
 0x70b   :  { %v5233_v13 = vadd.f32 %v2249_v43, %v2160_v11  ;;  %v5265_v36 = vpack.c.bf16 %v2873_v56, %v2871_v0  ;;  %v2876_v11 = vld [vmem:[#allocation10 + $0x1c8] sm:$0xff]  ;;  %v2878_v43 = vld [vmem:[#allocation10 + $0x1d8] sm:$0xff] }
 0x70d   :  { %v2253_v59 = vpop.f32.mrb[22].mxu1  ;;  %4132 = vmatpush1.bf16.msra.mxu1 %v5265_v36 }
 0x70e   :  { %v2255_v6 = vpop.f32.mrb[23].mxu1 }
 0x70f   :  { %v2164_v9 = vpop.f32.mrb[18].mxu0 }
 0x710   :  { %v5235_v20 = vadd.f32 %v2253_v59, %v2164_v9  ;;  %v2166_v15 = vpop.f32.mrb[19].mxu0  ;;  %v5269_v59 = vpack.c.bf16 %v2878_v43, %v2876_v11  ;;  %v2877_v9 = vld [vmem:[#allocation10 + $0x1d0] sm:$0xff] }
 0x711   :  { %v5237_v23 = vadd.f32 %v2255_v6, %v2166_v15  ;;  %v2875_v6 = vld [vmem:[#allocation10 + $0x1c0] sm:$0xff] }
 0x712   :  { %v5271_v15 = vpack.c.bf16 %v2877_v9, %v2875_v6  ;;  %4134 = vmatprep.subr.bf16.mxu1 %v5269_v59 }
 0x714   :  { %4136 = vmatpush1.bf16.msra.mxu1 %v5271_v15 }
 0x715   :  { %4138 = vmatprep.subr.bf16.mxu1 %v5275_v42 }
 0x718   :  { %4140 = vmatpush1.bf16.msra.mxu1 %v5277_v21 }
 0x719   :  { %4142 = vmatprep.subr.bf16.mxu1 %v5143_v53 }
 0x79c   :  { %v2744_v61 = vpop.f32.mrb[20].mxu0 }
 0x79d   :  { %v5283_v28 = vadd.f32 %v2744_v61, %v5223_v40  ;;  %v2746_v16 = vpop.f32.mrb[21].mxu0 }
 0x79e   :  { %v5286_v10 = vadd.f32 %v2746_v16, %v5225_v38 }
 0x7a0   :  { %v2750_v41 = vpop.f32.mrb[22].mxu0 }
 0x7a1   :  { %v5289_v1 = vadd.f32 %v2750_v41, %v5227_v60  ;;  %v2752_v30 = vpop.f32.mrb[23].mxu0  ;;  %v2794_v60 = vmul.f32 %v5286_v10, %v5286_v10 }
 0x7a2   :  { %v5292_v34 = vadd.f32 %v2752_v30, %v5229_v12 }
 0x7a3   :  { %v2775_v38 = vadd.f32 %v5289_v1, %v5283_v28 }
 0x7a4   :  { %v2756_v52 = vpop.f32.mrb[24].mxu0  ;;  %v2796_v40 = vmul.f32 %v5292_v34, %v5292_v34  ;;  %v2784_v12 = vadd.f32 %v5292_v34, %v5286_v10 }
 0x7a5   :  { %v5295_v7 = vadd.f32 %v2756_v52, %v5231_v5  ;;  %v2758_v53 = vpop.f32.mrb[25].mxu0 }
 0x7a6   :  { %v5300_v39 = vadd.f32 %v2758_v53, %v5233_v13  ;;  %v2810_v11 = vadd.f32 %v2796_v40, %v2794_v60 }
 0x7a7   :  { %v2776_v0 = vadd.f32 %v5295_v7, %v2775_v38 }
 0x7a8   :  { %v2798_v5 = vmul.f32 %v5300_v39, %v5300_v39  ;;  %v2762_v48 = vpop.f32.mrb[26].mxu0  ;;  %v2785_v43 = vadd.f32 %v5300_v39, %v2784_v12 }
 0x7a9   :  { %v5312_v56 = vadd.f32 %v2762_v48, %v5235_v20  ;;  %v2764_v13 = vpop.f32.mrb[27].mxu0 }
 0x7aa   :  { %v5316_v6 = vadd.f32 %v2764_v13, %v5237_v23  ;;  %v2811_v57 = vadd.f32 %v2810_v11, %v2798_v5 }
 0x7ab   :  { %v2777_v9 = vadd.f32 %v5312_v56, %v2776_v0 }
 0x7ac   :  { %v2786_v14 = vadd.f32 %v5316_v6, %v2785_v43  ;;  %v2800_v55 = vmul.f32 %v5316_v6, %v5316_v6 }
 0x7ad   :  { %v2778_v4 = vrot.slane %v2777_v9, 4 }
 0x7ae   :  { %v2787_v61 = vrot.slane %v2786_v14, 4  ;;  %v2812_v16 = vadd.f32 %v2811_v57, %v2800_v55  ;;  %v3138_v57 = vld [vmem:[%s5544_s10 + $0xb8] sm:$0xff]  ;;  %v3121_v55 = vld [vmem:[%s5544_s10 + $0x30] sm:$0xff] }
 0x7af   :  { %v2779_v20 = vadd.f32 %v2778_v4, %v2777_v9  ;;  %v3137_v9 = vld [vmem:[%s5544_s10 + $0xb0] sm:$0xff]  ;;  %v3122_v4 = vld [vmem:[%s5544_s10 + $0x38] sm:$0xff] }
 0x7b0   :  { %v2788_v41 = vadd.f32 %v2787_v61, %v2786_v14  ;;  %v2813_v30 = vrot.slane %v2812_v16, 4  ;;  %v4217_v14 = vpack.c.bf16 %v3138_v57, %v3137_v9  ;;  %v4219_v61 = vpack.c.bf16 %v3122_v4, %v3121_v55 }
 0x7b1   :  { %v2780_v52 = vrot.slane %v2779_v20, 2 }
 0x7b2   :  { %v2789_v53 = vrot.slane %v2788_v41, 2  ;;  %v2814_v40 = vadd.f32 %v2813_v30, %v2812_v16  ;;  %v3139_v16 = vld [vmem:[%s5544_s10 + $0xc0] sm:$0xff] }
 0x7b3   :  { %v2781_v38 = vadd.f32 %v2780_v52, %v2779_v20  ;;  %v3140_v20 = vld [vmem:[%s5544_s10 + $0xc8] sm:$0xff]  ;;  %v3123_v30 = vld [vmem:[%s5544_s10 + $0x40] sm:$0xff] }
 0x7b4   :  { %v2790_v23 = vadd.f32 %v2789_v53, %v2788_v41  ;;  %v2815_v60 = vrot.slane %v2814_v40, 2  ;;  %v4221_v41 = vpack.c.bf16 %v3140_v20, %v3139_v16  ;;  %v3124_v52 = vld [vmem:[%s5544_s10 + $0x48] sm:$0xff] }
 0x7b5   :  { %v2782_v12 = vrot.slane %v2781_v38, 1  ;;  %v4223_v53 = vpack.c.bf16 %v3124_v52, %v3123_v30 }
 0x7b6   :  { %v2791_v48 = vrot.slane %v2790_v23, 1  ;;  %v2816_v5 = vadd.f32 %v2815_v60, %v2814_v40  ;;  %v3141_v40 = vld [vmem:[%s5544_s10 + $0xd0] sm:$0xff] }
 0x7b7   :  { %v2783_v11 = vadd.f32 %v2782_v12, %v2781_v38  ;;  %v3142_v38 = vld [vmem:[%s5544_s10 + $0xd8] sm:$0xff]  ;;  %v3125_v60 = vld [vmem:[%s5544_s10 + $0x50] sm:$0xff] }
 0x7b8   :  { %v2792_v0 = vadd.f32 %v2791_v48, %v2790_v23  ;;  %v2817_v13 = vrot.slane %v2816_v5, 1  ;;  %v4225_v23 = vpack.c.bf16 %v3142_v38, %v3141_v40  ;;  %v3126_v12 = vld [vmem:[%s5544_s10 + $0x58] sm:$0xff] }
 0x7b9   :  { %v4227_v48 = vpack.c.bf16 %v3126_v12, %v3125_v60 }
 0x7ba   :  { %2947 = vmatprep.mubr.f32.mxu1 %v2792_v0  ;;  %v2818_v43 = vadd.f32 %v2817_v13, %v2816_v5  ;;  %v3143_v5 = vld [vmem:[%s5544_s10 + $0xe0] sm:$0xff]  ;;  %v3144_v0 = vld [vmem:[%s5544_s10 + $0xe8] sm:$0xff] }
 0x7bb   :  { %2948 = vmatmul.mubr.f32.vlgmr.msra.gmra.mrb[24].mxu1 %v2783_v11  ;;  %v3127_v13 = vld [vmem:[%s5544_s10 + $0x60] sm:$0xff]  ;;  %v4229_v11 = vpack.c.bf16 %v3144_v0, %v3143_v5 }
 0x7bc   :  { %4144 = vmatpush1.bf16.msra.mxu1 %v5145_v19  ;;  %3018 = vmatprep.mubr.f32.mxu1 %v2818_v43  ;;  %v2795_v19 = vmul.f32 %v5289_v1, %v5289_v1  ;;  %v3128_v43 = vld [vmem:[%s5544_s10 + $0x68] sm:$0xff] }
 0x7bd   :  { %4146 = vmatprep.subr.bf16.mxu1 %v5147_v29  ;;  %v2793_v29 = vmul.f32 %v5283_v28, %v5283_v28 }
 0x7c0   :  { %4148 = vmatpush1.bf16.msra.mxu1 %v5151_v25  ;;  %v2797_v25 = vmul.f32 %v5295_v7, %v5295_v7 }
 0x7c1   :  { %4150 = vmatprep.subr.bf16.mxu1 %v5154_v2  ;;  %v2801_v2 = vadd.f32 %v2795_v19, %v2793_v29  ;;  %v3145_v19 = vld [vmem:[%s5544_s10 + $0xf0] sm:$0xff]  ;;  %v3146_v29 = vld [vmem:[%s5544_s10 + $0xf8] sm:$0xff] }
 0x7c4   :  { %4152 = vmatpush1.bf16.msra.mxu1 %v5157_v37  ;;  %v2799_v37 = vmul.f32 %v5312_v56, %v5312_v56 }
 0x7c5   :  { %4154 = vmatprep.subr.bf16.mxu1 %v5160_v50  ;;  %v2802_v50 = vadd.f32 %v2801_v2, %v2797_v25  ;;  %v4231_v25 = vpack.c.bf16 %v3128_v43, %v3127_v13  ;;  %v4233_v2 = vpack.c.bf16 %v3146_v29, %v3145_v19 }
 0x7c8   :  { %4156 = vmatpush1.bf16.msra.mxu1 %v5163_v63  ;;  %v2803_v63 = vadd.f32 %v2802_v50, %v2799_v37  ;;  %v3129_v37 = vld [vmem:[%s5544_s10 + $0x70] sm:$0xff]  ;;  %v3130_v50 = vld [vmem:[%s5544_s10 + $0x78] sm:$0xff] }
 0x7c9   :  { %4158 = vmatprep.subr.bf16.mxu1 %v5166_v46 }
 0x7ca   :  { %v2804_v46 = vrot.slane %v2803_v63, 4 }
 0x7cc   :  { %4160 = vmatpush1.bf16.msra.mxu1 %v5169_v44  ;;  %v2805_v44 = vadd.f32 %v2804_v46, %v2803_v63  ;;  %v4235_v63 = vpack.c.bf16 %v3130_v50, %v3129_v37 }
 0x7cd   :  { %4162 = vmatprep.subr.bf16.mxu1 %v5172_v8 }
 0x7ce   :  { %v2806_v8 = vrot.slane %v2805_v44, 2 }
 0x7d0   :  { %4164 = vmatpush1.bf16.msra.mxu1 %v5175_v35  ;;  %v2807_v35 = vadd.f32 %v2806_v8, %v2805_v44 }
 0x7d1   :  { %4166 = vmatprep.subr.bf16.mxu1 %v5178_v22 }
 0x7d2   :  { %v2808_v22 = vrot.slane %v2807_v35, 1 }
 0x7d4   :  { %4168 = vmatpush1.bf16.msra.mxu1 %v5181_v24  ;;  %v2809_v24 = vadd.f32 %v2808_v22, %v2807_v35 }
 0x7d5   :  { %4170 = vmatprep.subr.bf16.mxu1 %v5184_v3  ;;  %v3131_v3 = vld [vmem:[%s5544_s10 + $0x80] sm:$0xff] }
 0x7d8   :  { %4172 = vmatpush1.bf16.msra.mxu1 %v5187_v27  ;;  %v3132_v27 = vld [vmem:[%s5544_s10 + $0x88] sm:$0xff] }
 0x7d9   :  { %4174 = vmatprep.subr.bf16.mxu1 %v5190_v32  ;;  %v3115_v32 = vld [vmem:[%s5544_s10] sm:$0xff] }
 0x7dc   :  { %4176 = vmatpush1.bf16.msra.mxu1 %v5193_v33  ;;  %v4205_v33 = vpack.c.bf16 %v3132_v27, %v3131_v3 }
 0x7dd   :  { %4178 = vmatprep.subr.bf16.mxu1 %v5239_v31  ;;  %v3116_v31 = vld [vmem:[%s5544_s10 + $0x8] sm:$0xff] }
 0x7e0   :  { %4180 = vmatpush1.bf16.msra.mxu1 %v5241_v54  ;;  %v4207_v54 = vpack.c.bf16 %v3116_v31, %v3115_v32 }
 0x7e1   :  { %4182 = vmatprep.subr.bf16.mxu1 %v5245_v17  ;;  %v3133_v17 = vld [vmem:[%s5544_s10 + $0x90] sm:$0xff] }
 0x7e4   :  { %4184 = vmatpush1.bf16.msra.mxu1 %v5247_v62  ;;  %v3134_v62 = vld [vmem:[%s5544_s10 + $0x98] sm:$0xff] }
 0x7e5   :  { %4186 = vmatprep.subr.bf16.mxu1 %v5251_v26  ;;  %v4209_v26 = vpack.c.bf16 %v3134_v62, %v3133_v17  ;;  %v3067_v62 = vld [vmem:[%s5541_s7] sm:$0x3] }
 0x7e8   :  { %4188 = vmatpush1.bf16.msra.mxu1 %v5253_v18  ;;  %v3117_v18 = vld [vmem:[%s5544_s10 + $0x10] sm:$0xff] }
 0x7e9   :  { %4190 = vmatprep.subr.bf16.mxu1 %v5257_v47  ;;  %v3118_v47 = vld [vmem:[%s5544_s10 + $0x18] sm:$0xff] }
 0x7ec   :  { %4192 = vmatpush1.bf16.msra.mxu1 %v5259_v58  ;;  %v4211_v58 = vpack.c.bf16 %v3118_v47, %v3117_v18  ;;  %v3087_v18 = vld [vmem:[%s5542_s8] sm:$0x3]  ;;  %v3072_v47 = vrot.slane %v3067_v62, %v4981_v49 }
 0x7ed   :  { %4194 = vmatprep.subr.bf16.mxu1 %v5263_v51  ;;  %v3135_v51 = vld [vmem:[%s5544_s10 + $0xa0] sm:$0xff] }
 0x7f0   :  { %4196 = vmatpush1.bf16.msra.mxu1 %v5265_v36  ;;  %v3136_v36 = vld [vmem:[%s5544_s10 + $0xa8] sm:$0xff] }
 0x7f1   :  { %4198 = vmatprep.subr.bf16.mxu1 %v5269_v59  ;;  %v4213_v59 = vpack.c.bf16 %v3136_v36, %v3135_v51 }
 0x7f4   :  { %4200 = vmatpush1.bf16.msra.mxu1 %v5271_v15  ;;  %v3119_v15 = vld [vmem:[%s5544_s10 + $0x20] sm:$0xff] }
 0x7f5   :  { %4202 = vmatprep.subr.bf16.mxu1 %v5275_v42  ;;  %v3120_v42 = vld [vmem:[%s5544_s10 + $0x28] sm:$0xff] }
 0x7f8   :  { %4204 = vmatpush1.bf16.msra.mxu1 %v5277_v21  ;;  %v4215_v21 = vpack.c.bf16 %v3120_v42, %v3119_v15  ;;  %v3092_v15 = vrot.slane %v3087_v18, %v4981_v49  ;;  %v3096_v42 = vrot.slane %v3087_v18, %v5019_v45 }
 0x7f9   :  { %4206 = vmatprep.subr.bf16.mxu1 %v4205_v33 }
 0x7fb   :  { %3019 = vmatmul.mubr.f32.vlgmr.msra.gmra.mrb[26].mxu1 %v2809_v24 }
 0x7fc   :  { %4208 = vmatpush3.bf16.msra.mxu1 %v4207_v54 }
 0x7fd   :  { %4210 = vmatprep.subr.bf16.mxu1 %v4209_v26 }
 0x800   :  { %4212 = vmatpush3.bf16.msra.mxu1 %v4211_v58  ;;  %v3076_v58 = vrot.slane %v3067_v62, %v5019_v45 }
 0x801   :  { %4214 = vmatprep.subr.bf16.mxu1 %v4213_v59 }
 0x804   :  { %4216 = vmatpush3.bf16.msra.mxu1 %v4215_v21 }
 0x805   :  { %4218 = vmatprep.subr.bf16.mxu1 %v4217_v14 }
 0x808   :  { %4220 = vmatpush3.bf16.msra.mxu1 %v4219_v61 }
 0x809   :  { %4222 = vmatprep.subr.bf16.mxu1 %v4221_v41 }
 0x80c   :  { %4224 = vmatpush3.bf16.msra.mxu1 %v4223_v53 }
 0x80d   :  { %4226 = vmatprep.subr.bf16.mxu1 %v4225_v23 }
 0x810   :  { %4228 = vmatpush3.bf16.msra.mxu1 %v4227_v48 }
 0x811   :  { %4230 = vmatprep.subr.bf16.mxu1 %v4229_v11 }
 0x814   :  { %4232 = vmatpush3.bf16.msra.mxu1 %v4231_v25 }
 0x815   :  { %4234 = vmatprep.subr.bf16.mxu1 %v4233_v2 }
 0x818   :  { %4236 = vmatpush3.bf16.msra.mxu1 %v4235_v63 }
 0x88e   :  { %v2949_v46 = vpop.f32.mrb[24].mxu1 }
 0x88f   :  { %v2951_v44 = vpop.f32.mrb[25].mxu1  ;;  %v3025_v8 = vmul.f32 %v2949_v46, %v2949_v46  ;;  %v3034_v17 = vrot.slane %v2949_v46, %v4981_v49 }
 0x890   :  { %v3026_v35 = vmul.f32 %v2951_v44, %v2951_v44  ;;  %v3038_v26 = vrot.slane %v2951_v44, %v4981_v49  ;;  %v3148_v44 = vstv %s5545_s11 }
 0x891   :  { %v3039_v36 = vsub.f32 %v5283_v28, %v3034_v17  ;;  %v3041_v59 = vsub.f32 %v5289_v1, %v3034_v17  ;;  %v3043_v9 = vsub.f32 %v5295_v7, %v3034_v17  ;;  %v3045_v57 = vsub.f32 %v5312_v56, %v3034_v17 }
 0x892   :  { %v3040_v14 = vsub.f32 %v5286_v10, %v3038_v26  ;;  %v3042_v4 = vsub.f32 %v5292_v34, %v3038_v26  ;;  %v3044_v61 = vsub.f32 %v5300_v39, %v3038_v26  ;;  %v3046_v28 = vsub.f32 %v5316_v6, %v3038_v26 }
 0x8ce   :  { %v3020_v22 = vpop.f32.mrb[26].mxu1 }
 0x8cf   :  { %v3027_v24 = vsub.f32 %v3020_v22, %v3025_v8  ;;  %v3022_v3 = vpop.f32.mrb[27].mxu1 }
 0x8d0   :  { %v3028_v27 = vsub.f32 %v3022_v3, %v3026_v35 }
 0x8d1   :  { %v3029_v32 = vmax.f32 %v3027_v24, 0.0 }
 0x8d2   :  { %v3030_v33 = vmax.f32 %v3028_v27, 0.0 }
 0x8d3   :  { %v3047_v31 = vadd.f32 1e-05, %v3029_v32 }
 0x8d4   :  { %v3048_v54 = vadd.f32 1e-05, %v3030_v33 }
 0x8d5   :  { %4331 = vrsqrt.f32 %v3047_v31 }
 0x8d6   :  { %4333 = vrsqrt.f32 %v3048_v54 }
 0x8df   :  { %v4332_v51 = vpop.eup %4331 }
 0x8e0   :  { %v4334_v21 = vpop.eup %4333  ;;  %v3054_v55 = vrot.slane %v4332_v51, %v4981_v49 }
 0x8e1   :  { %v3058_v1 = vrot.slane %v4334_v21, %v4981_v49 }
 0x8e2   :  { %v3059_v16 = vmul.f32 %v3054_v55, %v3039_v36  ;;  %v3061_v20 = vmul.f32 %v3054_v55, %v3041_v59  ;;  %v3063_v45 = vmul.f32 %v3054_v55, %v3043_v9  ;;  %v3065_v41 = vmul.f32 %v3054_v55, %v3045_v57 }
 0x8e3   :  { %v3060_v30 = vmul.f32 %v3058_v1, %v3040_v14  ;;  %v3062_v7 = vmul.f32 %v3058_v1, %v3042_v4  ;;  %v3064_v52 = vmul.f32 %v3058_v1, %v3044_v61  ;;  %v3066_v56 = vmul.f32 %v3058_v1, %v3046_v28 }
 0x8e4   :  { %v3079_v53 = vmul.f32 %v3072_v47, %v3059_v16  ;;  %v3081_v23 = vmul.f32 %v3072_v47, %v3061_v20  ;;  %v3083_v49 = vmul.f32 %v3072_v47, %v3063_v45  ;;  %v3085_v19 = vmul.f32 %v3072_v47, %v3065_v41 }
 0x8e5   :  { %v3080_v10 = vmul.f32 %v3076_v58, %v3060_v30  ;;  %v3082_v40 = vmul.f32 %v3076_v58, %v3062_v7  ;;  %v3084_v39 = vmul.f32 %v3076_v58, %v3064_v52  ;;  %v3086_v13 = vmul.f32 %v3076_v58, %v3066_v56 }
 0x8e6   :  { %v3099_v38 = vadd.f32 %v3092_v15, %v3079_v53  ;;  %v3101_v48 = vadd.f32 %v3092_v15, %v3081_v23  ;;  %v3103_v43 = vadd.f32 %v3092_v15, %v3083_v49  ;;  %v3105_v37 = vadd.f32 %v3092_v15, %v3085_v19 }
 0x8e7   :  { %v3100_v34 = vadd.f32 %v3096_v42, %v3080_v10  ;;  %v3102_v60 = vadd.f32 %v3096_v42, %v3082_v40  ;;  %v3104_v0 = vadd.f32 %v3096_v42, %v3084_v39  ;;  %v3106_v25 = vadd.f32 %v3096_v42, %v3086_v13 }
 0x8e8   :  { %v3107_v6 = vmax.f32 %v3099_v38, 0.0  ;;  %v3109_v11 = vmax.f32 %v3101_v48, 0.0  ;;  %v3111_v2 = vmax.f32 %v3103_v43, 0.0  ;;  %v3113_v63 = vmax.f32 %v3105_v37, 0.0 }
 0x8e9   :  { %v3108_v12 = vmax.f32 %v3100_v34, 0.0  ;;  %v3110_v5 = vmax.f32 %v3102_v60, 0.0  ;;  %v3112_v29 = vmax.f32 %v3104_v0, 0.0  ;;  %v3114_v50 = vmax.f32 %v3106_v25, 0.0  ;;  %v3235_v25 = vld [vmem:[%s5546_s12 + $0x8] sm:$0xff] }
 0x8eb   :  { %3213 = vmatprep.mubr.f32.mxu1 %v3108_v12  ;;  %v3234_v12 = vld [vmem:[%s5546_s12] sm:$0xff] }
 0x8ec   :  { %3214 = vmatmul.mubr.f32.vlgmr.msra.gmra.mrb[28].mxu1 %v3107_v6  ;;  %v3314_v48 = vsub.f32 1.0, %v3234_v12 }
 0x8ed   :  { %3218 = vmatprep.mubr.f32.mxu1 %v3110_v5 }
 0x8f0   :  { %3219 = vmatmul.mubr.f32.gmra.mrb[30].mxu1 %v3109_v11 }
 0x8f1   :  { %3223 = vmatprep.mubr.f32.mxu1 %v3112_v29 }
 0x8f4   :  { %3224 = vmatmul.mubr.f32.gmra.mrb[32].mxu1 %v3111_v2 }
 0x8f5   :  { %3228 = vmatprep.mubr.f32.mxu1 %v3114_v50 }
 0x8f8   :  { %3229 = vmatmul.mubr.f32.gmra.mrb[34].mxu1 %v3113_v63 }
 0x9bf   :  { %v3433_v46 = vpop.f32.mrb[28].mxu1 }
 0x9c0   :  { %v3434_v8 = vpop.f32.mrb[29].mxu1 }
 0x9c1   :  { %v3435_v35 = vadd.f32 %v3434_v8, %v3433_v46  ;;  %v3315_v46 = vsub.f32 1.0, %v3235_v25 }
 0x9c3   :  { %v5482_v22 = vadd.f32 %v3435_v35, %v3148_v44  ;;  %v3436_v24 = vpop.f32.mrb[30].mxu1 }
 0x9c4   :  { %v3437_v3 = vpop.f32.mrb[31].mxu1 }
 0x9c5   :  { %v3250_v27 = vand.u32 2147483647, %v5482_v22  ;;  %v3282_v32 = vsub.f32 0.0, %v5482_v22  ;;  %v3438_v33 = vadd.f32 %v3437_v3, %v3436_v24  ;;  %v3238_v0 = vmax.f32 %v5482_v22, 0.0  ;;  %v3236_v3 = vld [vmem:[%s5546_s12 + $0x10] sm:$0xff] }
 0x9c6   :  { %v3242_v13 = vmul.f32 %v3234_v12, %v5482_v22 }
 0x9c7   :  { %v3254_v31 = vsub.f32 0.0, %v3250_v27  ;;  %v3286_v54 = vmul.f32 1.442695, %v3282_v32  ;;  %v3439_v17 = vpop.f32.mrb[32].mxu1  ;;  %v5486_v62 = vadd.f32 %v3438_v33, %v3148_v44  ;;  %v3316_v33 = vsub.f32 1.0, %v3236_v3 }
 0x9c8   :  { %v3440_v26 = vpop.f32.mrb[33].mxu1  ;;  %v3246_v8 = vsub.f32 %v3238_v0, %v3242_v13 }
 0x9c9   :  { %v3258_v18 = vmul.f32 1.442695, %v3254_v31  ;;  %4335 = vpow2.f32 %v3286_v54  ;;  %v3441_v47 = vadd.f32 %v3440_v26, %v3439_v17  ;;  %v3251_v58 = vand.u32 2147483647, %v5486_v62 }
 0x9ca   :  { %v3283_v51 = vsub.f32 0.0, %v5486_v62  ;;  %v3239_v24 = vmax.f32 %v5486_v62, 0.0  ;;  %v3243_v22 = vmul.f32 %v3235_v25, %v5486_v62 }
 0x9cb   :  { %4337 = vpow2.f32 %v3258_v18  ;;  %v5490_v36 = vadd.f32 %v3441_v47, %v3148_v44  ;;  %v3442_v59 = vpop.f32.mrb[34].mxu1  ;;  %v3255_v15 = vsub.f32 0.0, %v3251_v58 }
 0x9cc   :  { %v3288_v42 = vmul.f32 1.442695, %v3283_v51  ;;  %v3443_v21 = vpop.f32.mrb[35].mxu1 }
 0x9cd   :  { %v3252_v9 = vand.u32 2147483647, %v5490_v36  ;;  %v3284_v57 = vsub.f32 0.0, %v5490_v36  ;;  %v3260_v14 = vmul.f32 1.442695, %v3255_v15  ;;  %v3444_v55 = vadd.f32 %v3443_v21, %v3442_v59 }
 0x9ce   :  { %4339 = vpow2.f32 %v3288_v42  ;;  %v3240_v58 = vmax.f32 %v5490_v36, 0.0  ;;  %v3244_v51 = vmul.f32 %v3236_v3, %v5490_v36  ;;  %v3247_v15 = vsub.f32 %v3239_v24, %v3243_v22 }
 0x9cf   :  { %v3256_v4 = vsub.f32 0.0, %v3252_v9  ;;  %v3290_v61 = vmul.f32 1.442695, %v3284_v57  ;;  %4341 = vpow2.f32 %v3260_v14  ;;  %v5494_v28 = vadd.f32 %v3444_v55, %v3148_v44  ;;  %v3237_v55 = vld [vmem:[%s5546_s12 + $0x18] sm:$0xff] }
 0x9d1   :  { %v3262_v1 = vmul.f32 1.442695, %v3256_v4  ;;  %4343 = vpow2.f32 %v3290_v61  ;;  %v3253_v16 = vand.u32 2147483647, %v5494_v28  ;;  %v3285_v20 = vsub.f32 0.0, %v5494_v28 }
 0x9d2   :  { %v3241_v36 = vmax.f32 %v5494_v28, 0.0 }
 0x9d3   :  { %v4336_v45 = vpop.eup %4335  ;;  %4345 = vpow2.f32 %v3262_v1  ;;  %v3257_v30 = vsub.f32 0.0, %v3253_v16  ;;  %v3292_v7 = vmul.f32 1.442695, %v3285_v20  ;;  %v3248_v1 = vsub.f32 %v3240_v58, %v3244_v51 }
 0x9d4   :  { %v3294_v41 = vadd.f32 1.0, %v4336_v45  ;;  %v3317_v16 = vsub.f32 1.0, %v3237_v55 }
 0x9d5   :  { %v4338_v52 = vpop.eup %4337  ;;  %v3264_v53 = vmul.f32 1.442695, %v3257_v30 }
 0x9d6   :  { %v3266_v56 = vadd.f32 1.0, %v4338_v52  ;;  %4347 = vrcp.f32 %v3294_v41 }
 0x9d7   :  { %4349 = vpow2.f32 %v3292_v7  ;;  %v3245_v7 = vmul.f32 %v3237_v55, %v5494_v28 }
 0x9d8   :  { %v4340_v10 = vpop.eup %4339  ;;  %4351 = vlog2.f32 %v3266_v56 }
 0x9d9   :  { %v3295_v40 = vadd.f32 1.0, %v4340_v10  ;;  %4353 = vpow2.f32 %v3264_v53  ;;  %v4342_v38 = vpop.eup %4341 }
 0x9da   :  { %v3267_v34 = vadd.f32 1.0, %v4342_v38 }
 0x9db   :  { %v4344_v23 = vpop.eup %4343  ;;  %4355 = vrcp.f32 %v3295_v40 }
 0x9dc   :  { %v3296_v60 = vadd.f32 1.0, %v4344_v23  ;;  %4357 = vlog2.f32 %v3267_v34 }
 0x9dd   :  { %v4346_v39 = vpop.eup %4345 }
 0x9de   :  { %v3268_v6 = vadd.f32 1.0, %v4346_v39  ;;  %4359 = vrcp.f32 %v3296_v60 }
 0x9e0   :  { %v4348_v49 = vpop.eup %4347  ;;  %4361 = vlog2.f32 %v3268_v6  ;;  %v3249_v6 = vsub.f32 %v3241_v36, %v3245_v7 }
 0x9e1   :  { %v4350_v5 = vpop.eup %4349  ;;  %v3310_v11 = vsub.f32 1.0, %v4348_v49  ;;  %v3306_v2 = vmul.f32 %v4348_v49, %v3234_v12 }
 0x9e2   :  { %v4352_v43 = vpop.eup %4351  ;;  %v3297_v19 = vadd.f32 1.0, %v4350_v5 }
 0x9e3   :  { %v4354_v29 = vpop.eup %4353  ;;  %v3318_v37 = vmul.f32 %v3314_v48, %v3310_v11  ;;  %v3271_v63 = vmul.f32 0.6931472, %v4352_v43 }
 0x9e4   :  { %4363 = vrcp.f32 %v3297_v19  ;;  %v3269_v50 = vadd.f32 1.0, %v4354_v29 }
 0x9e5   :  { %v4356_v44 = vpop.eup %4355  ;;  %v3322_v35 = vadd.f32 %v3318_v37, %v3306_v2  ;;  %v3278_v26 = vadd.f32 %v3271_v63, %v3246_v8 }
 0x9e6   :  { %4365 = vlog2.f32 %v3269_v50  ;;  %v3311_v27 = vsub.f32 1.0, %v4356_v44  ;;  %v4358_v32 = vpop.eup %4357  ;;  %v3307_v18 = vmul.f32 %v4356_v44, %v3235_v25 }
 0x9e7   :  { %v3326_v31 = vsub.f32 1.0, %v3322_v35  ;;  %v3273_v17 = vmul.f32 0.6931472, %v4358_v32 }
 0x9e8   :  { %v4360_v54 = vpop.eup %4359  ;;  %v3319_v47 = vmul.f32 %v3315_v46, %v3311_v27 }
 0x9e9   :  { %v3312_v59 = vsub.f32 1.0, %v4360_v54  ;;  %v3330_v21 = vmul.f32 %v3326_v31, %v3278_v26  ;;  %v3308_v57 = vmul.f32 %v4360_v54, %v3236_v3  ;;  %v3279_v4 = vadd.f32 %v3273_v17, %v3247_v15 }
 0x9ea   :  { %v4362_v62 = vpop.eup %4361  ;;  %v3323_v42 = vadd.f32 %v3319_v47, %v3307_v18 }
 0x9eb   :  { %v3275_v9 = vmul.f32 0.6931472, %v4362_v62  ;;  %v3320_v14 = vmul.f32 %v3316_v33, %v3312_v59  ;;  %v3334_v30 = vmul.f32 %v3330_v21, %v3326_v31 }
 0x9ec   :  { %v3327_v61 = vsub.f32 1.0, %v3323_v42 }
 0x9ed   :  { %v3324_v20 = vadd.f32 %v3320_v14, %v3308_v57  ;;  %v3280_v52 = vadd.f32 %v3275_v9, %v3248_v1  ;;  %v3338_v39 = vsel %vm385_vm2, %v3334_v30, 0.0 }
 0x9ee   :  { %v4364_v45 = vpop.eup %4363  ;;  %v3331_v41 = vmul.f32 %v3327_v61, %v3279_v4 }
 0x9ef   :  { %v3313_v56 = vsub.f32 1.0, %v4364_v45  ;;  %v3328_v53 = vsub.f32 1.0, %v3324_v20  ;;  %v3309_v23 = vmul.f32 %v4364_v45, %v3237_v55 }
 0x9f0   :  { %v4366_v10 = vpop.eup %4365  ;;  %v3335_v40 = vmul.f32 %v3331_v41, %v3327_v61 }
 0x9f1   :  { %v3277_v38 = vmul.f32 0.6931472, %v4366_v10  ;;  %v3321_v34 = vmul.f32 %v3317_v16, %v3313_v56  ;;  %v3332_v60 = vmul.f32 %v3328_v53, %v3280_v52 }
 0x9f2   :  { %v3339_v12 = vsel %vm385_vm2, %v3335_v40, 0.0 }
 0x9f3   :  { %v3325_v48 = vadd.f32 %v3321_v34, %v3309_v23  ;;  %v3336_v49 = vmul.f32 %v3332_v60, %v3328_v53  ;;  %v3340_v5 = vadd.f32 %v3339_v12, %v3338_v39  ;;  %v3281_v0 = vadd.f32 %v3277_v38, %v3249_v6 }
 0x9f5   :  { %v3329_v13 = vsub.f32 1.0, %v3325_v48  ;;  %v3341_v28 = vsel %vm385_vm2, %v3336_v49, 0.0 }
 0x9f6   :  { %v3342_v11 = vadd.f32 %v3341_v28, %v3340_v5 }
 0x9f7   :  { %v3333_v43 = vmul.f32 %v3329_v13, %v3281_v0 }
 0x9f9   :  { %v3337_v19 = vmul.f32 %v3333_v43, %v3329_v13 }
 0x9fb   :  { %v3343_v29 = vsel %vm385_vm2, %v3337_v19, 0.0 }
 0x9fc   :  { %v3344_v25 = vadd.f32 %v3343_v29, %v3342_v11 }
 0x9fe   :  { %3345 = vadd.xlane.f32.xlu0 %v3344_v25 }
 0xa8b   :  { %v3346_v2 = vpop.xlane.xlu0 %3345 }
 0xa8c   :  { %v3347_v37 = vrot.slane %v3346_v2, 4 }
 0xa8e   :  { %v3348_v50 = vadd.f32 %v3347_v37, %v3346_v2 }
 0xa90   :  { %v3349_v63 = vrot.slane %v3348_v50, 2 }
 0xa92   :  { %v3350_v46 = vadd.f32 %v3349_v63, %v3348_v50 }
 0xa94   :  { %v3351_v44 = vrot.slane %v3350_v46, 1 }
 0xa96   :  { %v3352_v8 = vadd.f32 %v3351_v44, %v3350_v46 }
 0xa98   :  { %4317 = vpush %v3352_v8 }
 0xac9   :  { %s4318_s12 = spop %4317 }
 0xaca   :  { %s3354_s30 = smul.f32 0.0009765625, %s4318_s12 }
 0xacc   :  { %3356 = sst [smem:[#allocation12]] %s3354_s30 }
 0xacd   :  { %4464 = shalt.err (!%p4461_p6)
}
 0xace   :  { %s4480_s16 = smov [#allocation12]  }
 0xacf   :  { %3364 = dma.smem_to_hbm %s4480_s16, 16, %s5547_s13, [#allocation6]  }
 0xad0   :  { %4471 = dma.done.wait [#allocation6], 16  }
 0xad1   :  { %4472 = vsyncadd [#allocation6], 4294967280 }
 0xad2   :  { %3368 = sfence }
 0xad3   :  { %3369 = vsyncpa [#allocation5], 1 }
 0xad4   :  { %3370 = vsyncpa [#allocation8], 1 }
 0xad5   :  { %3371 = vsyncpa [#allocation11], 1 }
 0xad6   :  { %3372 = vsyncpa [#allocation6], 1 }

</bundles_post_ra>
